<compile_context>
chip_gen: v5e
topology: v5e:2x2
jax: 0.10.0
libtpu: 0.0.40
codegen_flags: <defaults>
</compile_context>

<pallas_src>
import functools

import jax
import jax.numpy as jnp
from jax.experimental import pallas as pl
from jax.experimental.pallas import tpu as pltpu


def classifier_kernel(tok_f_ref, tok_b_ref, tg_ref, whh_ref, w1_ref, b1_ref,
                      w2_ref, b2_ref, out_ref, *, batch, seq_len, gate_blk,
                      vocab):
    B, S, GB, V = batch, seq_len, gate_blk, vocab
    SB = S * B
    H = w1_ref.shape[1]

    # ---- embedding + LSTM input projection as ONE one-hot MXU matmul, fully
    # off the serial path.  Row r = s*B + b of the one-hot has a 1 at the fwd
    # token id (time s) and a 1 at V + bwd token id (time S-1-s); the stacked
    # table [tg_f; tg_b] therefore yields fwd+bwd gate pre-activations in one
    # shot (fwd/bwd lane sub-blocks are disjoint, so the sum is exact).
    pos = jax.lax.broadcasted_iota(jnp.int32, (SB, 2 * V), 1)
    onehot = ((pos == tok_f_ref[...]) |
              (pos == tok_b_ref[...])).astype(jnp.float32)
    # HIGHEST precision: this "gather" has no matching matmul in the pure-JAX
    # reference, so its rounding would not cancel in the 1e-5 comparison.
    xg = jnp.dot(onehot, tg_ref[...],
                 preferred_element_type=jnp.float32,
                 precision=jax.lax.Precision.HIGHEST)          # (SB, 4*GB)

    # ---- recurrent weights loaded ONCE (hoisted off the 8-step serial chain).
    whh = whh_ref[...]                                          # (GB, 4*GB)

    # ---- fused bidirectional LSTM recurrence + fused linear1 accumulation.
    # State lanes: [h_f (H) | h_b (H) | zero pad] -> GB lanes.
    # Gate lane blocks (GB lanes each), kernel order [i, f, o, g]; inside each
    # block: [fwd (H) | bwd (H) | zero pad].  Pad lanes stay exactly zero:
    # g_pad = tanh(0) = 0 forces c_pad = h_pad = 0 every step.
    h = jnp.zeros((B, GB), jnp.float32)
    c = jnp.zeros((B, GB), jnp.float32)
    d1 = jnp.zeros((B, H), jnp.float32)
    # TODO(synk): for large S switch to lax.fori_loop + a VMEM scratch for the
    # per-step slices to bound live ranges; a static unroll is fine at S=8.
    for s in range(S):
        gates = xg[s * B:(s + 1) * B, :] + jnp.dot(
            h, whh, preferred_element_type=jnp.float32)
        ifo = jax.nn.sigmoid(gates[:, 0:3 * GB])     # i|f|o: one EUP chain
        g_a = jnp.tanh(gates[:, 3 * GB:4 * GB])      # g:     one EUP chain
        i_a = ifo[:, 0 * GB:1 * GB]
        f_a = ifo[:, 1 * GB:2 * GB]
        o_a = ifo[:, 2 * GB:3 * GB]
        c = f_a * c + i_a * g_a
        h = o_a * jnp.tanh(c)
        # linear1 fused: depends only on this step's h, so the (B,GB)@(GB,H)
        # matmul overlaps with the next serial recurrence step.
        d1 = d1 + jnp.dot(h, w1_ref[s * GB:(s + 1) * GB, :],
                          preferred_element_type=jnp.float32)

    # ---- bias + ReLU, then linear2 + sigmoid.
    d1 = jnp.maximum(d1 + b1_ref[...], 0.0)
    logits = jnp.dot(d1, w2_ref[...],
                     preferred_element_type=jnp.float32) + b2_ref[...]
    out_ref[...] = jax.nn.sigmoid(logits)


def classifier_forward(tokens, params):
    B, S = tokens.shape
    GB = params["whh_pad"].shape[0]
    C = params["w2"].shape[1]
    V = params["tg_stack"].shape[0] // 2

    # fwd/bwd token-id columns in recurrence-step order (row r = s*B + b);
    # the bwd column is pre-offset by V to index the stacked [tg_f; tg_b]
    # table.  Pure int index glue on a (B, S) array.
    tok_f = jnp.transpose(tokens).reshape(S * B, 1).astype(jnp.int32)
    tok_b = (jnp.transpose(tokens[:, ::-1]).reshape(S * B, 1)
             + V).astype(jnp.int32)

    kernel = functools.partial(classifier_kernel, batch=B, seq_len=S,
                               gate_blk=GB, vocab=V)
    vmem = pl.BlockSpec(memory_space=pltpu.MemorySpace.VMEM)
    # TODO(synk): for real batch sizes, tile B with a grid and
    # compiler_params=pltpu.CompilerParams(dimension_semantics=("parallel",)).
    return pl.pallas_call(
        kernel,
        out_shape=jax.ShapeDtypeStruct((B, C), jnp.float32),
        in_specs=[vmem] * 8,
        out_specs=vmem,
    )(tok_f, tok_b, params["tg_stack"], params["whh_pad"],
      params["w1_big"], params["b1"], params["w2"], params["b2"])


def init_params(key, vocab_size, embed_size, hidden_size, num_classes, seq_len):
    H, S, V = hidden_size, seq_len, vocab_size
    GB = ((2 * H + 127) // 128) * 128      # per-gate lane block, >= 2H, 128-aligned
    ks = jax.random.split(key, 13)
    sd = 0.1
    emb = jax.random.normal(ks[0], (V, embed_size), jnp.float32) * sd
    wih_f = jax.random.normal(ks[1], (4 * H, embed_size), jnp.float32) * sd
    whh_f = jax.random.normal(ks[2], (4 * H, H), jnp.float32) * sd
    bih_f = jax.random.normal(ks[3], (4 * H,), jnp.float32) * sd
    bhh_f = jax.random.normal(ks[4], (4 * H,), jnp.float32) * sd
    wih_b = jax.random.normal(ks[5], (4 * H, embed_size), jnp.float32) * sd
    whh_b = jax.random.normal(ks[6], (4 * H, H), jnp.float32) * sd
    bih_b = jax.random.normal(ks[7], (4 * H,), jnp.float32) * sd
    bhh_b = jax.random.normal(ks[8], (4 * H,), jnp.float32) * sd
    w1 = jax.random.normal(ks[9], (H, S * 2 * H), jnp.float32) * sd
    b1 = jax.random.normal(ks[10], (H,), jnp.float32) * sd
    w2 = jax.random.normal(ks[11], (num_classes, H), jnp.float32) * sd
    b2 = jax.random.normal(ks[12], (num_classes,), jnp.float32) * sd

    # Raw (pre-transposed) parameters: used by the pure-JAX reference.
    params = dict(
        emb=emb,
        wih_f=wih_f.T, whh_f=whh_f.T, b_f=(bih_f + bhh_f)[None, :],
        wih_b=wih_b.T, whh_b=whh_b.T, b_b=(bih_b + bhh_b)[None, :],
        w1=w1.T, b1=b1[None, :], w2=w2.T, b2=b2[None, :],
    )

    # ---- kernel-layout weight prep (pure one-time glue) ----
    # Fold embedding into the LSTM input projection: token -> gate pre-acts.
    # Built at default matmul precision to mirror the reference's emb @ W_ih.
    # TODO(synk): for large vocabularies keep these tables in HBM and
    # DMA-gather, or pass emb + W_ih and project in-kernel (v7x VMEM = 64 MiB).
    xg_f = emb @ wih_f.T + (bih_f + bhh_f)          # (V, 4H)
    xg_b = emb @ wih_b.T + (bih_b + bhh_b)          # (V, 4H)

    # Gate lane order in kernel blocks: [i, f, o, g] (raw PyTorch order is
    # i, f, g, o) so the kernel can apply sigmoid to one contiguous 3*GB slice
    # and tanh to one GB slice per step.
    gate_src = (0, 1, 3, 2)
    tg_f_tab = jnp.zeros((V, 4 * GB), jnp.float32)
    tg_b_tab = jnp.zeros((V, 4 * GB), jnp.float32)
    whh_pad = jnp.zeros((GB, 4 * GB), jnp.float32)
    whh_f_t, whh_b_t = whh_f.T, whh_b.T             # (H, 4H)
    for k, g in enumerate(gate_src):
        tg_f_tab = tg_f_tab.at[:, k * GB:k * GB + H].set(xg_f[:, g * H:(g + 1) * H])
        tg_b_tab = tg_b_tab.at[:, k * GB + H:k * GB + 2 * H].set(xg_b[:, g * H:(g + 1) * H])
        whh_pad = whh_pad.at[0:H, k * GB:k * GB + H].set(
            whh_f_t[:, g * H:(g + 1) * H])
        whh_pad = whh_pad.at[H:2 * H, k * GB + H:k * GB + 2 * H].set(
            whh_b_t[:, g * H:(g + 1) * H])
    tg_stack = jnp.concatenate([tg_f_tab, tg_b_tab], axis=0)   # (2V, 4*GB)

    # Zero-padded, time-reordered W1^T: recurrence step s maps h_f(s) to W1^T
    # rows [2H*s : 2H*s+H] and h_b(S-1-s) to rows [2H*(S-1-s)+H : +2H];
    # padded state lanes hit zero rows.
    w1t = w1.T                                      # (S*2H, H)
    w1_big = jnp.zeros((S * GB, H), jnp.float32)
    for s in range(S):
        tb = S - 1 - s
        w1_big = w1_big.at[GB * s:GB * s + H, :].set(
            w1t[2 * H * s:2 * H * s + H, :])
        w1_big = w1_big.at[GB * s + H:GB * s + 2 * H, :].set(
            w1t[2 * H * tb + H:2 * H * tb + 2 * H, :])

    params.update(tg_stack=tg_stack, whh_pad=whh_pad, w1_big=w1_big)
    return params


def reference_forward(tokens, params):
    """Pure-JAX reference replicating the PyTorch forward (for verification)."""
    emb = jnp.take(params["emb"], tokens, axis=0)
    B, S, _ = emb.shape
    H = params["whh_f"].shape[0]

    def run_dir(wih, whh, bias, reverse):
        h = jnp.zeros((B, H), jnp.float32)
        c = jnp.zeros((B, H), jnp.float32)
        outs = [None] * S
        order = range(S - 1, -1, -1) if reverse else range(S)
        for t in order:
            g = emb[:, t, :] @ wih + h @ whh + bias
            i_g = jax.nn.sigmoid(g[:, :H]); f_g = jax.nn.sigmoid(g[:, H:2 * H])
            g_g = jnp.tanh(g[:, 2 * H:3 * H]); o_g = jax.nn.sigmoid(g[:, 3 * H:])
            c = f_g * c + i_g * g_g
            h = o_g * jnp.tanh(c)
            outs[t] = h
        return jnp.stack(outs, axis=1)

    fwd = run_dir(params["wih_f"], params["whh_f"], params["b_f"], False)
    bwd = run_dir(params["wih_b"], params["whh_b"], params["b_b"], True)
    lstm_out = jnp.concatenate([fwd, bwd], axis=-1)          # (B, S, 2H)
    flat = lstm_out.reshape(B, S * 2 * H)
    d1 = jax.nn.relu(flat @ params["w1"] + params["b1"])
    return jax.nn.sigmoid(d1 @ params["w2"] + params["b2"])


if __name__ == "__main__":
    vocab_size, embed_size, hidden_size, num_classes, seq_len = 32, 16, 32, 1, 8
    batch = 2

    key = jax.random.PRNGKey(0)
    k_tok, k_par = jax.random.split(key)
    tokens = jax.random.randint(k_tok, (batch, seq_len), 0, vocab_size,
                                dtype=jnp.int32)
    params = init_params(k_par, vocab_size, embed_size, hidden_size,
                         num_classes, seq_len)

    out = jax.block_until_ready(classifier_forward(tokens, params))
    ref = jax.block_until_ready(reference_forward(tokens, params))
    assert out.shape == (batch, num_classes)
    assert jnp.allclose(out, ref, atol=1e-5, rtol=1e-5), (out, ref)
    print("KERNEL_OK")
</pallas_src>

<mosaic_0001>
module attributes {stable_mosaic.version = 11 : i64} {
  func.func @classifier_kernel(%arg0: memref<16x1xi32, #tpu.memory_space<vmem>>, %arg1: memref<16x1xi32, #tpu.memory_space<vmem>>, %arg2: memref<64x512xf32, #tpu.memory_space<vmem>>, %arg3: memref<128x512xf32, #tpu.memory_space<vmem>>, %arg4: memref<1024x32xf32, #tpu.memory_space<vmem>>, %arg5: memref<1x32xf32, #tpu.memory_space<vmem>>, %arg6: memref<32x1xf32, #tpu.memory_space<vmem>>, %arg7: memref<1x1xf32, #tpu.memory_space<vmem>>, %arg8: memref<2x1xf32, #tpu.memory_space<vmem>>) attributes {dimension_semantics = [], scalar_prefetch = 0 : i64, scratch_operands = 0 : i64, tpu.core_type = #tpu.core_type<tc>} {
    %0 = tpu.iota {dimensions = array<i32: 1>} : vector<16x64xi32>
    %c0 = arith.constant 0 : index
    %c0_0 = arith.constant 0 : index
    %1 = vector.load %arg0[%c0, %c0_0] : memref<16x1xi32, #tpu.memory_space<vmem>>, vector<16x1xi32>
    %2 = vector.broadcast %1 : vector<16x1xi32> to vector<16x64xi32>
    %3 = arith.cmpi eq, %0, %2 : vector<16x64xi32>
    %c0_1 = arith.constant 0 : index
    %c0_2 = arith.constant 0 : index
    %4 = vector.load %arg1[%c0_1, %c0_2] : memref<16x1xi32, #tpu.memory_space<vmem>>, vector<16x1xi32>
    %5 = vector.broadcast %4 : vector<16x1xi32> to vector<16x64xi32>
    %6 = arith.cmpi eq, %0, %5 : vector<16x64xi32>
    %7 = arith.ori %3, %6 : vector<16x64xi1>
    %8 = arith.extui %7 : vector<16x64xi1> to vector<16x64xi32>
    %9 = arith.sitofp %8 : vector<16x64xi32> to vector<16x64xf32>
    %c0_3 = arith.constant 0 : index
    %c0_4 = arith.constant 0 : index
    %10 = vector.load %arg2[%c0_3, %c0_4] : memref<64x512xf32, #tpu.memory_space<vmem>>, vector<64x512xf32>
    %cst = arith.constant dense<0.000000e+00> : vector<16x512xf32>
    %11 = tpu.matmul %9, %10, %cst {dimension_numbers = #tpu.dot_dimension_numbers<[1], [0], [0], [1], [0, 0, 1, 1], [], []>, precision = #tpu.contract_precision<fp32>} : vector<16x64xf32>, vector<64x512xf32>, vector<16x512xf32> -> vector<16x512xf32>
    %c0_5 = arith.constant 0 : index
    %c0_6 = arith.constant 0 : index
    %12 = vector.load %arg3[%c0_5, %c0_6] : memref<128x512xf32, #tpu.memory_space<vmem>>, vector<128x512xf32>
    %cst_7 = arith.constant 0.000000e+00 : f32
    %13 = vector.broadcast %cst_7 : f32 to vector<2x128xf32>
    %cst_8 = arith.constant 0.000000e+00 : f32
    %14 = vector.broadcast %cst_8 : f32 to vector<2x128xf32>
    %cst_9 = arith.constant 0.000000e+00 : f32
    %15 = vector.broadcast %cst_9 : f32 to vector<2x32xf32>
    %16 = vector.extract_strided_slice %11 {offsets = [0, 0], sizes = [2, 512], strides = [1, 1]} : vector<16x512xf32> to vector<2x512xf32>
    %cst_10 = arith.constant dense<0.000000e+00> : vector<2x512xf32>
    %17 = tpu.matmul %13, %12, %cst_10 {dimension_numbers = #tpu.dot_dimension_numbers<[1], [0], [0], [1], [0, 0, 1, 1], [], []>} : vector<2x128xf32>, vector<128x512xf32>, vector<2x512xf32> -> vector<2x512xf32>
    %18 = arith.addf %16, %17 : vector<2x512xf32>
    %19 = vector.extract_strided_slice %18 {offsets = [0, 0], sizes = [2, 384], strides = [1, 1]} : vector<2x512xf32> to vector<2x384xf32>
    %20 = arith.negf %19 : vector<2x384xf32>
    %21 = math.exp %20 : vector<2x384xf32>
    %cst_11 = arith.constant 1.000000e+00 : f32
    %22 = vector.broadcast %cst_11 : f32 to vector<2x384xf32>
    %23 = arith.addf %22, %21 : vector<2x384xf32>
    %24 = arith.divf %22, %23 : vector<2x384xf32>
    %25 = vector.extract_strided_slice %18 {offsets = [0, 384], sizes = [2, 128], strides = [1, 1]} : vector<2x512xf32> to vector<2x128xf32>
    %26 = math.tanh %25 : vector<2x128xf32>
    %27 = vector.extract_strided_slice %24 {offsets = [0, 0], sizes = [2, 128], strides = [1, 1]} : vector<2x384xf32> to vector<2x128xf32>
    %28 = vector.extract_strided_slice %24 {offsets = [0, 128], sizes = [2, 128], strides = [1, 1]} : vector<2x384xf32> to vector<2x128xf32>
    %29 = vector.extract_strided_slice %24 {offsets = [0, 256], sizes = [2, 128], strides = [1, 1]} : vector<2x384xf32> to vector<2x128xf32>
    %30 = arith.mulf %28, %14 : vector<2x128xf32>
    %31 = arith.mulf %27, %26 : vector<2x128xf32>
    %32 = arith.addf %30, %31 : vector<2x128xf32>
    %33 = math.tanh %32 : vector<2x128xf32>
    %34 = arith.mulf %29, %33 : vector<2x128xf32>
    %c0_12 = arith.constant 0 : index
    %c0_13 = arith.constant 0 : index
    %35 = vector.load %arg4[%c0_12, %c0_13] : memref<1024x32xf32, #tpu.memory_space<vmem>>, vector<128x32xf32>
    %cst_14 = arith.constant dense<0.000000e+00> : vector<2x32xf32>
    %36 = tpu.matmul %34, %35, %cst_14 {dimension_numbers = #tpu.dot_dimension_numbers<[1], [0], [0], [1], [0, 0, 1, 1], [], []>} : vector<2x128xf32>, vector<128x32xf32>, vector<2x32xf32> -> vector<2x32xf32>
    %37 = arith.addf %15, %36 : vector<2x32xf32>
    %38 = vector.extract_strided_slice %11 {offsets = [2, 0], sizes = [2, 512], strides = [1, 1]} : vector<16x512xf32> to vector<2x512xf32>
    %cst_15 = arith.constant dense<0.000000e+00> : vector<2x512xf32>
    %39 = tpu.matmul %34, %12, %cst_15 {dimension_numbers = #tpu.dot_dimension_numbers<[1], [0], [0], [1], [0, 0, 1, 1], [], []>} : vector<2x128xf32>, vector<128x512xf32>, vector<2x512xf32> -> vector<2x512xf32>
    %40 = arith.addf %38, %39 : vector<2x512xf32>
    %41 = vector.extract_strided_slice %40 {offsets = [0, 0], sizes = [2, 384], strides = [1, 1]} : vector<2x512xf32> to vector<2x384xf32>
    %42 = arith.negf %41 : vector<2x384xf32>
    %43 = math.exp %42 : vector<2x384xf32>
    %cst_16 = arith.constant 1.000000e+00 : f32
    %44 = vector.broadcast %cst_16 : f32 to vector<2x384xf32>
    %45 = arith.addf %44, %43 : vector<2x384xf32>
    %46 = arith.divf %44, %45 : vector<2x384xf32>
    %47 = vector.extract_strided_slice %40 {offsets = [0, 384], sizes = [2, 128], strides = [1, 1]} : vector<2x512xf32> to vector<2x128xf32>
    %48 = math.tanh %47 : vector<2x128xf32>
    %49 = vector.extract_strided_slice %46 {offsets = [0, 0], sizes = [2, 128], strides = [1, 1]} : vector<2x384xf32> to vector<2x128xf32>
    %50 = vector.extract_strided_slice %46 {offsets = [0, 128], sizes = [2, 128], strides = [1, 1]} : vector<2x384xf32> to vector<2x128xf32>
    %51 = vector.extract_strided_slice %46 {offsets = [0, 256], sizes = [2, 128], strides = [1, 1]} : vector<2x384xf32> to vector<2x128xf32>
    %52 = arith.mulf %50, %32 : vector<2x128xf32>
    %53 = arith.mulf %49, %48 : vector<2x128xf32>
    %54 = arith.addf %52, %53 : vector<2x128xf32>
    %55 = math.tanh %54 : vector<2x128xf32>
    %56 = arith.mulf %51, %55 : vector<2x128xf32>
    %c128 = arith.constant 128 : index
    %c0_17 = arith.constant 0 : index
    %57 = vector.load %arg4[%c128, %c0_17] : memref<1024x32xf32, #tpu.memory_space<vmem>>, vector<128x32xf32>
    %cst_18 = arith.constant dense<0.000000e+00> : vector<2x32xf32>
    %58 = tpu.matmul %56, %57, %cst_18 {dimension_numbers = #tpu.dot_dimension_numbers<[1], [0], [0], [1], [0, 0, 1, 1], [], []>} : vector<2x128xf32>, vector<128x32xf32>, vector<2x32xf32> -> vector<2x32xf32>
    %59 = arith.addf %37, %58 : vector<2x32xf32>
    %60 = vector.extract_strided_slice %11 {offsets = [4, 0], sizes = [2, 512], strides = [1, 1]} : vector<16x512xf32> to vector<2x512xf32>
    %cst_19 = arith.constant dense<0.000000e+00> : vector<2x512xf32>
    %61 = tpu.matmul %56, %12, %cst_19 {dimension_numbers = #tpu.dot_dimension_numbers<[1], [0], [0], [1], [0, 0, 1, 1], [], []>} : vector<2x128xf32>, vector<128x512xf32>, vector<2x512xf32> -> vector<2x512xf32>
    %62 = arith.addf %60, %61 : vector<2x512xf32>
    %63 = vector.extract_strided_slice %62 {offsets = [0, 0], sizes = [2, 384], strides = [1, 1]} : vector<2x512xf32> to vector<2x384xf32>
    %64 = arith.negf %63 : vector<2x384xf32>
    %65 = math.exp %64 : vector<2x384xf32>
    %cst_20 = arith.constant 1.000000e+00 : f32
    %66 = vector.broadcast %cst_20 : f32 to vector<2x384xf32>
    %67 = arith.addf %66, %65 : vector<2x384xf32>
    %68 = arith.divf %66, %67 : vector<2x384xf32>
    %69 = vector.extract_strided_slice %62 {offsets = [0, 384], sizes = [2, 128], strides = [1, 1]} : vector<2x512xf32> to vector<2x128xf32>
    %70 = math.tanh %69 : vector<2x128xf32>
    %71 = vector.extract_strided_slice %68 {offsets = [0, 0], sizes = [2, 128], strides = [1, 1]} : vector<2x384xf32> to vector<2x128xf32>
    %72 = vector.extract_strided_slice %68 {offsets = [0, 128], sizes = [2, 128], strides = [1, 1]} : vector<2x384xf32> to vector<2x128xf32>
    %73 = vector.extract_strided_slice %68 {offsets = [0, 256], sizes = [2, 128], strides = [1, 1]} : vector<2x384xf32> to vector<2x128xf32>
    %74 = arith.mulf %72, %54 : vector<2x128xf32>
    %75 = arith.mulf %71, %70 : vector<2x128xf32>
    %76 = arith.addf %74, %75 : vector<2x128xf32>
    %77 = math.tanh %76 : vector<2x128xf32>
    %78 = arith.mulf %73, %77 : vector<2x128xf32>
    %c256 = arith.constant 256 : index
    %c0_21 = arith.constant 0 : index
    %79 = vector.load %arg4[%c256, %c0_21] : memref<1024x32xf32, #tpu.memory_space<vmem>>, vector<128x32xf32>
    %cst_22 = arith.constant dense<0.000000e+00> : vector<2x32xf32>
    %80 = tpu.matmul %78, %79, %cst_22 {dimension_numbers = #tpu.dot_dimension_numbers<[1], [0], [0], [1], [0, 0, 1, 1], [], []>} : vector<2x128xf32>, vector<128x32xf32>, vector<2x32xf32> -> vector<2x32xf32>
    %81 = arith.addf %59, %80 : vector<2x32xf32>
    %82 = vector.extract_strided_slice %11 {offsets = [6, 0], sizes = [2, 512], strides = [1, 1]} : vector<16x512xf32> to vector<2x512xf32>
    %cst_23 = arith.constant dense<0.000000e+00> : vector<2x512xf32>
    %83 = tpu.matmul %78, %12, %cst_23 {dimension_numbers = #tpu.dot_dimension_numbers<[1], [0], [0], [1], [0, 0, 1, 1], [], []>} : vector<2x128xf32>, vector<128x512xf32>, vector<2x512xf32> -> vector<2x512xf32>
    %84 = arith.addf %82, %83 : vector<2x512xf32>
    %85 = vector.extract_strided_slice %84 {offsets = [0, 0], sizes = [2, 384], strides = [1, 1]} : vector<2x512xf32> to vector<2x384xf32>
    %86 = arith.negf %85 : vector<2x384xf32>
    %87 = math.exp %86 : vector<2x384xf32>
    %cst_24 = arith.constant 1.000000e+00 : f32
    %88 = vector.broadcast %cst_24 : f32 to vector<2x384xf32>
    %89 = arith.addf %88, %87 : vector<2x384xf32>
    %90 = arith.divf %88, %89 : vector<2x384xf32>
    %91 = vector.extract_strided_slice %84 {offsets = [0, 384], sizes = [2, 128], strides = [1, 1]} : vector<2x512xf32> to vector<2x128xf32>
    %92 = math.tanh %91 : vector<2x128xf32>
    %93 = vector.extract_strided_slice %90 {offsets = [0, 0], sizes = [2, 128], strides = [1, 1]} : vector<2x384xf32> to vector<2x128xf32>
    %94 = vector.extract_strided_slice %90 {offsets = [0, 128], sizes = [2, 128], strides = [1, 1]} : vector<2x384xf32> to vector<2x128xf32>
    %95 = vector.extract_strided_slice %90 {offsets = [0, 256], sizes = [2, 128], strides = [1, 1]} : vector<2x384xf32> to vector<2x128xf32>
    %96 = arith.mulf %94, %76 : vector<2x128xf32>
    %97 = arith.mulf %93, %92 : vector<2x128xf32>
    %98 = arith.addf %96, %97 : vector<2x128xf32>
    %99 = math.tanh %98 : vector<2x128xf32>
    %100 = arith.mulf %95, %99 : vector<2x128xf32>
    %c384 = arith.constant 384 : index
    %c0_25 = arith.constant 0 : index
    %101 = vector.load %arg4[%c384, %c0_25] : memref<1024x32xf32, #tpu.memory_space<vmem>>, vector<128x32xf32>
    %cst_26 = arith.constant dense<0.000000e+00> : vector<2x32xf32>
    %102 = tpu.matmul %100, %101, %cst_26 {dimension_numbers = #tpu.dot_dimension_numbers<[1], [0], [0], [1], [0, 0, 1, 1], [], []>} : vector<2x128xf32>, vector<128x32xf32>, vector<2x32xf32> -> vector<2x32xf32>
    %103 = arith.addf %81, %102 : vector<2x32xf32>
    %104 = vector.extract_strided_slice %11 {offsets = [8, 0], sizes = [2, 512], strides = [1, 1]} : vector<16x512xf32> to vector<2x512xf32>
    %cst_27 = arith.constant dense<0.000000e+00> : vector<2x512xf32>
    %105 = tpu.matmul %100, %12, %cst_27 {dimension_numbers = #tpu.dot_dimension_numbers<[1], [0], [0], [1], [0, 0, 1, 1], [], []>} : vector<2x128xf32>, vector<128x512xf32>, vector<2x512xf32> -> vector<2x512xf32>
    %106 = arith.addf %104, %105 : vector<2x512xf32>
    %107 = vector.extract_strided_slice %106 {offsets = [0, 0], sizes = [2, 384], strides = [1, 1]} : vector<2x512xf32> to vector<2x384xf32>
    %108 = arith.negf %107 : vector<2x384xf32>
    %109 = math.exp %108 : vector<2x384xf32>
    %cst_28 = arith.constant 1.000000e+00 : f32
    %110 = vector.broadcast %cst_28 : f32 to vector<2x384xf32>
    %111 = arith.addf %110, %109 : vector<2x384xf32>
    %112 = arith.divf %110, %111 : vector<2x384xf32>
    %113 = vector.extract_strided_slice %106 {offsets = [0, 384], sizes = [2, 128], strides = [1, 1]} : vector<2x512xf32> to vector<2x128xf32>
    %114 = math.tanh %113 : vector<2x128xf32>
    %115 = vector.extract_strided_slice %112 {offsets = [0, 0], sizes = [2, 128], strides = [1, 1]} : vector<2x384xf32> to vector<2x128xf32>
    %116 = vector.extract_strided_slice %112 {offsets = [0, 128], sizes = [2, 128], strides = [1, 1]} : vector<2x384xf32> to vector<2x128xf32>
    %117 = vector.extract_strided_slice %112 {offsets = [0, 256], sizes = [2, 128], strides = [1, 1]} : vector<2x384xf32> to vector<2x128xf32>
    %118 = arith.mulf %116, %98 : vector<2x128xf32>
    %119 = arith.mulf %115, %114 : vector<2x128xf32>
    %120 = arith.addf %118, %119 : vector<2x128xf32>
    %121 = math.tanh %120 : vector<2x128xf32>
    %122 = arith.mulf %117, %121 : vector<2x128xf32>
    %c512 = arith.constant 512 : index
    %c0_29 = arith.constant 0 : index
    %123 = vector.load %arg4[%c512, %c0_29] : memref<1024x32xf32, #tpu.memory_space<vmem>>, vector<128x32xf32>
    %cst_30 = arith.constant dense<0.000000e+00> : vector<2x32xf32>
    %124 = tpu.matmul %122, %123, %cst_30 {dimension_numbers = #tpu.dot_dimension_numbers<[1], [0], [0], [1], [0, 0, 1, 1], [], []>} : vector<2x128xf32>, vector<128x32xf32>, vector<2x32xf32> -> vector<2x32xf32>
    %125 = arith.addf %103, %124 : vector<2x32xf32>
    %126 = vector.extract_strided_slice %11 {offsets = [10, 0], sizes = [2, 512], strides = [1, 1]} : vector<16x512xf32> to vector<2x512xf32>
    %cst_31 = arith.constant dense<0.000000e+00> : vector<2x512xf32>
    %127 = tpu.matmul %122, %12, %cst_31 {dimension_numbers = #tpu.dot_dimension_numbers<[1], [0], [0], [1], [0, 0, 1, 1], [], []>} : vector<2x128xf32>, vector<128x512xf32>, vector<2x512xf32> -> vector<2x512xf32>
    %128 = arith.addf %126, %127 : vector<2x512xf32>
    %129 = vector.extract_strided_slice %128 {offsets = [0, 0], sizes = [2, 384], strides = [1, 1]} : vector<2x512xf32> to vector<2x384xf32>
    %130 = arith.negf %129 : vector<2x384xf32>
    %131 = math.exp %130 : vector<2x384xf32>
    %cst_32 = arith.constant 1.000000e+00 : f32
    %132 = vector.broadcast %cst_32 : f32 to vector<2x384xf32>
    %133 = arith.addf %132, %131 : vector<2x384xf32>
    %134 = arith.divf %132, %133 : vector<2x384xf32>
    %135 = vector.extract_strided_slice %128 {offsets = [0, 384], sizes = [2, 128], strides = [1, 1]} : vector<2x512xf32> to vector<2x128xf32>
    %136 = math.tanh %135 : vector<2x128xf32>
    %137 = vector.extract_strided_slice %134 {offsets = [0, 0], sizes = [2, 128], strides = [1, 1]} : vector<2x384xf32> to vector<2x128xf32>
    %138 = vector.extract_strided_slice %134 {offsets = [0, 128], sizes = [2, 128], strides = [1, 1]} : vector<2x384xf32> to vector<2x128xf32>
    %139 = vector.extract_strided_slice %134 {offsets = [0, 256], sizes = [2, 128], strides = [1, 1]} : vector<2x384xf32> to vector<2x128xf32>
    %140 = arith.mulf %138, %120 : vector<2x128xf32>
    %141 = arith.mulf %137, %136 : vector<2x128xf32>
    %142 = arith.addf %140, %141 : vector<2x128xf32>
    %143 = math.tanh %142 : vector<2x128xf32>
    %144 = arith.mulf %139, %143 : vector<2x128xf32>
    %c640 = arith.constant 640 : index
    %c0_33 = arith.constant 0 : index
    %145 = vector.load %arg4[%c640, %c0_33] : memref<1024x32xf32, #tpu.memory_space<vmem>>, vector<128x32xf32>
    %cst_34 = arith.constant dense<0.000000e+00> : vector<2x32xf32>
    %146 = tpu.matmul %144, %145, %cst_34 {dimension_numbers = #tpu.dot_dimension_numbers<[1], [0], [0], [1], [0, 0, 1, 1], [], []>} : vector<2x128xf32>, vector<128x32xf32>, vector<2x32xf32> -> vector<2x32xf32>
    %147 = arith.addf %125, %146 : vector<2x32xf32>
    %148 = vector.extract_strided_slice %11 {offsets = [12, 0], sizes = [2, 512], strides = [1, 1]} : vector<16x512xf32> to vector<2x512xf32>
    %cst_35 = arith.constant dense<0.000000e+00> : vector<2x512xf32>
    %149 = tpu.matmul %144, %12, %cst_35 {dimension_numbers = #tpu.dot_dimension_numbers<[1], [0], [0], [1], [0, 0, 1, 1], [], []>} : vector<2x128xf32>, vector<128x512xf32>, vector<2x512xf32> -> vector<2x512xf32>
    %150 = arith.addf %148, %149 : vector<2x512xf32>
    %151 = vector.extract_strided_slice %150 {offsets = [0, 0], sizes = [2, 384], strides = [1, 1]} : vector<2x512xf32> to vector<2x384xf32>
    %152 = arith.negf %151 : vector<2x384xf32>
    %153 = math.exp %152 : vector<2x384xf32>
    %cst_36 = arith.constant 1.000000e+00 : f32
    %154 = vector.broadcast %cst_36 : f32 to vector<2x384xf32>
    %155 = arith.addf %154, %153 : vector<2x384xf32>
    %156 = arith.divf %154, %155 : vector<2x384xf32>
    %157 = vector.extract_strided_slice %150 {offsets = [0, 384], sizes = [2, 128], strides = [1, 1]} : vector<2x512xf32> to vector<2x128xf32>
    %158 = math.tanh %157 : vector<2x128xf32>
    %159 = vector.extract_strided_slice %156 {offsets = [0, 0], sizes = [2, 128], strides = [1, 1]} : vector<2x384xf32> to vector<2x128xf32>
    %160 = vector.extract_strided_slice %156 {offsets = [0, 128], sizes = [2, 128], strides = [1, 1]} : vector<2x384xf32> to vector<2x128xf32>
    %161 = vector.extract_strided_slice %156 {offsets = [0, 256], sizes = [2, 128], strides = [1, 1]} : vector<2x384xf32> to vector<2x128xf32>
    %162 = arith.mulf %160, %142 : vector<2x128xf32>
    %163 = arith.mulf %159, %158 : vector<2x128xf32>
    %164 = arith.addf %162, %163 : vector<2x128xf32>
    %165 = math.tanh %164 : vector<2x128xf32>
    %166 = arith.mulf %161, %165 : vector<2x128xf32>
    %c768 = arith.constant 768 : index
    %c0_37 = arith.constant 0 : index
    %167 = vector.load %arg4[%c768, %c0_37] : memref<1024x32xf32, #tpu.memory_space<vmem>>, vector<128x32xf32>
    %cst_38 = arith.constant dense<0.000000e+00> : vector<2x32xf32>
    %168 = tpu.matmul %166, %167, %cst_38 {dimension_numbers = #tpu.dot_dimension_numbers<[1], [0], [0], [1], [0, 0, 1, 1], [], []>} : vector<2x128xf32>, vector<128x32xf32>, vector<2x32xf32> -> vector<2x32xf32>
    %169 = arith.addf %147, %168 : vector<2x32xf32>
    %170 = vector.extract_strided_slice %11 {offsets = [14, 0], sizes = [2, 512], strides = [1, 1]} : vector<16x512xf32> to vector<2x512xf32>
    %cst_39 = arith.constant dense<0.000000e+00> : vector<2x512xf32>
    %171 = tpu.matmul %166, %12, %cst_39 {dimension_numbers = #tpu.dot_dimension_numbers<[1], [0], [0], [1], [0, 0, 1, 1], [], []>} : vector<2x128xf32>, vector<128x512xf32>, vector<2x512xf32> -> vector<2x512xf32>
    %172 = arith.addf %170, %171 : vector<2x512xf32>
    %173 = vector.extract_strided_slice %172 {offsets = [0, 0], sizes = [2, 384], strides = [1, 1]} : vector<2x512xf32> to vector<2x384xf32>
    %174 = arith.negf %173 : vector<2x384xf32>
    %175 = math.exp %174 : vector<2x384xf32>
    %cst_40 = arith.constant 1.000000e+00 : f32
    %176 = vector.broadcast %cst_40 : f32 to vector<2x384xf32>
    %177 = arith.addf %176, %175 : vector<2x384xf32>
    %178 = arith.divf %176, %177 : vector<2x384xf32>
    %179 = vector.extract_strided_slice %172 {offsets = [0, 384], sizes = [2, 128], strides = [1, 1]} : vector<2x512xf32> to vector<2x128xf32>
    %180 = math.tanh %179 : vector<2x128xf32>
    %181 = vector.extract_strided_slice %178 {offsets = [0, 0], sizes = [2, 128], strides = [1, 1]} : vector<2x384xf32> to vector<2x128xf32>
    %182 = vector.extract_strided_slice %178 {offsets = [0, 128], sizes = [2, 128], strides = [1, 1]} : vector<2x384xf32> to vector<2x128xf32>
    %183 = vector.extract_strided_slice %178 {offsets = [0, 256], sizes = [2, 128], strides = [1, 1]} : vector<2x384xf32> to vector<2x128xf32>
    %184 = arith.mulf %182, %164 : vector<2x128xf32>
    %185 = arith.mulf %181, %180 : vector<2x128xf32>
    %186 = arith.addf %184, %185 : vector<2x128xf32>
    %187 = math.tanh %186 : vector<2x128xf32>
    %188 = arith.mulf %183, %187 : vector<2x128xf32>
    %c896 = arith.constant 896 : index
    %c0_41 = arith.constant 0 : index
    %189 = vector.load %arg4[%c896, %c0_41] : memref<1024x32xf32, #tpu.memory_space<vmem>>, vector<128x32xf32>
    %cst_42 = arith.constant dense<0.000000e+00> : vector<2x32xf32>
    %190 = tpu.matmul %188, %189, %cst_42 {dimension_numbers = #tpu.dot_dimension_numbers<[1], [0], [0], [1], [0, 0, 1, 1], [], []>} : vector<2x128xf32>, vector<128x32xf32>, vector<2x32xf32> -> vector<2x32xf32>
    %191 = arith.addf %169, %190 : vector<2x32xf32>
    %c0_43 = arith.constant 0 : index
    %c0_44 = arith.constant 0 : index
    %192 = vector.load %arg5[%c0_43, %c0_44] : memref<1x32xf32, #tpu.memory_space<vmem>>, vector<1x32xf32>
    %193 = vector.broadcast %192 : vector<1x32xf32> to vector<2x32xf32>
    %194 = arith.addf %191, %193 : vector<2x32xf32>
    %cst_45 = arith.constant 0.000000e+00 : f32
    %195 = vector.broadcast %cst_45 : f32 to vector<2x32xf32>
    %196 = arith.maximumf %194, %195 : vector<2x32xf32>
    %c0_46 = arith.constant 0 : index
    %c0_47 = arith.constant 0 : index
    %197 = vector.load %arg6[%c0_46, %c0_47] : memref<32x1xf32, #tpu.memory_space<vmem>>, vector<32x1xf32>
    %cst_48 = arith.constant dense<0.000000e+00> : vector<2x1xf32>
    %198 = tpu.matmul %196, %197, %cst_48 {dimension_numbers = #tpu.dot_dimension_numbers<[1], [0], [0], [1], [0, 0, 1, 1], [], []>} : vector<2x32xf32>, vector<32x1xf32>, vector<2x1xf32> -> vector<2x1xf32>
    %c0_49 = arith.constant 0 : index
    %c0_50 = arith.constant 0 : index
    %199 = vector.load %arg7[%c0_49, %c0_50] : memref<1x1xf32, #tpu.memory_space<vmem>>, vector<1x1xf32>
    %200 = vector.broadcast %199 : vector<1x1xf32> to vector<2x1xf32>
    %201 = arith.addf %198, %200 : vector<2x1xf32>
    %202 = arith.negf %201 : vector<2x1xf32>
    %203 = math.exp %202 : vector<2x1xf32>
    %cst_51 = arith.constant 1.000000e+00 : f32
    %204 = vector.broadcast %cst_51 : f32 to vector<2x1xf32>
    %205 = arith.addf %204, %203 : vector<2x1xf32>
    %206 = arith.divf %204, %205 : vector<2x1xf32>
    %c0_52 = arith.constant 0 : index
    %c0_53 = arith.constant 0 : index
    %207 = vector.load %arg8[%c0_52, %c0_53] : memref<2x1xf32, #tpu.memory_space<vmem>>, vector<2x1xf32>
    tpu.vector_store %arg8[%c0_52, %c0_53], %206 {strides = array<i32>} : memref<2x1xf32, #tpu.memory_space<vmem>>, vector<2x1xf32>,
    return
  }
}

</mosaic_0001>

<bundles_post_ra>
// kernel: tpu_custom_call.1
= control target key start
LH: loop header
LB: loop body
LE: loop exit
PB: predicated region body
PF: predicated region fallthrough
CT: control target
= control target key end

     0   :  { %v3194_v0 = vmov 0   ;;  %vm91_vm5 = vcmask 523264   ;;  %s5810_s0 = inlined_call_operand.vmem [shape: s32[16,1], index: 0, kind: input, shape index: {}]   ;;  %s5811_s2 = inlined_call_operand.vmem [shape: f32[64,512], index: 2, kind: input, shape index: {}]   ;;  %s5812_s1 = inlined_call_operand.vmem [shape: s32[16,1], index: 1, kind: input, shape index: {}]   ;;  %s5813_s3 = inlined_call_operand.vmem [shape: f32[128,512], index: 3, kind: input, shape index: {}]   ;;  %s5814_s4 = inlined_call_operand.vmem [shape: f32[1024,32], index: 4, kind: input, shape index: {}]   ;;  %s5815_s5 = inlined_call_operand.vmem [shape: f32[1,32], index: 5, kind: input, shape index: {}]   ;;  %s5816_s6 = inlined_call_operand.vmem [shape: f32[32,1], index: 6, kind: input, shape index: {}]   ;;  %s5817_s7 = inlined_call_operand.<no memory space> [shape: f32[1,1], index: 7, kind: input, shape index: {}]   ;;  %s5818_s8 = inlined_call_operand.vmem [shape: f32[2,1], index: 8, kind: output, shape index: {}]  }
   0x1   :  { %2933 = vset.pattern.permute.xlu1 %v3194_v0  ;;  %2932 = vset.pattern.permute.xlu0 %v3194_v0  ;;  %v34_v1 = vld [vmem:[%s5810_s0 + $0x8] sm:$0xff]  ;;  %v33_v2 = vld [vmem:[%s5810_s0] sm:$0xff] }
   0x2   :  { %39 = vperm.xlu1 %2933, %v34_v1   ;;  %36 = vperm.xlu0 %2932, %v33_v2   ;;  %v87_v3 = vld [vmem:[%s5811_s2 + $0xe0] sm:$0xff]  ;;  %v44_v22 = vld [vmem:[%s5812_s1 + $0x8] sm:$0xff] }
   0x3   :  { %v83_v4 = vld [vmem:[%s5811_s2 + $0xc0] sm:$0xff]  ;;  %v3253_v5 = vand.u32 4294901760, %v87_v3  ;;  %v88_v51 = vld [vmem:[%s5811_s2 + $0xe8] sm:$0xff] }
   0x4   :  { %v3255_v6 = vand.u32 4294901760, %v83_v4  ;;  %v79_v7 = vld [vmem:[%s5811_s2 + $0xa0] sm:$0xff]  ;;  %v3363_v53 = vand.u32 4294901760, %v88_v51  ;;  %v84_v54 = vld [vmem:[%s5811_s2 + $0xc8] sm:$0xff] }
   0x5   :  { %v75_v8 = vld [vmem:[%s5811_s2 + $0x80] sm:$0xff]  ;;  %v3266_v10 = vand.u32 4294901760, %v79_v7  ;;  %v3279_v15 = vsub.f32 %v87_v3, %v3253_v5  ;;  %256 = vmatpush.msra.mxu3 %v3253_v5  ;;  %107 = vmatpush.msra.mxu0 %v3253_v5  ;;  %v3369_v56 = vand.u32 4294901760, %v84_v54  ;;  %v80_v59 = vld [vmem:[%s5811_s2 + $0xa8] sm:$0xff] }
   0x6   :  { %v71_v9 = vld [vmem:[%s5811_s2 + $0x60] sm:$0xff]  ;;  %v3268_v11 = vand.u32 4294901760, %v75_v8  ;;  %v3282_v16 = vsub.f32 %v83_v4, %v3255_v6  ;;  %v3372_v57 = vsub.f32 %v88_v51, %v3363_v53  ;;  %v3382_v60 = vand.u32 4294901760, %v80_v59  ;;  %v76_v63 = vld [vmem:[%s5811_s2 + $0x88] sm:$0xff] }
   0x7   :  { %v3270_v12 = vand.u32 4294901760, %v71_v9  ;;  %v67_v13 = vld [vmem:[%s5811_s2 + $0x40] sm:$0xff]  ;;  %v3291_v19 = vsub.f32 %v79_v7, %v3266_v10  ;;  %v149_v24 = vand.u32 4294901760, %v3279_v15  ;;  %214 = vmatpush.msra.mxu2 %v3279_v15  ;;  %258 = vmatpush.msra.mxu3 %v3255_v6  ;;  %v3385_v61 = vsub.f32 %v84_v54, %v3369_v56  ;;  %v72_v4 = vld [vmem:[%s5811_s2 + $0x68] sm:$0xff] }
   0x8   :  { %v63_v14 = vld [vmem:[%s5811_s2 + $0x20] sm:$0xff]  ;;  %v3286_v17 = vand.u32 4294901760, %v67_v13  ;;  %v3294_v20 = vsub.f32 %v75_v8, %v3268_v11  ;;  %v155_v25 = vand.u32 4294901760, %v3282_v16  ;;  %109 = vmatpush.msra.mxu0 %v3255_v6  ;;  %v417_v58 = vand.u32 4294901760, %v3372_v57 }
   0x9   :  { %v3288_v18 = vand.u32 4294901760, %v63_v14  ;;  %v3297_v21 = vsub.f32 %v71_v9, %v3270_v12  ;;  %v43_v23 = vld [vmem:[%s5812_s1] sm:$0xff]  ;;  %v161_v27 = vand.u32 4294901760, %v3291_v19  ;;  %v150_v29 = vsub.f32 %v3279_v15, %v149_v24  ;;  %217 = vmatpush.msra.mxu2 %v3282_v16  ;;  %260 = vmatpush.msra.mxu3 %v3266_v10  ;;  %v68_v9 = vld [vmem:[%s5811_s2 + $0x48] sm:$0xff] }
   0xa   :  { %v3310_v26 = vsub.f32 %v67_v13, %v3286_v17  ;;  %v167_v28 = vand.u32 4294901760, %v3294_v20  ;;  %v156_v30 = vsub.f32 %v3282_v16, %v155_v25  ;;  %49 = vperm.xlu1 %2933, %v44_v22   ;;  %46 = vperm.xlu0 %2932, %v43_v23   ;;  %v59_v47 = vld [vmem:[%s5811_s2] sm:$0xff]  ;;  %v418_v62 = vsub.f32 %v3372_v57, %v417_v58 }
   0xb   :  { %v173_v31 = vand.u32 4294901760, %v3297_v21  ;;  %v3321_v32 = vsub.f32 %v63_v14, %v3288_v18  ;;  %v162_v33 = vsub.f32 %v3291_v19, %v161_v27  ;;  %v151_v34 = vand.u32 4294901760, %v150_v29  ;;  %220 = vmatpush.msra.mxu2 %v3291_v19  ;;  %262 = vmatpush.msra.mxu3 %v3268_v11  ;;  %v64_v19 = vld [vmem:[%s5811_s2 + $0x28] sm:$0xff] }
   0xc   :  { %v157_v35 = vand.u32 4294901760, %v156_v30  ;;  %v168_v36 = vsub.f32 %v3294_v20, %v167_v28  ;;  %v179_v37 = vand.u32 4294901760, %v3310_v26  ;;  %111 = vmatpush.msra.mxu0 %v3266_v10  ;;  %v3355_v48 = vand.u32 4294901760, %v59_v47 }
   0xd   :  { %152 = vmatpush.msra.mxu1 %v151_v34  ;;  %v163_v38 = vand.u32 4294901760, %v162_v33  ;;  %v174_v39 = vsub.f32 %v3297_v21, %v173_v31  ;;  %223 = vmatpush.msra.mxu2 %v3294_v20  ;;  %v185_v40 = vand.u32 4294901760, %v3321_v32  ;;  %v423_v0 = vand.u32 4294901760, %v3385_v61 }
   0xe   :  { %264 = vmatpush.msra.mxu3 %v3270_v12  ;;  %113 = vmatpush.msra.mxu0 %v3268_v11  ;;  %v169_v41 = vand.u32 4294901760, %v168_v36  ;;  %v180_v42 = vsub.f32 %v3310_v26, %v179_v37  ;;  %v190_v49 = vsub.f32 %v59_v47, %v3355_v48  ;;  %v3398_v1 = vand.u32 4294901760, %v76_v63 }
   0xf   :  { %158 = vmatpush.msra.mxu1 %v157_v35  ;;  %226 = vmatpush.msra.mxu2 %v3297_v21  ;;  %v175_v43 = vand.u32 4294901760, %v174_v39  ;;  %v186_v44 = vsub.f32 %v3321_v32, %v185_v40  ;;  %v3401_v2 = vsub.f32 %v80_v59, %v3382_v60  ;;  %v419_v3 = vand.u32 4294901760, %v418_v62 }
  0x10   :  { %266 = vmatpush.msra.mxu3 %v3286_v17  ;;  %115 = vmatpush.msra.mxu0 %v3270_v12  ;;  %v181_v45 = vand.u32 4294901760, %v180_v42  ;;  %v191_v50 = vand.u32 4294901760, %v190_v49  ;;  %v3414_v7 = vand.u32 4294901760, %v72_v4  ;;  %v3417_v8 = vsub.f32 %v76_v63, %v3398_v1 }
  0x11   :  { %164 = vmatpush.msra.mxu1 %v163_v38  ;;  %229 = vmatpush.msra.mxu2 %v3310_v26  ;;  %v187_v46 = vand.u32 4294901760, %v186_v44  ;;  %v3430_v15 = vand.u32 4294901760, %v68_v9  ;;  %v3442_v21 = vand.u32 4294901760, %v64_v19  ;;  %v31_v39 = vlaneseq }
  0x12   :  { %268 = vmatpush.msra.mxu3 %v3288_v18  ;;  %117 = vmatpush.msra.mxu0 %v3286_v17  ;;  %v192_v52 = vsub.f32 %v190_v49, %v191_v50  ;;  %v435_v14 = vand.u32 4294901760, %v3417_v8  ;;  %v3433_v16 = vsub.f32 %v72_v4, %v3414_v7  ;;  %v3195_v44 = vmov 0.0   ;;  %v77_v4 = vld [vmem:[%s5811_s2 + $0x90] sm:$0xff] }
  0x13   :  { %170 = vmatpush.msra.mxu1 %v169_v41  ;;  %232 = vmatpush.msra.mxu2 %v3321_v32  ;;  %v3445_v22 = vsub.f32 %v68_v9, %v3430_v15 }
  0x14   :  { %119 = vmatpush.msra.mxu0 %v3288_v18  ;;  %270 = vmatpush.msra.mxu3 %v3355_v48  ;;  %v193_v55 = vand.u32 4294901760, %v192_v52  ;;  %v436_v20 = vsub.f32 %v3417_v8, %v435_v14  ;;  %v441_v23 = vand.u32 4294901760, %v3433_v16  ;;  %v81_v52 = vld [vmem:[%s5811_s2 + $0xb0] sm:$0xff] }
  0x15   :  { %176 = vmatpush.msra.mxu1 %v175_v43  ;;  %235 = vmatpush.msra.mxu2 %v190_v49  ;;  %v89_v43 = vld [vmem:[%s5811_s2 + $0xf0] sm:$0xff] }
  0x16   :  { %121 = vmatpush.msra.mxu0 %v3355_v48  ;;  %420 = vmatpush.msrb.mxu3 %v419_v3  ;;  %v3495_v49 = vand.u32 4294901760, %v89_v43  ;;  %v3524_v3 = vand.u32 4294901760, %v81_v52 }
  0x17   :  { %182 = vmatpush.msra.mxu1 %v181_v45  ;;  %375 = vmatpush.msrb.mxu2 %v3363_v53 }
  0x18   :  { %295 = vmatpush.msrb.mxu0 %v149_v24  ;;  %v60_v24 = vld [vmem:[%s5811_s2 + $0x8] sm:$0xff]  ;;  %v3518_v62 = vsub.f32 %v89_v43, %v3495_v49  ;;  %v82_v43 = vld [vmem:[%s5811_s2 + $0xb8] sm:$0xff] }
  0x19   :  { %188 = vmatpush.msra.mxu1 %v187_v46  ;;  %377 = vmatpush.msrb.mxu2 %v3369_v56  ;;  %v3454_v26 = vand.u32 4294901760, %v60_v24 }
  0x1a   :  { %299 = vmatpush.msrb.mxu0 %v155_v25  ;;  %v447_v25 = vand.u32 4294901760, %v3445_v22 }
  0x1b   :  { %194 = vmatpush.msra.mxu1 %v193_v55  ;;  %379 = vmatpush.msrb.mxu2 %v3382_v60  ;;  %v3468_v29 = vsub.f32 %v60_v24, %v3454_v26 }
  0x1c   :  { %303 = vmatpush.msrb.mxu0 %v161_v27  ;;  %v442_v27 = vsub.f32 %v3433_v16, %v441_v23 }
  0x1d   :  { %342 = vmatpush.msrb.mxu1 %v3253_v5  ;;  %v424_v5 = vsub.f32 %v3385_v61, %v423_v0  ;;  %381 = vmatpush.msrb.mxu2 %v3398_v1  ;;  %v459_v33 = vand.u32 4294901760, %v3468_v29 }
  0x1e   :  { %307 = vmatpush.msrb.mxu0 %v167_v28  ;;  %v3461_v28 = vsub.f32 %v64_v19, %v3442_v21  ;;  %v443_v30 = vand.u32 4294901760, %v442_v27 }
  0x1f   :  { %344 = vmatpush.msrb.mxu1 %v3255_v6  ;;  %v429_v6 = vand.u32 4294901760, %v3401_v2  ;;  %383 = vmatpush.msrb.mxu2 %v3414_v7  ;;  %v460_v34 = vsub.f32 %v3468_v29, %v459_v33 }
  0x20   :  { %311 = vmatpush.msrb.mxu0 %v173_v31  ;;  %v453_v31 = vand.u32 4294901760, %v3461_v28 }
  0x21   :  { %346 = vmatpush.msrb.mxu1 %v3266_v10  ;;  %v425_v10 = vand.u32 4294901760, %v424_v5  ;;  %v430_v13 = vsub.f32 %v3401_v2, %v429_v6  ;;  %385 = vmatpush.msrb.mxu2 %v3430_v15  ;;  %v461_v36 = vand.u32 4294901760, %v460_v34 }
  0x22   :  { %315 = vmatpush.msrb.mxu0 %v179_v37 }
  0x23   :  { %348 = vmatpush.msrb.mxu1 %v3268_v11  ;;  %426 = vmatpush.msrb.mxu3 %v425_v10  ;;  %v431_v11 = vand.u32 4294901760, %v430_v13  ;;  %v73_v10 = vld [vmem:[%s5811_s2 + $0x70] sm:$0xff]  ;;  %v3554_v13 = vsub.f32 %v81_v52, %v3524_v3 }
  0x24   :  { %319 = vmatpush.msrb.mxu0 %v185_v40  ;;  %387 = vmatpush.msrb.mxu2 %v3442_v21  ;;  %v32_v40 = vand.u32 127, %v31_v39  ;;  %v3558_v19 = vand.u32 4294901760, %v73_v10 }
  0x25   :  { %350 = vmatpush.msrb.mxu1 %v3270_v12  ;;  %432 = vmatpush.msrb.mxu3 %v431_v11  ;;  %v437_v12 = vand.u32 4294901760, %v436_v20 }
  0x26   :  { %323 = vmatpush.msrb.mxu0 %v191_v50  ;;  %389 = vmatpush.msrb.mxu2 %v3454_v26  ;;  %v85_v50 = vld [vmem:[%s5811_s2 + $0xd0] sm:$0xff] }
  0x27   :  { %352 = vmatpush.msrb.mxu1 %v3286_v17  ;;  %438 = vmatpush.msrb.mxu3 %v437_v12  ;;  %v448_v17 = vsub.f32 %v3445_v22, %v447_v25  ;;  %v3513_v59 = vand.u32 4294901760, %v85_v50  ;;  %v3589_v12 = vsub.f32 %v73_v10, %v3558_v19 }
  0x29   :  { %354 = vmatpush.msrb.mxu1 %v3288_v18  ;;  %v449_v32 = vand.u32 4294901760, %v448_v17  ;;  %444 = vmatpush.msrb.mxu3 %v443_v30  ;;  %v454_v18 = vsub.f32 %v3461_v28, %v453_v31  ;;  %v3539_v9 = vsub.f32 %v85_v50, %v3513_v59  ;;  %v61_v17 = vld [vmem:[%s5811_s2 + $0x10] sm:$0xff]  ;;  %v3693_v50 = vand.u32 4294901760, %v82_v43 }
  0x2b   :  { %356 = vmatpush.msrb.mxu1 %v3355_v48  ;;  %450 = vmatpush.msrb.mxu3 %v449_v32  ;;  %v455_v35 = vand.u32 4294901760, %v454_v18  ;;  %v691_v11 = vand.u32 4294901760, %v3539_v9  ;;  %v3619_v18 = vand.u32 4294901760, %v61_v17 }
  0x2d   :  { %456 = vmatpush.msrb.mxu3 %v455_v35 }
  0x2f   :  { %462 = vmatpush.msrb.mxu3 %v461_v36  ;;  %v3642_v36 = vsub.f32 %v61_v17, %v3619_v18 }
  0x31   :  { %v727_v39 = vand.u32 4294901760, %v3642_v36 }
  0x74   :  { %v40_v37 = vpop.permute.xlu1 %39  ;;  %v37_v38 = vpop.permute.xlu0 %36 }
  0x75   :  { %vm42_vm0 = vcmp.eq.s32.totalorder %v32_v40, %v40_v37  ;;  %vm41_vm3 = vcmp.eq.s32.totalorder %v32_v40, %v37_v38 }
  0x7c   :  { %v50_v41 = vpop.permute.xlu1 %49  ;;  %v47_v42 = vpop.permute.xlu0 %46 }
  0x7d   :  { %vm52_vm1 = vcmp.eq.s32.totalorder %v32_v40, %v50_v41  ;;  %vm51_vm2 = vcmp.eq.s32.totalorder %v32_v40, %v47_v42 }
  0x7e   :  { %vm54_vm4 = vmor %vm42_vm0, %vm52_vm1 }
  0x7f   :  { %v3484_v45 = vsel %vm54_vm4, 1.0, %v3195_v44  ;;  %vm53_vm6 = vmor %vm41_vm3, %vm51_vm2 }
  0x80   :  { %v3487_v46 = vsel %vm53_vm6, 1.0, %v3195_v44  ;;  %v96_v48 = vsel %vm91_vm5, %v3484_v45, 0 }
  0x81   :  { %2880 = vmatmul.msk.f32.vlgmr.msra.gmra.mxu1 %vm91_vm5, %v3487_v46  ;;  %v93_v47 = vsel %vm91_vm5, %v3487_v46, 0  ;;  %v3511_v55 = vsub.f32 %v96_v48, %v96_v48  ;;  %v78_v48 = vld [vmem:[%s5811_s2 + $0x98] sm:$0xff] }
  0x82   :  { %v3500_v51 = vsub.f32 %v93_v47, %v93_v47  ;;  %524 = vmatpush.msra.mxu1 %v3363_v53  ;;  %v3702_v10 = vand.u32 4294901760, %v78_v48 }
  0x83   :  { %v3536_v5 = vand.u32 4294901760, %v3511_v55 }
  0x84   :  { %238 = vmatmul.f32.vlgmr.msra.gmra.mxu2 %v3500_v51  ;;  %v3508_v54 = vand.u32 4294901760, %v3500_v51  ;;  %526 = vmatpush.msra.mxu1 %v3369_v56 }
  0x85   :  { %563 = vmatpush.msra.mxu2 %v417_v58 }
  0x86   :  { %274 = vmatmul.f32.vlgmr.msra.gmra.mxu3 %v3508_v54  ;;  %v125_v63 = vsub.f32 %v3500_v51, %v3508_v54  ;;  %528 = vmatpush.msra.mxu1 %v3382_v60 }
  0x87   :  { %567 = vmatpush.msra.mxu2 %v423_v0  ;;  %610 = vmatpush.msra.mxu3 %v3363_v53  ;;  %v685_v53 = vand.u32 4294901760, %v3518_v62  ;;  %v3549_v0 = vand.u32 4294901760, %v77_v4 }
  0x88   :  { %v3532_v58 = vand.u32 4294901760, %v125_v63  ;;  %530 = vmatpush.msra.mxu1 %v3398_v1 }
  0x89   :  { %2881 = vmatmul.msk.f32.gmra.mxu1 %vm91_vm5, %v3484_v45  ;;  %571 = vmatpush.msra.mxu2 %v429_v6  ;;  %v69_v6 = vld [vmem:[%s5811_s2 + $0x50] sm:$0xff]  ;;  %v3575_v20 = vsub.f32 %v77_v4, %v3549_v0 }
  0x8a   :  { %127 = vmatmul.f32.vlgmr.msra.gmra.mxu0 %v3532_v58  ;;  %612 = vmatpush.msra.mxu3 %v3369_v56  ;;  %v133_v56 = vsub.f32 %v3511_v55, %v3536_v5  ;;  %v3580_v24 = vand.u32 4294901760, %v69_v6 }
  0x8b   :  { %532 = vmatpush.msra.mxu1 %v3414_v7  ;;  %482 = vmatpush.msra.mxu0 %v3372_v57  ;;  %v686_v57 = vsub.f32 %v3518_v62, %v685_v53 }
  0x8c   :  { %243 = vmatmul.f32.gmra.mxu2 %v3511_v55  ;;  %614 = vmatpush.msra.mxu3 %v3382_v60  ;;  %v697_v60 = vand.u32 4294901760, %v3554_v13  ;;  %v3591_v27 = vand.u32 4294901760, %v133_v56  ;;  %v3614_v32 = vsub.f32 %v69_v6, %v3580_v24  ;;  %v74_v6 = vld [vmem:[%s5811_s2 + $0x78] sm:$0xff]  ;;  %v3712_v56 = vsub.f32 %v82_v43, %v3693_v50 }
  0x8d   :  { %575 = vmatpush.msra.mxu2 %v435_v14  ;;  %534 = vmatpush.msra.mxu1 %v3430_v15  ;;  %v65_v14 = vld [vmem:[%s5811_s2 + $0x30] sm:$0xff] }
  0x8e   :  { %280 = vmatmul.f32.gmra.mxu3 %v3536_v5  ;;  %485 = vmatpush.msra.mxu0 %v3385_v61  ;;  %v692_v61 = vsub.f32 %v3539_v9, %v691_v11  ;;  %v3606_v30 = vand.u32 4294901760, %v65_v14 }
  0x8f   :  { %579 = vmatpush.msra.mxu2 %v441_v23  ;;  %616 = vmatpush.msra.mxu3 %v3398_v1  ;;  %v687_v1 = vand.u32 4294901760, %v686_v57  ;;  %v703_v23 = vand.u32 4294901760, %v3575_v20  ;;  %v70_v57 = vld [vmem:[%s5811_s2 + $0x58] sm:$0xff] }
  0x90   :  { %536 = vmatpush.msra.mxu1 %v3442_v21  ;;  %488 = vmatpush.msra.mxu0 %v3401_v2  ;;  %v698_v2 = vsub.f32 %v3554_v13, %v697_v60  ;;  %v3629_v35 = vsub.f32 %v65_v14, %v3606_v30 }
  0x91   :  { %2884 = vmatmul.msk.f32.vlgmr.msrb.gmra.mxu1 %vm91_vm5, %v3487_v46  ;;  %583 = vmatpush.msra.mxu2 %v447_v25  ;;  %v709_v25 = vand.u32 4294901760, %v3589_v12  ;;  %v704_v34 = vsub.f32 %v3575_v20, %v703_v23 }
  0x92   :  { %135 = vmatmul.f32.gmra.mxu0 %v3591_v27  ;;  %618 = vmatpush.msra.mxu3 %v3414_v7  ;;  %v693_v7 = vand.u32 4294901760, %v692_v61  ;;  %v3720_v61 = vand.u32 4294901760, %v74_v6 }
  0x93   :  { %538 = vmatpush.msra.mxu1 %v3454_v26  ;;  %491 = vmatpush.msra.mxu0 %v3417_v8  ;;  %v699_v8 = vand.u32 4294901760, %v698_v2  ;;  %v3732_v2 = vand.u32 4294901760, %v70_v57 }
  0x94   :  { %395 = vmatmul.f32.vlgmr.msrb.gmra.mxu2 %v3532_v58  ;;  %620 = vmatpush.msra.mxu3 %v3430_v15  ;;  %v715_v15 = vand.u32 4294901760, %v3614_v32 }
  0x95   :  { %587 = vmatpush.msra.mxu2 %v453_v31  ;;  %688 = vmatpush.msrb.mxu1 %v687_v1  ;;  %v710_v31 = vsub.f32 %v3589_v12, %v709_v25  ;;  %v3728_v1 = vsub.f32 %v78_v48, %v3702_v10 }
  0x96   :  { %2886 = vmatmul.msk.f32.vlgmr.msrb.gmra.mxu3 %vm91_vm5, %v3487_v46  ;;  %494 = vmatpush.msra.mxu0 %v3433_v16  ;;  %v90_v16 = vld [vmem:[%s5811_s2 + $0xf8] sm:$0xff]  ;;  %v716_v37 = vsub.f32 %v3614_v32, %v715_v15 }
  0x97   :  { %591 = vmatpush.msra.mxu2 %v459_v33  ;;  %622 = vmatpush.msra.mxu3 %v3442_v21  ;;  %v705_v21 = vand.u32 4294901760, %v704_v34  ;;  %v721_v33 = vand.u32 4294901760, %v3629_v35  ;;  %v711_v38 = vand.u32 4294901760, %v710_v31  ;;  %v3660_v40 = vand.u32 4294901760, %v90_v16 }
  0x98   :  { %694 = vmatpush.msrb.mxu1 %v693_v7  ;;  %497 = vmatpush.msra.mxu0 %v3445_v22  ;;  %v86_v22 = vld [vmem:[%s5811_s2 + $0xd8] sm:$0xff]  ;;  %v717_v41 = vand.u32 4294901760, %v716_v37  ;;  %v965_v34 = vand.u32 4294901760, %v3712_v56  ;;  %v3747_v31 = vsub.f32 %v74_v6, %v3720_v61 }
  0x99   :  { %750 = vmatpush.msrb.mxu2 %v3518_v62  ;;  %2885 = vmatmul.msk.f32.gmra.mxu1 %vm91_vm5, %v3484_v45  ;;  %v3673_v42 = vand.u32 4294901760, %v86_v22  ;;  %v3683_v47 = vsub.f32 %v90_v16, %v3660_v40  ;;  %v66_v7 = vld [vmem:[%s5811_s2 + $0x38] sm:$0xff] }
  0x9a   :  { %624 = vmatpush.msra.mxu3 %v3454_v26  ;;  %700 = vmatpush.msrb.mxu1 %v699_v8  ;;  %v722_v26 = vsub.f32 %v3629_v35, %v721_v33  ;;  %v62_v16 = vld [vmem:[%s5811_s2 + $0x18] sm:$0xff]  ;;  %v3755_v37 = vand.u32 4294901760, %v66_v7 }
  0x9b   :  { %2882 = vmatmul.msk.f32.vlgmr.msrb.gmra.mxu0 %vm91_vm5, %v3487_v46  ;;  %753 = vmatpush.msrb.mxu2 %v3539_v9  ;;  %v3697_v52 = vsub.f32 %v86_v22, %v3673_v42  ;;  %v953_v4 = vand.u32 4294901760, %v3683_v47  ;;  %v966_v22 = vsub.f32 %v3712_v56, %v965_v34 }
  0x9c   :  { %792 = vmatpush.msrb.mxu3 %v3495_v49  ;;  %500 = vmatpush.msra.mxu0 %v3461_v28  ;;  %v728_v28 = vsub.f32 %v3642_v36, %v727_v39 }
  0x9d   :  { %706 = vmatpush.msrb.mxu1 %v705_v21  ;;  %403 = vmatmul.f32.gmra.mxu2 %v3591_v27  ;;  %v959_v14 = vand.u32 4294901760, %v3697_v52  ;;  %v954_v17 = vsub.f32 %v3683_v47, %v953_v4  ;;  %v971_v21 = vand.u32 4294901760, %v3728_v1  ;;  %v967_v48 = vand.u32 4294901760, %v966_v22  ;;  %v4126_v22 = vld [vmem:[%s5813_s3 + $0x100] sm:$0xff] }
  0x9e   :  { %756 = vmatpush.msrb.mxu2 %v3554_v13  ;;  %794 = vmatpush.msrb.mxu3 %v3513_v59  ;;  %v729_v63 = vand.u32 4294901760, %v728_v28  ;;  %v3777_v28 = vsub.f32 %v66_v7, %v3755_v37  ;;  %v4062_v7 = vld [vmem:[%s5813_s3 + $0x138] sm:$0xff] }
  0x9f   :  { %503 = vmatpush.msra.mxu0 %v3468_v29  ;;  %712 = vmatpush.msrb.mxu1 %v711_v38  ;;  %v723_v29 = vand.u32 4294901760, %v722_v26  ;;  %v960_v8 = vsub.f32 %v3697_v52, %v959_v14  ;;  %v3760_v38 = vsub.f32 %v70_v57, %v3732_v2  ;;  %v3767_v26 = vand.u32 4294901760, %v62_v16 }
  0xa0   :  { %2887 = vmatmul.msk.f32.gmra.mxu3 %vm91_vm5, %v3484_v45  ;;  %759 = vmatpush.msrb.mxu2 %v3575_v20  ;;  %v972_v43 = vsub.f32 %v3728_v1, %v971_v21  ;;  %v989_v6 = vand.u32 4294901760, %v3777_v28  ;;  %v3874_v20 = vld [vmem:[%s5813_s3 + $0x1e8] sm:$0xff] }
  0xa1   :  { %643 = vmatpush.msrb.mxu0 %v3495_v49  ;;  %796 = vmatpush.msrb.mxu3 %v3524_v3 }
  0xa2   :  { %718 = vmatpush.msrb.mxu1 %v717_v41  ;;  %762 = vmatpush.msrb.mxu2 %v3589_v12  ;;  %v977_v41 = vand.u32 4294901760, %v3747_v31  ;;  %v990_v62 = vsub.f32 %v3777_v28, %v989_v6  ;;  %v3901_v12 = vld [vmem:[%s5813_s3 + $0x1a8] sm:$0xff] }
  0xa3   :  { %645 = vmatpush.msrb.mxu0 %v3513_v59  ;;  %798 = vmatpush.msrb.mxu3 %v3549_v0 }
  0xa4   :  { %542 = vmatmul.f32.vlgmr.msra.gmra.mxu1 %v3508_v54  ;;  %2883 = vmatmul.msk.f32.gmra.mxu0 %vm91_vm5, %v3484_v45  ;;  %v991_v13 = vand.u32 4294901760, %v990_v62  ;;  %v4243_v62 = vld [vmem:[%s5813_s3 + $0x58] sm:$0xff] }
  0xa5   :  { %724 = vmatpush.msrb.mxu1 %v723_v29  ;;  %647 = vmatpush.msrb.mxu0 %v3524_v3  ;;  %v3785_v29 = vsub.f32 %v62_v16, %v3767_v26  ;;  %v4094_v16 = vld [vmem:[%s5813_s3 + $0xa8] sm:$0xff] }
  0xa6   :  { %765 = vmatpush.msrb.mxu2 %v3614_v32  ;;  %800 = vmatpush.msrb.mxu3 %v3558_v19  ;;  %v3926_v32 = vld [vmem:[%s5813_s3 + $0x1b0] sm:$0xff] }
  0xa7   :  { %730 = vmatpush.msrb.mxu1 %v729_v63  ;;  %2888 = vmatmul.msk.f32.vlgmr.msra.gmra.mxu2 %vm91_vm5, %v3487_v46  ;;  %v978_v63 = vsub.f32 %v3747_v31, %v977_v41  ;;  %5900 = vst [vmem:[#allocation5_spill] sm:$0xff] %v3926_v32 }
  0xa8   :  { %649 = vmatpush.msrb.mxu0 %v3549_v0  ;;  %768 = vmatpush.msrb.mxu2 %v3629_v35  ;;  %v3947_v35 = vld [vmem:[%s5813_s3 + $0x190] sm:$0xff] }
  0xa9   :  { %802 = vmatpush.msrb.mxu3 %v3580_v24  ;;  %878 = vmatpush.msra.mxu1 %v3495_v49  ;;  %v955_v49 = vand.u32 4294901760, %v954_v17  ;;  %v995_v17 = vand.u32 4294901760, %v3785_v29  ;;  %5901 = vst [vmem:[#allocation6_spill] sm:$0xff] %v3947_v35 }
  0xaa   :  { %2890 = vmatmul.msk.f32.vlgmr.msra.gmra.mxu3 %vm91_vm5, %v3487_v46  ;;  %651 = vmatpush.msrb.mxu0 %v3558_v19 }
  0xab   :  { %771 = vmatpush.msrb.mxu2 %v3642_v36  ;;  %804 = vmatpush.msrb.mxu3 %v3606_v30  ;;  %v996_v9 = vsub.f32 %v3785_v29, %v995_v17  ;;  %v3960_v36 = vld [vmem:[%s5813_s3 + $0x1b8] sm:$0xff] }
  0xac   :  { %880 = vmatpush.msra.mxu1 %v3513_v59  ;;  %653 = vmatpush.msrb.mxu0 %v3580_v24  ;;  %v961_v59 = vand.u32 4294901760, %v960_v8  ;;  %v4082_v8 = vld [vmem:[%s5813_s3 + $0xf0] sm:$0xff] }
  0xad   :  { %911 = vmatpush.msra.mxu2 %v3660_v40  ;;  %806 = vmatpush.msrb.mxu3 %v3619_v18  ;;  %5907 = vst [vmem:[#allocation12_spill] sm:$0xff] %v4082_v8 }
  0xae   :  { %882 = vmatpush.msra.mxu1 %v3524_v3  ;;  %506 = vmatmul.f32.vlgmr.msra.gmra.mxu0 %v3500_v51  ;;  %v983_v3 = vand.u32 4294901760, %v3760_v38 }
  0xaf   :  { %913 = vmatpush.msra.mxu2 %v3673_v42  ;;  %548 = vmatmul.f32.gmra.mxu1 %v3536_v5 }
  0xb0   :  { %956 = vmatpush.msra.mxu3 %v955_v49  ;;  %884 = vmatpush.msra.mxu1 %v3549_v0  ;;  %v973_v0 = vand.u32 4294901760, %v972_v43  ;;  %v984_v57 = vsub.f32 %v3760_v38, %v983_v3  ;;  %v4102_v49 = vld [vmem:[%s5813_s3 + $0x120] sm:$0xff]  ;;  %v4160_v43 = vld [vmem:[%s5813_s3 + $0x90] sm:$0xff] }
  0xb1   :  { %655 = vmatpush.msrb.mxu0 %v3606_v30  ;;  %915 = vmatpush.msra.mxu2 %v3693_v50  ;;  %5910 = vst [vmem:[#allocation15_spill] sm:$0xff] %v4160_v43 }
  0xb2   :  { %962 = vmatpush.msra.mxu3 %v961_v59  ;;  %2889 = vmatmul.msk.f32.gmra.mxu2 %vm91_vm5, %v3484_v45  ;;  %v4141_v59 = vld [vmem:[%s5813_s3 + $0xd8] sm:$0xff] }
  0xb3   :  { %657 = vmatpush.msrb.mxu0 %v3619_v18  ;;  %886 = vmatpush.msra.mxu1 %v3558_v19  ;;  %v979_v19 = vand.u32 4294901760, %v978_v63  ;;  %v4204_v63 = vld [vmem:[%s5813_s3 + $0xa0] sm:$0xff] }
  0xb4   :  { %917 = vmatpush.msra.mxu2 %v3702_v10  ;;  %968 = vmatpush.msra.mxu3 %v967_v48  ;;  %v4184_v48 = vld [vmem:[%s5813_s3 + $0x70] sm:$0xff] }
  0xb5   :  { %831 = vmatpush.msra.mxu0 %v685_v53  ;;  %888 = vmatpush.msra.mxu1 %v3580_v24  ;;  %v985_v53 = vand.u32 4294901760, %v984_v57  ;;  %v3891_v24 = vld [vmem:[%s5813_s3 + $0x1f0] sm:$0xff]  ;;  %5911 = vst [vmem:[#allocation16_spill] sm:$0xff] %v4184_v48  ;;  %v4223_v57 = vld [vmem:[%s5813_s3 + $0x8] sm:$0xff] }
  0xb6   :  { %2891 = vmatmul.msk.f32.gmra.mxu3 %vm91_vm5, %v3484_v45  ;;  %919 = vmatpush.msra.mxu2 %v3720_v61  ;;  %5898 = vst [vmem:[#allocation3_spill] sm:$0xff] %v3891_v24 }
  0xb7   :  { %835 = vmatpush.msra.mxu0 %v691_v11  ;;  %974 = vmatpush.msra.mxu3 %v973_v0  ;;  %v997_v11 = vand.u32 4294901760, %v996_v9  ;;  %v4211_v0 = vld [vmem:[%s5813_s3 + $0x50] sm:$0xff]  ;;  %v4262_v9 = vld [vmem:[%s5813_s3 + $0x38] sm:$0xff] }
  0xb8   :  { %890 = vmatpush.msra.mxu1 %v3606_v30  ;;  %921 = vmatpush.msra.mxu2 %v3732_v2  ;;  %v3921_v30 = vld [vmem:[%s5813_s3 + $0x188] sm:$0xff]  ;;  %5912 = vst [vmem:[#allocation17_spill] sm:$0xff] %v4211_v0 }
  0xb9   :  { %839 = vmatpush.msra.mxu0 %v697_v60  ;;  %2892 = vmatmul.msk.f32.vlgmr.msrb.gmra.mxu1 %vm91_vm5, %v3487_v46  ;;  %v3884_v60 = vld [vmem:[%s5813_s3 + $0x1c8] sm:$0xff]  ;;  %5915 = vst [vmem:[#allocation20_spill] sm:$0xff] %v4262_v9 }
  0xba   :  { %980 = vmatpush.msra.mxu3 %v979_v19  ;;  %511 = vmatmul.f32.gmra.mxu0 %v3511_v55  ;;  %v4236_v19 = vld [vmem:[%s5813_s3 + $0x30] sm:$0xff] }
  0xbb   :  { %892 = vmatpush.msra.mxu1 %v3619_v18  ;;  %843 = vmatpush.msra.mxu0 %v703_v23  ;;  %v3914_v23 = vld [vmem:[%s5813_s3 + $0x1f8] sm:$0xff]  ;;  %v3940_v18 = vld [vmem:[%s5813_s3 + $0x168] sm:$0xff]  ;;  %5913 = vst [vmem:[#allocation18_spill] sm:$0xff] %v4236_v19 }
  0xbc   :  { %923 = vmatpush.msra.mxu2 %v3755_v37  ;;  %986 = vmatpush.msra.mxu3 %v985_v53  ;;  %v4255_v53 = vld [vmem:[%s5813_s3 + $0x10] sm:$0xff] }
  0xbd   :  { %1060 = vmatpush.msrb.mxu1 %v3660_v40  ;;  %774 = vmatmul.f32.vlgmr.msrb.gmra.mxu2 %v3500_v51  ;;  %5914 = vst [vmem:[#allocation19_spill] sm:$0xff] %v4255_v53 }
  0xbe   :  { %847 = vmatpush.msra.mxu0 %v709_v25  ;;  %925 = vmatpush.msra.mxu2 %v3767_v26  ;;  %v3933_v25 = vld [vmem:[%s5813_s3 + $0x1d8] sm:$0xff] }
  0xbf   :  { %992 = vmatpush.msra.mxu3 %v991_v13  ;;  %1062 = vmatpush.msrb.mxu1 %v3673_v42  ;;  %v4269_v13 = vld [vmem:[%s5813_s3 + $0x40] sm:$0xff] }
  0xc0   :  { %810 = vmatmul.f32.vlgmr.msrb.gmra.mxu3 %v3508_v54  ;;  %1099 = vmatpush.msrb.mxu2 %v953_v4  ;;  %v4018_v4 = vld [vmem:[%s5813_s3 + $0x108] sm:$0xff] }
  0xc1   :  { %851 = vmatpush.msra.mxu0 %v715_v15  ;;  %998 = vmatpush.msra.mxu3 %v997_v11  ;;  %v3955_v15 = vld [vmem:[%s5813_s3 + $0x1e0] sm:$0xff]  ;;  %v4276_v11 = vld [vmem:[%s5813_s3 + $0x18] sm:$0xff] }
  0xc2   :  { %1064 = vmatpush.msrb.mxu1 %v3693_v50  ;;  %1103 = vmatpush.msrb.mxu2 %v959_v14  ;;  %v4038_v14 = vld [vmem:[%s5813_s3 + $0x158] sm:$0xff]  ;;  %5916 = vst [vmem:[#allocation21_spill] sm:$0xff] %v4276_v11 }
  0xc3   :  { %1146 = vmatpush.msrb.mxu3 %v3660_v40  ;;  %2893 = vmatmul.msk.f32.gmra.mxu1 %vm91_vm5, %v3484_v45  ;;  %v3980_v40 = vld [vmem:[%s5813_s3 + $0x170] sm:$0xff] }
  0xc4   :  { %855 = vmatpush.msra.mxu0 %v721_v33  ;;  %1066 = vmatpush.msrb.mxu1 %v3702_v10  ;;  %v3968_v33 = vld [vmem:[%s5813_s3 + $0x148] sm:$0xff]  ;;  %5902 = vst [vmem:[#allocation7_spill] sm:$0xff] %v3980_v40 }
  0xc5   :  { %663 = vmatmul.f32.vlgmr.msrb.gmra.mxu0 %v3532_v58  ;;  %1107 = vmatpush.msrb.mxu2 %v965_v34  ;;  %v4077_v34 = vld [vmem:[%s5813_s3 + $0x140] sm:$0xff] }
  0xc6   :  { %1148 = vmatpush.msrb.mxu3 %v3673_v42  ;;  %859 = vmatpush.msra.mxu0 %v727_v39  ;;  %v3975_v39 = vld [vmem:[%s5813_s3 + $0x1c0] sm:$0xff]  ;;  %v3987_v42 = vld [vmem:[%s5813_s3 + $0x198] sm:$0xff] }
  0xc7   :  { %1068 = vmatpush.msrb.mxu1 %v3720_v61  ;;  %779 = vmatmul.f32.gmra.mxu2 %v3511_v55  ;;  %5903 = vst [vmem:[#allocation8_spill] sm:$0xff] %v3987_v42 }
  0xc8   :  { %1018 = vmatpush.msrb.mxu0 %v3683_v47  ;;  %1111 = vmatpush.msrb.mxu2 %v971_v21  ;;  %v3992_v47 = vld [vmem:[%s5813_s3 + $0x128] sm:$0xff]  ;;  %v4109_v21 = vld [vmem:[%s5813_s3 + $0xd0] sm:$0xff] }
  0xc9   :  { %1150 = vmatpush.msrb.mxu3 %v3693_v50  ;;  %1070 = vmatpush.msrb.mxu1 %v3732_v2  ;;  %v3999_v50 = vld [vmem:[%s5813_s3 + $0x1a0] sm:$0xff]  ;;  %5908 = vst [vmem:[#allocation13_spill] sm:$0xff] %v4109_v21 }
  0xca   :  { %816 = vmatmul.f32.gmra.mxu3 %v3536_v5  ;;  %1021 = vmatpush.msrb.mxu0 %v3697_v52  ;;  %v4006_v52 = vld [vmem:[%s5813_s3 + $0x150] sm:$0xff] }
  0xcb   :  { %1115 = vmatpush.msrb.mxu2 %v977_v41  ;;  %1152 = vmatpush.msrb.mxu3 %v3702_v10  ;;  %5904 = vst [vmem:[#allocation9_spill] sm:$0xff] %v4006_v52  ;;  %v4023_v10 = vld [vmem:[%s5813_s3 + $0x180] sm:$0xff] }
  0xcc   :  { %1072 = vmatpush.msrb.mxu1 %v3755_v37  ;;  %1024 = vmatpush.msrb.mxu0 %v3712_v56  ;;  %v4031_v56 = vld [vmem:[%s5813_s3 + $0x130] sm:$0xff]  ;;  %v4153_v41 = vld [vmem:[%s5813_s3 + $0xe0] sm:$0xff] }
  0xcd   :  { %1119 = vmatpush.msrb.mxu2 %v983_v3  ;;  %1154 = vmatpush.msrb.mxu3 %v3720_v61  ;;  %5905 = vst [vmem:[#allocation10_spill] sm:$0xff] %v4031_v56  ;;  %v4045_v61 = vld [vmem:[%s5813_s3 + $0xe8] sm:$0xff]  ;;  %v4179_v3 = vld [vmem:[%s5813_s3 + $0xc0] sm:$0xff] }
  0xce   :  { %2896 = vmatmul.msk.f32.vlgmr.msra.gmra.mxu1 %vm91_vm5, %v3487_v46  ;;  %671 = vmatmul.f32.gmra.mxu0 %v3591_v27 }
  0xcf   :  { %1074 = vmatpush.msrb.mxu1 %v3767_v26  ;;  %1027 = vmatpush.msrb.mxu0 %v3728_v1  ;;  %v4050_v1 = vld [vmem:[%s5813_s3 + $0x160] sm:$0xff] }
  0xd0   :  { %1123 = vmatpush.msrb.mxu2 %v989_v6  ;;  %1156 = vmatpush.msrb.mxu3 %v3732_v2  ;;  %v4057_v2 = vld [vmem:[%s5813_s3 + $0x110] sm:$0xff]  ;;  %v4216_v6 = vld [vmem:[%s5813_s3 + $0x78] sm:$0xff] }
  0xd1   :  { %1254 = vmatpush.msra.mxu1 %v3874_v20  ;;  %931 = vmatmul.f32.vlgmr.msra.gmra.mxu2 %v3532_v58  ;;  %v3906_v58 = vld [vmem:[%s5813_s3 + $0x1d0] sm:$0xff]  ;;  %5906 = vst [vmem:[#allocation11_spill] sm:$0xff] %v4057_v2 }
  0xd2   :  { %1030 = vmatpush.msrb.mxu0 %v3747_v31  ;;  %1127 = vmatpush.msrb.mxu2 %v995_v17  ;;  %5899 = vst [vmem:[#allocation4_spill] sm:$0xff] %v3906_v58  ;;  %v4089_v31 = vld [vmem:[%s5813_s3 + $0x118] sm:$0xff]  ;;  %v4228_v17 = vld [vmem:[%s5813_s3 + $0x80] sm:$0xff] }
  0xd3   :  { %1158 = vmatpush.msrb.mxu3 %v3755_v37  ;;  %1255 = vmatpush.msra.mxu1 %v3884_v60  ;;  %v4114_v37 = vld [vmem:[%s5813_s3 + $0xf8] sm:$0xff] }
  0xd4   :  { %1274 = vmatpush.msra.mxu2 %v3891_v24  ;;  %2898 = vmatmul.msk.f32.vlgmr.msra.gmra.mxu3 %vm91_vm5, %v3487_v46 }
  0xd5   :  { %1033 = vmatpush.msrb.mxu0 %v3760_v38  ;;  %1160 = vmatpush.msrb.mxu3 %v3767_v26  ;;  %v4121_v38 = vld [vmem:[%s5813_s3 + $0x88] sm:$0xff]  ;;  %v4134_v26 = vld [vmem:[%s5813_s3 + $0xb0] sm:$0xff] }
  0xd6   :  { %1256 = vmatpush.msra.mxu1 %v3901_v12  ;;  %1275 = vmatpush.msra.mxu2 %v3906_v58  ;;  %5909 = vst [vmem:[#allocation14_spill] sm:$0xff] %v4134_v26 }
  0xd7   :  { %1294 = vmatpush.msra.mxu3 %v3914_v23  ;;  %1036 = vmatpush.msrb.mxu0 %v3777_v28  ;;  %v4165_v28 = vld [vmem:[%s5813_s3 + $0xb8] sm:$0xff] }
  0xd8   :  { %1257 = vmatpush.msra.mxu1 %v3921_v30  ;;  %1276 = vmatpush.msra.mxu2 %v3926_v32 }
  0xd9   :  { %2897 = vmatmul.msk.f32.gmra.mxu1 %vm91_vm5, %v3484_v45  ;;  %1295 = vmatpush.msra.mxu3 %v3933_v25 }
  0xda   :  { %2894 = vmatmul.msk.f32.vlgmr.msra.gmra.mxu0 %vm91_vm5, %v3487_v46  ;;  %1258 = vmatpush.msra.mxu1 %v3940_v18 }
  0xdb   :  { %1039 = vmatpush.msrb.mxu0 %v3785_v29  ;;  %1277 = vmatpush.msra.mxu2 %v3947_v35  ;;  %v4196_v29 = vld [vmem:[%s5813_s3 + $0x28] sm:$0xff] }
  0xdc   :  { %1296 = vmatpush.msra.mxu3 %v3960_v36  ;;  %939 = vmatmul.f32.gmra.mxu2 %v3591_v27  ;;  %v4011_v27 = vld [vmem:[%s5813_s3 + $0x178] sm:$0xff] }
  0xdd   :  { %1234 = vmatpush.msra.mxu0 %v3955_v15  ;;  %1259 = vmatpush.msra.mxu1 %v3968_v33 }
  0xde   :  { %1278 = vmatpush.msra.mxu2 %v3980_v40  ;;  %1297 = vmatpush.msra.mxu3 %v3987_v42 }
  0xdf   :  { %1235 = vmatpush.msra.mxu0 %v3975_v39  ;;  %1260 = vmatpush.msra.mxu1 %v3992_v47 }
  0xe0   :  { %2899 = vmatmul.msk.f32.gmra.mxu3 %vm91_vm5, %v3484_v45  ;;  %1279 = vmatpush.msra.mxu2 %v4006_v52 }
  0xe1   :  { %1236 = vmatpush.msra.mxu0 %v3999_v50  ;;  %1298 = vmatpush.msra.mxu3 %v4011_v27 }
  0xe2   :  { %1261 = vmatpush.msra.mxu1 %v4018_v4  ;;  %1280 = vmatpush.msra.mxu2 %v4031_v56 }
  0xe3   :  { %1237 = vmatpush.msra.mxu0 %v4023_v10  ;;  %1078 = vmatmul.f32.vlgmr.msrb.gmra.mxu1 %v3508_v54  ;;  %v4070_v54 = vld [vmem:[%s5813_s3 + $0xc8] sm:$0xff] }
  0xe4   :  { %1299 = vmatpush.msra.mxu3 %v4038_v14  ;;  %2895 = vmatmul.msk.f32.gmra.mxu0 %vm91_vm5, %v3484_v45 }
  0xe5   :  { %1262 = vmatpush.msra.mxu1 %v4045_v61  ;;  %1238 = vmatpush.msra.mxu0 %v4050_v1 }
  0xe6   :  { %1281 = vmatpush.msra.mxu2 %v4057_v2  ;;  %1300 = vmatpush.msra.mxu3 %v4062_v7 }
  0xe7   :  { %2900 = vmatmul.msk.f32.vlgmr.msrb.gmra.mxu2 %vm91_vm5, %v3487_v46  ;;  %1263 = vmatpush.msra.mxu1 %v4070_v54 }
  0xe8   :  { %1239 = vmatpush.msra.mxu0 %v4077_v34  ;;  %1282 = vmatpush.msra.mxu2 %v4082_v8 }
  0xe9   :  { %1301 = vmatpush.msra.mxu3 %v4089_v31  ;;  %1264 = vmatpush.msra.mxu1 %v4094_v16 }
  0xea   :  { %2902 = vmatmul.msk.f32.vlgmr.msrb.gmra.mxu3 %vm91_vm5, %v3487_v46  ;;  %1240 = vmatpush.msra.mxu0 %v4102_v49  ;;  %v4148_v46 = vld [vmem:[%s5813_s3 + $0x68] sm:$0xff] }
  0xeb   :  { %1283 = vmatpush.msra.mxu2 %v4109_v21  ;;  %1302 = vmatpush.msra.mxu3 %v4114_v37 }
  0xec   :  { %1265 = vmatpush.msra.mxu1 %v4121_v38  ;;  %1241 = vmatpush.msra.mxu0 %v4126_v22 }
  0xed   :  { %1084 = vmatmul.f32.gmra.mxu1 %v3536_v5  ;;  %1284 = vmatpush.msra.mxu2 %v4134_v26  ;;  %v4172_v5 = vld [vmem:[%s5813_s3 + $0x48] sm:$0xff] }
  0xee   :  { %1303 = vmatpush.msra.mxu3 %v4141_v59  ;;  %1042 = vmatmul.f32.vlgmr.msrb.gmra.mxu0 %v3500_v51  ;;  %v4191_v51 = vld [vmem:[%s5813_s3 + $0x98] sm:$0xff] }
  0xef   :  { %1266 = vmatpush.msra.mxu1 %v4148_v46  ;;  %1242 = vmatpush.msra.mxu0 %v4153_v41 }
  0xf0   :  { %1285 = vmatpush.msra.mxu2 %v4160_v43  ;;  %1304 = vmatpush.msra.mxu3 %v4165_v28 }
  0xf1   :  { %2901 = vmatmul.msk.f32.gmra.mxu2 %vm91_vm5, %v3484_v45  ;;  %1267 = vmatpush.msra.mxu1 %v4172_v5 }
  0xf2   :  { %1243 = vmatpush.msra.mxu0 %v4179_v3  ;;  %1286 = vmatpush.msra.mxu2 %v4184_v48 }
  0xf3   :  { %1305 = vmatpush.msra.mxu3 %v4191_v51  ;;  %1268 = vmatpush.msra.mxu1 %v4196_v29 }
  0xf4   :  { %2903 = vmatmul.msk.f32.gmra.mxu3 %vm91_vm5, %v3484_v45  ;;  %1244 = vmatpush.msra.mxu0 %v4204_v63  ;;  %v4250_v45 = vld [vmem:[%s5813_s3 + $0x60] sm:$0xff] }
  0xf5   :  { %1287 = vmatpush.msra.mxu2 %v4211_v0  ;;  %1306 = vmatpush.msra.mxu3 %v4216_v6 }
  0xf6   :  { %1269 = vmatpush.msra.mxu1 %v4223_v57  ;;  %1245 = vmatpush.msra.mxu0 %v4228_v17 }
  0xf7   :  { %1270 = vmatmul.f32.vlgmr.msra.gmra.mxu1 %v3195_v44  ;;  %1288 = vmatpush.msra.mxu2 %v4236_v19 }
  0xf8   :  { %1307 = vmatpush.msra.mxu3 %v4243_v62  ;;  %1047 = vmatmul.f32.gmra.mxu0 %v3511_v55  ;;  %v4283_v55 = vld [vmem:[%s5813_s3 + $0x20] sm:$0xff] }
  0xf9   :  { %1246 = vmatpush.msra.mxu0 %v4250_v45  ;;  %1289 = vmatpush.msra.mxu2 %v4255_v53  ;;  %v4291_v53 = vld [vmem:[%s5813_s3] sm:$0xff] }
  0xfa   :  { %1308 = vmatpush.msra.mxu3 %v4262_v9  ;;  %1290 = vmatmul.f32.vlgmr.msra.gmra.mxu2 %v3195_v44 }
  0xfb   :  { %1247 = vmatpush.msra.mxu0 %v4269_v13  ;;  %1417 = vmatpush.msrb.mxu1 %v3874_v20 }
  0xfc   :  { %1309 = vmatpush.msra.mxu3 %v4276_v11  ;;  %1437 = vmatpush.msrb.mxu2 %v3891_v24 }
  0xfd   :  { %1310 = vmatmul.f32.vlgmr.msra.gmra.mxu3 %v3195_v44  ;;  %1248 = vmatpush.msra.mxu0 %v4283_v55 }
  0xfe   :  { %v197_v9 = vpop.f32.mrf.mxu1  ;;  %1418 = vmatpush.msrb.mxu1 %v3884_v60  ;;  %1457 = vmatpush.msrb.mxu3 %v3914_v23 }
  0xff   :  { %1249 = vmatpush.msra.mxu0 %v4291_v53  ;;  %1438 = vmatpush.msrb.mxu2 %v3906_v58 }
 0x100   :  { %1250 = vmatmul.f32.vlgmr.msra.gmra.mxu0 %v3195_v44  ;;  %1419 = vmatpush.msrb.mxu1 %v3901_v12 }
 0x101   :  { %1397 = vmatpush.msrb.mxu0 %v3955_v15  ;;  %1458 = vmatpush.msrb.mxu3 %v3933_v25 }
 0x102   :  { %1420 = vmatpush.msrb.mxu1 %v3921_v30  ;;  %1439 = vmatpush.msrb.mxu2 %v3926_v32 }
 0x103   :  { %1398 = vmatpush.msrb.mxu0 %v3975_v39  ;;  %1459 = vmatpush.msrb.mxu3 %v3960_v36 }
 0x104   :  { %1421 = vmatpush.msrb.mxu1 %v3940_v18  ;;  %1440 = vmatpush.msrb.mxu2 %v3947_v35 }
 0x105   :  { %1399 = vmatpush.msrb.mxu0 %v3999_v50  ;;  %1460 = vmatpush.msrb.mxu3 %v3987_v42 }
 0x106   :  { %v201_v44 = vpop.f32.mrf.mxu1  ;;  %1422 = vmatpush.msrb.mxu1 %v3968_v33  ;;  %1441 = vmatpush.msrb.mxu2 %v3980_v40 }
 0x107   :  { %v128_v58 = vpop.f32.mrf.mxu0  ;;  %v239_v24 = vpop.f32.mrf.mxu2  ;;  %1400 = vmatpush.msrb.mxu0 %v4023_v10  ;;  %1461 = vmatpush.msrb.mxu3 %v4011_v27 }
 0x108   :  { %v198_v32 = vadd.f32 %v197_v9, %v128_v58  ;;  %1423 = vmatpush.msrb.mxu1 %v3992_v47  ;;  %1442 = vmatpush.msrb.mxu2 %v4006_v52 }
 0x109   :  { %v275_v35 = vpop.f32.mrf.mxu3  ;;  %1401 = vmatpush.msrb.mxu0 %v4050_v1  ;;  %1462 = vmatpush.msrb.mxu3 %v4038_v14 }
 0x10a   :  { %v240_v42 = vadd.f32 %v239_v24, %v198_v32  ;;  %1424 = vmatpush.msrb.mxu1 %v4018_v4  ;;  %1443 = vmatpush.msrb.mxu2 %v4031_v56 }
 0x10b   :  { %1402 = vmatpush.msrb.mxu0 %v4077_v34  ;;  %1463 = vmatpush.msrb.mxu3 %v4062_v7 }
 0x10c   :  { %v276_v40 = vadd.f32 %v275_v35, %v240_v42  ;;  %1425 = vmatpush.msrb.mxu1 %v4045_v61  ;;  %1444 = vmatpush.msrb.mxu2 %v4057_v2 }
 0x10d   :  { %1403 = vmatpush.msrb.mxu0 %v4102_v49  ;;  %1464 = vmatpush.msrb.mxu3 %v4089_v31 }
 0x10e   :  { %v359_v58 = vpop.f32.mrf.mxu1  ;;  %1426 = vmatpush.msrb.mxu1 %v4070_v54  ;;  %1445 = vmatpush.msrb.mxu2 %v4082_v8 }
 0x10f   :  { %v136_v24 = vpop.f32.mrf.mxu0  ;;  %v244_v32 = vpop.f32.mrf.mxu2  ;;  %1404 = vmatpush.msrb.mxu0 %v4126_v22  ;;  %1465 = vmatpush.msrb.mxu3 %v4114_v37 }
 0x110   :  { %v202_v35 = vadd.f32 %v201_v44, %v136_v24  ;;  %1427 = vmatpush.msrb.mxu1 %v4094_v16  ;;  %1446 = vmatpush.msrb.mxu2 %v4109_v21 }
 0x111   :  { %v281_v42 = vpop.f32.mrf.mxu3  ;;  %1405 = vmatpush.msrb.mxu0 %v4153_v41  ;;  %1466 = vmatpush.msrb.mxu3 %v4141_v59 }
 0x112   :  { %v245_v9 = vadd.f32 %v244_v32, %v202_v35  ;;  %1428 = vmatpush.msrb.mxu1 %v4121_v38  ;;  %1447 = vmatpush.msrb.mxu2 %v4134_v26 }
 0x113   :  { %1406 = vmatpush.msrb.mxu0 %v4179_v3  ;;  %1467 = vmatpush.msrb.mxu3 %v4165_v28 }
 0x114   :  { %v282_v8 = vadd.f32 %v281_v42, %v245_v9  ;;  %1429 = vmatpush.msrb.mxu1 %v4148_v46  ;;  %1448 = vmatpush.msrb.mxu2 %v4160_v43  ;;  %v5919_v43 = vld [vmem:[#allocation19_spill] sm:$0xff] }
 0x115   :  { %1407 = vmatpush.msrb.mxu0 %v4204_v63  ;;  %1468 = vmatpush.msrb.mxu3 %v4191_v51 }
 0x116   :  { %1430 = vmatpush.msrb.mxu1 %v4172_v5  ;;  %1449 = vmatpush.msrb.mxu2 %v4184_v48  ;;  %v363_v32 = vpop.f32.mrf.mxu1  ;;  %v5918_v48 = vld [vmem:[#allocation20_spill] sm:$0xff] }
 0x117   :  { %1408 = vmatpush.msrb.mxu0 %v4228_v17  ;;  %1469 = vmatpush.msrb.mxu3 %v4216_v6  ;;  %v4348_v24 = vpop.f32.mrf.mxu2 }
 0x118   :  { %v326_v44 = vpop.f32.mrf.mxu0  ;;  %1431 = vmatpush.msrb.mxu1 %v4196_v29  ;;  %1450 = vmatpush.msrb.mxu2 %v4211_v0 }
 0x119   :  { %v327_v35 = vadd.f32 %v326_v44, %v276_v40  ;;  %v4352_v42 = vpop.f32.mrf.mxu3  ;;  %1409 = vmatpush.msrb.mxu0 %v4250_v45  ;;  %1470 = vmatpush.msrb.mxu3 %v4243_v62 }
 0x11a   :  { %1432 = vmatpush.msrb.mxu1 %v4223_v57  ;;  %1451 = vmatpush.msrb.mxu2 %v4236_v19 }
 0x11b   :  { %v4358_v9 = vadd.f32 %v359_v58, %v327_v35  ;;  %1410 = vmatpush.msrb.mxu0 %v4269_v13  ;;  %1471 = vmatpush.msrb.mxu3 %v5918_v48 }
 0x11c   :  { %1452 = vmatpush.msrb.mxu2 %v5919_v43 }
 0x11d   :  { %5917 = vst [vmem:[#allocation22_spill] sm:$0xff] %v4358_v9  ;;  %1411 = vmatpush.msrb.mxu0 %v4283_v55  ;;  %1472 = vmatpush.msrb.mxu3 %v4276_v11 }
 0x11e   :  { %1618 = vmatpush.msra.mxu2 %v3955_v15 }
 0x11f   :  { %1638 = vmatpush.msra.mxu3 %v3874_v20  ;;  %1412 = vmatpush.msrb.mxu0 %v4291_v53 }
 0x120   :  { %1619 = vmatpush.msra.mxu2 %v3975_v39  ;;  %v404_v44 = vpop.f32.mrf.mxu2 }
 0x121   :  { %1639 = vmatpush.msra.mxu3 %v3884_v60  ;;  %v330_v40 = vpop.f32.mrf.mxu0  ;;  %v4372_v35 = vpop.f32.mrf.mxu1 }
 0x122   :  { %v331_v58 = vadd.f32 %v330_v40, %v282_v8  ;;  %1620 = vmatpush.msra.mxu2 %v3999_v50 }
 0x123   :  { %1640 = vmatpush.msra.mxu3 %v3901_v12  ;;  %v469_v43 = vpop.f32.mrf.mxu3 }
 0x124   :  { %v4374_v19 = vadd.f32 %v363_v32, %v331_v58  ;;  %v470_v0 = vadd.f32 %v469_v43, %v404_v44  ;;  %1621 = vmatpush.msra.mxu2 %v4023_v10 }
 0x125   :  { %1641 = vmatpush.msra.mxu3 %v3921_v30 }
 0x126   :  { %5920 = vst [vmem:[#allocation20_spill] sm:$0xff] %v4374_v19  ;;  %1622 = vmatpush.msra.mxu2 %v4050_v1 }
 0x127   :  { %1642 = vmatpush.msra.mxu3 %v3940_v18 }
 0x128   :  { %1623 = vmatpush.msra.mxu2 %v4077_v34 }
 0x129   :  { %1643 = vmatpush.msra.mxu3 %v3968_v33 }
 0x12a   :  { %1624 = vmatpush.msra.mxu2 %v4102_v49  ;;  %v594_v12 = vpop.f32.mrf.mxu2 }
 0x12b   :  { %1644 = vmatpush.msra.mxu3 %v3992_v47  ;;  %v507_v60 = vpop.f32.mrf.mxu0 }
 0x12c   :  { %1625 = vmatpush.msra.mxu2 %v4126_v22  ;;  %v549_v20 = vpop.f32.mrf.mxu1 }
 0x12d   :  { %1645 = vmatpush.msra.mxu3 %v4018_v4  ;;  %v627_v30 = vpop.f32.mrf.mxu3 }
 0x12e   :  { %1626 = vmatpush.msra.mxu2 %v4153_v41 }
 0x12f   :  { %1646 = vmatpush.msra.mxu3 %v4045_v61 }
 0x130   :  { %1627 = vmatpush.msra.mxu2 %v4179_v3 }
 0x131   :  { %1647 = vmatpush.msra.mxu3 %v4070_v54 }
 0x132   :  { %1628 = vmatpush.msra.mxu2 %v4204_v63 }
 0x133   :  { %1648 = vmatpush.msra.mxu3 %v4094_v16 }
 0x134   :  { %1629 = vmatpush.msra.mxu2 %v4228_v17 }
 0x135   :  { %1649 = vmatpush.msra.mxu3 %v4121_v38  ;;  %v598_v4 = vpop.f32.mrf.mxu2 }
 0x136   :  { %1630 = vmatpush.msra.mxu2 %v4250_v45  ;;  %v733_v18 = vpop.f32.mrf.mxu1 }
 0x137   :  { %1650 = vmatpush.msra.mxu3 %v4148_v46  ;;  %v512_v33 = vpop.f32.mrf.mxu0 }
 0x138   :  { %v513_v47 = vadd.f32 %v512_v33, %v470_v0  ;;  %1631 = vmatpush.msra.mxu2 %v4269_v13 }
 0x139   :  { %1651 = vmatpush.msra.mxu3 %v4172_v5  ;;  %v631_v54 = vpop.f32.mrf.mxu3 }
 0x13a   :  { %v550_v61 = vadd.f32 %v549_v20, %v513_v47  ;;  %1632 = vmatpush.msra.mxu2 %v4283_v55 }
 0x13b   :  { %1652 = vmatpush.msra.mxu3 %v4196_v29 }
 0x13c   :  { %v599_v8 = vadd.f32 %v598_v4, %v550_v61  ;;  %1633 = vmatpush.msra.mxu2 %v4291_v53 }
 0x13d   :  { %1653 = vmatpush.msra.mxu3 %v4223_v57 }
 0x13e   :  { %v4402_v16 = vadd.f32 %v631_v54, %v599_v8 }
 0x140   :  { %5921 = vst [vmem:[#allocation23_spill] sm:$0xff] %v4402_v16  ;;  %v737_v38 = vpop.f32.mrf.mxu1  ;;  %v775_v43 = vpop.f32.mrf.mxu2 }
 0x142   :  { %v664_v46 = vpop.f32.mrf.mxu0 }
 0x143   :  { %v811_v0 = vpop.f32.mrf.mxu3  ;;  %v734_v2 = vadd.f32 %v733_v18, %v664_v46 }
 0x145   :  { %v776_v11 = vadd.f32 %v775_v43, %v734_v2 }
 0x14a   :  { %v780_v58 = vpop.f32.mrf.mxu2 }
 0x14b   :  { %v672_v32 = vpop.f32.mrf.mxu0  ;;  %v895_v40 = vpop.f32.mrf.mxu1 }
 0x14c   :  { %v738_v5 = vadd.f32 %v737_v38, %v672_v32  ;;  %v466_v38 = vadd.f32 %v4352_v42, %v4348_v24  ;;  %v1396_v24 = vld [vmem:[%s5814_s4 + $0x78] sm:$0xff] }
 0x14d   :  { %v817_v20 = vpop.f32.mrf.mxu3  ;;  %1598 = vmatpush.msra.mxu1 %v1396_v24  ;;  %v1390_v24 = vld [vmem:[%s5814_s4 + $0x48] sm:$0xff] }
 0x14e   :  { %v781_v44 = vadd.f32 %v780_v58, %v738_v5  ;;  %v508_v32 = vadd.f32 %v507_v60, %v466_v38 }
 0x150   :  { %v818_v33 = vadd.f32 %v817_v20, %v781_v44  ;;  %v544_v44 = vadd.f32 %v4372_v35, %v508_v32 }
 0x152   :  { %v595_v56 = vadd.f32 %v594_v12, %v544_v44  ;;  %v1395_v12 = vld [vmem:[%s5814_s4 + $0x70] sm:$0xff] }
 0x153   :  { %1599 = vmatpush.msra.mxu1 %v1395_v12  ;;  %v1387_v12 = vld [vmem:[%s5814_s4 + $0x30] sm:$0xff] }
 0x154   :  { %v932_v47 = vpop.f32.mrf.mxu2 }
 0x156   :  { %v899_v29 = vpop.f32.mrf.mxu1 }
 0x157   :  { %v862_v4 = vpop.f32.mrf.mxu0  ;;  %v1001_v61 = vpop.f32.mrf.mxu3 }
 0x15f   :  { %v940_v57 = vpop.f32.mrf.mxu2 }
 0x160   :  { %v4404_v19 = vpop.f32.mrf.mxu1 }
 0x161   :  { %v866_v54 = vpop.f32.mrf.mxu0 }
 0x162   :  { %v867_v8 = vadd.f32 %v866_v54, %v818_v33  ;;  %v4415_v33 = vadd.f32 %v627_v30, %v595_v56  ;;  %v1394_v30 = vld [vmem:[%s5814_s4 + $0x68] sm:$0xff] }
 0x163   :  { %v1005_v16 = vpop.f32.mrf.mxu3  ;;  %1600 = vmatpush.msra.mxu1 %v1394_v30 }
 0x164   :  { %v4406_v26 = vadd.f32 %v899_v29, %v867_v8  ;;  %v1006_v21 = vadd.f32 %v1005_v16, %v940_v57  ;;  %5923 = vst [vmem:[#allocation25_spill] sm:$0xff] %v4415_v33  ;;  %v812_v16 = vadd.f32 %v811_v0, %v776_v11  ;;  %v1393_v11 = vld [vmem:[%s5814_s4 + $0x60] sm:$0xff] }
 0x165   :  { %1601 = vmatpush.msra.mxu1 %v1393_v11 }
 0x166   :  { %5922 = vst [vmem:[#allocation24_spill] sm:$0xff] %v4406_v26  ;;  %v863_v56 = vadd.f32 %v862_v4, %v812_v16  ;;  %v1392_v4 = vld [vmem:[%s5814_s4 + $0x58] sm:$0xff] }
 0x167   :  { %1602 = vmatpush.msra.mxu1 %v1392_v4  ;;  %v1388_v16 = vld [vmem:[%s5814_s4 + $0x38] sm:$0xff] }
 0x168   :  { %v4430_v43 = vadd.f32 %v895_v40, %v863_v56  ;;  %v1385_v56 = vld [vmem:[%s5814_s4 + $0x20] sm:$0xff]  ;;  %v1384_v4 = vld [vmem:[%s5814_s4 + $0x18] sm:$0xff] }
 0x169   :  { %v4979_v26 = vld [vmem:[%s5813_s3 + $0x38] sm:$0xff] }
 0x16a   :  { %v1085_v5 = vpop.f32.mrf.mxu1  ;;  %v4410_v58 = vpop.f32.mrf.mxu2  ;;  %5924 = vst [vmem:[#allocation26_spill] sm:$0xff] %v4430_v43 }
 0x16b   :  { %v1043_v20 = vpop.f32.mrf.mxu0  ;;  %5968 = vst [vmem:[#allocation34_spill] sm:$0xff] %v4979_v26 }
 0x16d   :  { %v4413_v52 = vpop.f32.mrf.mxu3 }
 0x174   :  { %v1271_v29 = vpop.f32.mrf.mxu1  ;;  %v1134_v54 = vpop.f32.mrf.mxu2 }
 0x175   :  { %v1315_v42 = vadd.f32 %v1271_v29, %v4415_v33  ;;  %v1048_v60 = vpop.f32.mrf.mxu0 }
 0x176   :  { %v1049_v35 = vadd.f32 %v1048_v60, %v1006_v21  ;;  %v1002_v60 = vadd.f32 %v1001_v61, %v932_v47 }
 0x177   :  { %v2905_v18 = vmul.f32 -1.442695, %v1315_v42  ;;  %v1167_v21 = vpop.f32.mrf.mxu3  ;;  %v1389_v42 = vld [vmem:[%s5814_s4 + $0x40] sm:$0xff] }
 0x178   :  { %v1086_v2 = vadd.f32 %v1085_v5, %v1049_v35  ;;  %v1391_v5 = vld [vmem:[%s5814_s4 + $0x50] sm:$0xff]  ;;  %v1044_v35 = vadd.f32 %v1043_v20, %v1002_v60 }
 0x179   :  { %2936 = vpow2.f32 %v2905_v18  ;;  %1603 = vmatpush.msra.mxu1 %v1391_v5  ;;  %v1386_v18 = vld [vmem:[%s5814_s4 + $0x28] sm:$0xff] }
 0x17a   :  { %v1135_v46 = vadd.f32 %v1134_v54, %v1086_v2  ;;  %v1080_v61 = vadd.f32 %v4404_v19, %v1044_v35 }
 0x17b   :  { %1604 = vmatpush.msra.mxu1 %v1390_v24  ;;  %v1573_v24 = vld [vmem:[%s5814_s4 + $0xf0] sm:$0xff] }
 0x17c   :  { %v4432_v0 = vadd.f32 %v1167_v21, %v1135_v46  ;;  %v1131_v19 = vadd.f32 %v4410_v58, %v1080_v61  ;;  %v1381_v58 = vld [vmem:[%s5814_s4] sm:$0xff] }
 0x17d   :  { %v1251_v57 = vpop.f32.mrf.mxu0  ;;  %v1291_v8 = vpop.f32.mrf.mxu2  ;;  %1605 = vmatpush.msra.mxu1 %v1389_v42 }
 0x17e   :  { %5925 = vst [vmem:[#allocation27_spill] sm:$0xff] %v4432_v0  ;;  %v1314_v38 = vadd.f32 %v1251_v57, %v4358_v9  ;;  %v1316_v32 = vadd.f32 %v1291_v8, %v4430_v43  ;;  %v1383_v57 = vld [vmem:[%s5814_s4 + $0x10] sm:$0xff]  ;;  %v1382_v8 = vld [vmem:[%s5814_s4 + $0x8] sm:$0xff]  ;;  %v4479_v5 = vadd.f32 %v4413_v52, %v1131_v19 }
 0x17f   :  { %v2937_v44 = vpop.eup %2936  ;;  %1606 = vmatpush.msra.mxu1 %v1388_v16 }
 0x180   :  { %v4442_v40 = vadd.f32 1.0, %v2937_v44  ;;  %v2904_v29 = vmul.f32 -1.442695, %v1314_v38  ;;  %v2906_v54 = vmul.f32 -1.442695, %v1316_v32  ;;  %v1311_v32 = vpop.f32.mrf.mxu3  ;;  %5926 = vst [vmem:[#allocation28_spill] sm:$0xff] %v4479_v5 }
 0x181   :  { %1607 = vmatpush.msra.mxu1 %v1387_v12  ;;  %v1572_v12 = vld [vmem:[%s5814_s4 + $0xe8] sm:$0xff] }
 0x182   :  { %2938 = vrcp.f32 %v4442_v40  ;;  %v1356_v16 = vand.u32 2147483648, %v4442_v40  ;;  %vm1350_vm8 = vweird.f32 %v4442_v40  ;;  %v1354_v61 = vand.u32 2147483647, %v4442_v40 }
 0x183   :  { %2940 = vpow2.f32 %v2904_v29  ;;  %1608 = vmatpush.msra.mxu1 %v1386_v18  ;;  %v1317_v29 = vadd.f32 %v1311_v32, %v4479_v5 }
 0x184   :  { %2942 = vpow2.f32 %v2906_v54  ;;  %v1574_v54 = vld [vmem:[%s5814_s4 + $0xf8] sm:$0xff]  ;;  %vm1355_vm12 = vcmp.eq.f32.partialorder %v1354_v61, 8.507059e+37  ;;  %v4606_v61 = vld [vmem:[%s5813_s3 + $0x1b0] sm:$0xff] }
 0x185   :  { %1609 = vmatpush.msra.mxu1 %v1385_v56  ;;  %1578 = vmatpush.msra.mxu0 %v1574_v54 }
 0x187   :  { %1610 = vmatpush.msra.mxu1 %v1384_v4  ;;  %1579 = vmatpush.msra.mxu0 %v1573_v24 }
 0x188   :  { %v2939_v47 = vpop.eup %2938 }
 0x189   :  { %v2941_v2 = vpop.eup %2940  ;;  %v1346_v20 = vmul.f32 %v2939_v47, %v4442_v40  ;;  %1611 = vmatpush.msra.mxu1 %v1383_v57  ;;  %vm1351_vm7 = vweird.f32 %v2939_v47  ;;  %1580 = vmatpush.msra.mxu0 %v1572_v12 }
 0x18a   :  { %v2943_v30 = vpop.eup %2942  ;;  %v1327_v46 = vadd.f32 1.0, %v2941_v2  ;;  %vm1352_vm9 = vmor %vm1350_vm8, %vm1351_vm7 }
 0x18b   :  { %v1347_v11 = vsub.f32 1.0, %v1346_v20  ;;  %v4465_v21 = vadd.f32 1.0, %v2943_v30  ;;  %1612 = vmatpush.msra.mxu1 %v1382_v8 }
 0x18c   :  { %2944 = vrcp.f32 %v1327_v46  ;;  %v1341_v56 = vand.u32 2147483648, %v1327_v46  ;;  %v1339_v20 = vand.u32 2147483647, %v1327_v46  ;;  %vm1335_vm11 = vweird.f32 %v1327_v46 }
 0x18d   :  { %2946 = vrcp.f32 %v4465_v21  ;;  %v1348_v38 = vmul.f32 %v2939_v47, %v1347_v11  ;;  %1613 = vmatpush.msra.mxu1 %v1381_v58  ;;  %v1357_v11 = vor.u32 1.1754944e-38, %v1356_v16  ;;  %vm1365_vm0 = vweird.f32 %v4465_v21 }
 0x18e   :  { %2948 = vtanh.f32 %v1317_v29  ;;  %v1342_v57 = vor.u32 1.1754944e-38, %v1341_v56  ;;  %vm1340_vm14 = vcmp.eq.f32.partialorder %v1339_v20, 8.507059e+37 }
 0x18f   :  { %v1349_v52 = vadd.f32 %v2939_v47, %v1348_v38 }
 0x191   :  { %v1353_v30 = vsel %vm1352_vm9, %v2939_v47, %v1349_v52 }
 0x192   :  { %v2945_v44 = vpop.eup %2944  ;;  %v1358_v8 = vsel %vm1355_vm12, %v1357_v11, %v1353_v30 }
 0x193   :  { %v2947_v42 = vpop.eup %2946  ;;  %v1331_v60 = vmul.f32 %v2945_v44, %v1327_v46  ;;  %vm1336_vm10 = vweird.f32 %v2945_v44  ;;  %v1376_v54 = vmul.f32 0.0, %v1358_v8  ;;  %v1369_v46 = vand.u32 2147483647, %v4465_v21 }
 0x194   :  { %v1361_v35 = vmul.f32 %v2947_v42, %v4465_v21  ;;  %vm1337_vm13 = vmor %vm1335_vm11, %vm1336_vm10  ;;  %v2949_v40 = vpop.eup %2948  ;;  %vm1366_vm15 = vweird.f32 %v2947_v42 }
 0x195   :  { %v1332_v18 = vsub.f32 1.0, %v1331_v60  ;;  %v1371_v60 = vand.u32 2147483648, %v4465_v21  ;;  %vm1367_vm1 = vmor %vm1365_vm0, %vm1366_vm15  ;;  %vm1370_vm2 = vcmp.eq.f32.partialorder %v1369_v46, 8.507059e+37  ;;  %v5927_v21 = vld [vmem:[#allocation8_spill] sm:$0xff] }
 0x196   :  { %v1362_v4 = vsub.f32 1.0, %v1361_v35 }
 0x197   :  { %v1333_v2 = vmul.f32 %v2945_v44, %v1332_v18  ;;  %v1372_v52 = vor.u32 1.1754944e-38, %v1371_v60  ;;  %v4600_v18 = vld [vmem:[%s5813_s3 + $0x1d0] sm:$0xff] }
 0x198   :  { %v1363_v32 = vmul.f32 %v2947_v42, %v1362_v4 }
 0x199   :  { %v1334_v19 = vadd.f32 %v2945_v44, %v1333_v2 }
 0x19a   :  { %v1364_v47 = vadd.f32 %v2947_v42, %v1363_v32 }
 0x19b   :  { %v1338_v38 = vsel %vm1337_vm13, %v2945_v44, %v1334_v19 }
 0x19c   :  { %v1343_v58 = vsel %vm1340_vm14, %v1342_v57, %v1338_v38  ;;  %v1368_v44 = vsel %vm1367_vm1, %v2947_v42, %v1364_v47  ;;  %v4594_v42 = vld [vmem:[%s5813_s3 + $0x1f0] sm:$0xff] }
 0x19d   :  { %v1377_v29 = vmul.f32 %v2949_v40, %v1343_v58  ;;  %v1373_v35 = vsel %vm1370_vm2, %v1372_v52, %v1368_v44 }
 0x19f   :  { %v4498_v24 = vadd.f32 %v1377_v29, %v1376_v54 }
 0x1a1   :  { %2950 = vtanh.f32 %v4498_v24 }
 0x1a7   :  { %v2951_v16 = vpop.eup %2950 }
 0x1a8   :  { %v1380_v12 = vmul.f32 %v2951_v16, %v1373_v35 }
 0x1aa   :  { %1413 = vmatmul.f32.vlgmr.msrb.gmra.mxu0 %v1380_v12  ;;  %1433 = vmatmul.f32.vlgmr.msrb.gmra.mxu1 %v1380_v12 }
 0x1ab   :  { %1453 = vmatmul.f32.vlgmr.msrb.gmra.mxu2 %v1380_v12  ;;  %1473 = vmatmul.f32.vlgmr.msrb.gmra.mxu3 %v1380_v12 }
 0x1ac   :  { %1678 = vmatpush.msrb.mxu1 %v3914_v23  ;;  %1820 = vmatpush.msrb.mxu3 %v3955_v15  ;;  %v5928_v23 = vld [vmem:[#allocation21_spill] sm:$0xff]  ;;  %v5930_v15 = vld [vmem:[#allocation4_spill] sm:$0xff] }
 0x1ae   :  { %1679 = vmatpush.msrb.mxu1 %v3933_v25  ;;  %1821 = vmatpush.msrb.mxu3 %v3975_v39  ;;  %v5929_v25 = vld [vmem:[#allocation3_spill] sm:$0xff]  ;;  %v5932_v39 = vld [vmem:[#allocation6_spill] sm:$0xff] }
 0x1b0   :  { %1680 = vmatpush.msrb.mxu1 %v3960_v36  ;;  %1822 = vmatpush.msrb.mxu3 %v3999_v50  ;;  %v5931_v36 = vld [vmem:[#allocation5_spill] sm:$0xff]  ;;  %v5933_v50 = vld [vmem:[#allocation7_spill] sm:$0xff] }
 0x1b2   :  { %1614 = vmatmul.f32.vlgmr.msra.gmra.mxu1 %v1380_v12  ;;  %1823 = vmatpush.msrb.mxu3 %v4023_v10  ;;  %v5935_v10 = vld [vmem:[#allocation10_spill] sm:$0xff] }
 0x1b3   :  { %1681 = vmatpush.msrb.mxu1 %v5927_v21 }
 0x1b4   :  { %1824 = vmatpush.msrb.mxu3 %v4050_v1  ;;  %v5937_v1 = vld [vmem:[#allocation12_spill] sm:$0xff] }
 0x1b5   :  { %1682 = vmatpush.msrb.mxu1 %v4011_v27  ;;  %v5934_v27 = vld [vmem:[#allocation9_spill] sm:$0xff] }
 0x1b6   :  { %1825 = vmatpush.msrb.mxu3 %v4077_v34  ;;  %v5939_v34 = vld [vmem:[#allocation14_spill] sm:$0xff] }
 0x1b7   :  { %1683 = vmatpush.msrb.mxu1 %v4038_v14  ;;  %v5936_v14 = vld [vmem:[#allocation11_spill] sm:$0xff] }
 0x1b8   :  { %1826 = vmatpush.msrb.mxu3 %v4102_v49  ;;  %v5941_v49 = vld [vmem:[#allocation16_spill] sm:$0xff] }
 0x1b9   :  { %1684 = vmatpush.msrb.mxu1 %v4062_v7  ;;  %v5938_v7 = vld [vmem:[#allocation13_spill] sm:$0xff] }
 0x1ba   :  { %1827 = vmatpush.msrb.mxu3 %v4126_v22  ;;  %v5943_v22 = vld [vmem:[#allocation18_spill] sm:$0xff] }
 0x1bb   :  { %1685 = vmatpush.msrb.mxu1 %v4089_v31  ;;  %v5940_v31 = vld [vmem:[#allocation15_spill] sm:$0xff] }
 0x1bc   :  { %1828 = vmatpush.msrb.mxu3 %v4153_v41  ;;  %v1571_v41 = vld [vmem:[%s5814_s4 + $0xe0] sm:$0xff] }
 0x1bd   :  { %1686 = vmatpush.msrb.mxu1 %v4114_v37  ;;  %v5942_v37 = vld [vmem:[#allocation17_spill] sm:$0xff]  ;;  %1581 = vmatpush.msra.mxu0 %v1571_v41 }
 0x1be   :  { %1829 = vmatpush.msrb.mxu3 %v4179_v3  ;;  %v1569_v3 = vld [vmem:[%s5814_s4 + $0xd0] sm:$0xff] }
 0x1bf   :  { %1687 = vmatpush.msrb.mxu1 %v4141_v59  ;;  %v5944_v59 = vld [vmem:[#allocation19_spill] sm:$0xff] }
 0x1c0   :  { %1830 = vmatpush.msrb.mxu3 %v4204_v63  ;;  %v1566_v63 = vld [vmem:[%s5814_s4 + $0xb8] sm:$0xff] }
 0x1c1   :  { %1688 = vmatpush.msrb.mxu1 %v4165_v28  ;;  %v1570_v28 = vld [vmem:[%s5814_s4 + $0xd8] sm:$0xff] }
 0x1c2   :  { %1831 = vmatpush.msrb.mxu3 %v4228_v17  ;;  %1582 = vmatpush.msra.mxu0 %v1570_v28  ;;  %v1564_v17 = vld [vmem:[%s5814_s4 + $0xa8] sm:$0xff] }
 0x1c3   :  { %1689 = vmatpush.msrb.mxu1 %v4191_v51  ;;  %v1567_v51 = vld [vmem:[%s5814_s4 + $0xc0] sm:$0xff] }
 0x1c4   :  { %1832 = vmatpush.msrb.mxu3 %v4250_v45  ;;  %1583 = vmatpush.msra.mxu0 %v1569_v3  ;;  %v1562_v45 = vld [vmem:[%s5814_s4 + $0x98] sm:$0xff] }
 0x1c5   :  { %1690 = vmatpush.msrb.mxu1 %v4216_v6  ;;  %v1565_v6 = vld [vmem:[%s5814_s4 + $0xb0] sm:$0xff] }
 0x1c6   :  { %1833 = vmatpush.msrb.mxu3 %v4269_v13  ;;  %v1560_v13 = vld [vmem:[%s5814_s4 + $0x88] sm:$0xff] }
 0x1c7   :  { %1691 = vmatpush.msrb.mxu1 %v4243_v62  ;;  %v1563_v62 = vld [vmem:[%s5814_s4 + $0xa0] sm:$0xff] }
 0x1c8   :  { %1834 = vmatpush.msrb.mxu3 %v4283_v55  ;;  %v1559_v55 = vld [vmem:[%s5814_s4 + $0x80] sm:$0xff] }
 0x1c9   :  { %1692 = vmatpush.msrb.mxu1 %v5918_v48  ;;  %v1568_v48 = vld [vmem:[%s5814_s4 + $0xc8] sm:$0xff] }
 0x1ca   :  { %1835 = vmatpush.msrb.mxu3 %v4291_v53  ;;  %1584 = vmatpush.msra.mxu0 %v1568_v48  ;;  %v1561_v53 = vld [vmem:[%s5814_s4 + $0x90] sm:$0xff] }
 0x1cb   :  { %1693 = vmatpush.msrb.mxu1 %v5928_v23 }
 0x1cc   :  { %1585 = vmatpush.msra.mxu0 %v1567_v51 }
 0x1cd   :  { %1860 = vmatpush.msra.mxu1 %v5929_v25 }
 0x1ce   :  { %1586 = vmatpush.msra.mxu0 %v1566_v63 }
 0x1cf   :  { %1861 = vmatpush.msra.mxu1 %v5930_v15 }
 0x1d0   :  { %1587 = vmatpush.msra.mxu0 %v1565_v6 }
 0x1d1   :  { %1862 = vmatpush.msra.mxu1 %v5931_v36 }
 0x1d2   :  { %1588 = vmatpush.msra.mxu0 %v1564_v17 }
 0x1d3   :  { %1863 = vmatpush.msra.mxu1 %v5932_v39 }
 0x1d4   :  { %1589 = vmatpush.msra.mxu0 %v1563_v62 }
 0x1d5   :  { %1864 = vmatpush.msra.mxu1 %v5933_v50 }
 0x1d6   :  { %1590 = vmatpush.msra.mxu0 %v1562_v45 }
 0x1d7   :  { %1865 = vmatpush.msra.mxu1 %v5934_v27 }
 0x1d8   :  { %1591 = vmatpush.msra.mxu0 %v1561_v53 }
 0x1d9   :  { %1866 = vmatpush.msra.mxu1 %v5935_v10 }
 0x1da   :  { %1592 = vmatpush.msra.mxu0 %v1560_v13 }
 0x1db   :  { %1867 = vmatpush.msra.mxu1 %v5936_v14 }
 0x1dc   :  { %1593 = vmatpush.msra.mxu0 %v1559_v55 }
 0x1dd   :  { %1868 = vmatpush.msra.mxu1 %v5937_v1 }
 0x1de   :  { %1658 = vmatpush.msrb.mxu0 %v4594_v42 }
 0x1df   :  { %1869 = vmatpush.msra.mxu1 %v5938_v7 }
 0x1e0   :  { %1659 = vmatpush.msrb.mxu0 %v4600_v18 }
 0x1e1   :  { %1870 = vmatpush.msra.mxu1 %v5939_v34 }
 0x1e2   :  { %1660 = vmatpush.msrb.mxu0 %v4606_v61 }
 0x1e3   :  { %1871 = vmatpush.msra.mxu1 %v5940_v31 }
 0x1e4   :  { %1661 = vmatpush.msrb.mxu0 %v5932_v39 }
 0x1e5   :  { %1872 = vmatpush.msra.mxu1 %v5941_v49 }
 0x1e6   :  { %1662 = vmatpush.msrb.mxu0 %v5933_v50 }
 0x1e7   :  { %1873 = vmatpush.msra.mxu1 %v5942_v37 }
 0x1e8   :  { %1663 = vmatpush.msrb.mxu0 %v5934_v27 }
 0x1e9   :  { %1874 = vmatpush.msra.mxu1 %v5943_v22 }
 0x1ea   :  { %1664 = vmatpush.msrb.mxu0 %v5935_v10 }
 0x1eb   :  { %1875 = vmatpush.msra.mxu1 %v5944_v59 }
 0x1ec   :  { %1665 = vmatpush.msrb.mxu0 %v5936_v14 }
 0x1ee   :  { %1666 = vmatpush.msrb.mxu0 %v5937_v1 }
 0x1f0   :  { %1667 = vmatpush.msrb.mxu0 %v5938_v7 }
 0x1f2   :  { %1668 = vmatpush.msrb.mxu0 %v5939_v34 }
 0x1f4   :  { %1669 = vmatpush.msrb.mxu0 %v5940_v31 }
 0x1f6   :  { %1670 = vmatpush.msrb.mxu0 %v5941_v49 }
 0x1f8   :  { %1671 = vmatpush.msrb.mxu0 %v5942_v37  ;;  %v1552_v37 = vrot.slane %v4498_v24, 6 }
 0x1fa   :  { %1672 = vmatpush.msrb.mxu0 %v5943_v22 }
 0x1fc   :  { %1673 = vmatpush.msrb.mxu0 %v5944_v59 }
 0x227   :  { %v1414_v56 = vpop.f32.mrf.mxu0  ;;  %v1434_v2 = vpop.f32.mrf.mxu1 }
 0x228   :  { %v1481_v20 = vrot.slane %v1414_v56, 6  ;;  %v1482_v30 = vrot.slane %v1434_v2, 6 }
 0x22a   :  { %v1489_v11 = vadd.f32 %v1481_v20, %v4358_v9  ;;  %v1490_v4 = vadd.f32 %v1482_v30, %v4415_v33 }
 0x22c   :  { %v2907_v19 = vmul.f32 -1.442695, %v1489_v11  ;;  %v2908_v57 = vmul.f32 -1.442695, %v1490_v4  ;;  %v4633_v11 = vld [vmem:[%s5813_s3 + $0x1e8] sm:$0xff] }
 0x22d   :  { %v4640_v4 = vld [vmem:[%s5813_s3 + $0x1c8] sm:$0xff] }
 0x22e   :  { %2952 = vpow2.f32 %v2907_v19  ;;  %v1454_v8 = vpop.f32.mrf.mxu2  ;;  %v1474_v60 = vpop.f32.mrf.mxu3  ;;  %v4647_v19 = vld [vmem:[%s5813_s3 + $0x1a8] sm:$0xff] }
 0x22f   :  { %2954 = vpow2.f32 %v2908_v57  ;;  %v1483_v38 = vrot.slane %v1454_v8, 6  ;;  %v1484_v46 = vrot.slane %v1474_v60, 6  ;;  %v4654_v57 = vld [vmem:[%s5813_s3 + $0x188] sm:$0xff] }
 0x230   :  { %v4661_v8 = vld [vmem:[%s5813_s3 + $0x168] sm:$0xff] }
 0x231   :  { %v1491_v40 = vadd.f32 %v1483_v38, %v4430_v43  ;;  %v1492_v35 = vadd.f32 %v1484_v46, %v4479_v5  ;;  %v4668_v38 = vld [vmem:[%s5813_s3 + $0x148] sm:$0xff] }
 0x232   :  { %v4717_v60 = vld [vmem:[%s5813_s3 + $0x68] sm:$0xff] }
 0x233   :  { %v2909_v32 = vmul.f32 -1.442695, %v1491_v40  ;;  %v4675_v40 = vld [vmem:[%s5813_s3 + $0x128] sm:$0xff]  ;;  %5949 = vst [vmem:[#allocation5_spill] sm:$0xff] %v4717_v60 }
 0x234   :  { %v2953_v58 = vpop.eup %2952  ;;  %v4724_v46 = vld [vmem:[%s5813_s3 + $0x48] sm:$0xff] }
 0x235   :  { %v2955_v54 = vpop.eup %2954  ;;  %v1502_v29 = vadd.f32 1.0, %v2953_v58  ;;  %2956 = vpow2.f32 %v2909_v32  ;;  %v4682_v32 = vld [vmem:[%s5813_s3 + $0x108] sm:$0xff]  ;;  %5950 = vst [vmem:[#allocation6_spill] sm:$0xff] %v4724_v46 }
 0x236   :  { %v1503_v47 = vadd.f32 1.0, %v2955_v54  ;;  %v4689_v58 = vld [vmem:[%s5813_s3 + $0xe8] sm:$0xff] }
 0x237   :  { %2958 = vrcp.f32 %v1502_v29  ;;  %v1516_v36 = vand.u32 2147483648, %v1502_v29  ;;  %v1514_v27 = vand.u32 2147483647, %v1502_v29  ;;  %vm1510_vm5 = vweird.f32 %v1502_v29  ;;  %5945 = vst [vmem:[#allocation8_spill] sm:$0xff] %v4689_v58  ;;  %v4696_v54 = vld [vmem:[%s5813_s3 + $0xc8] sm:$0xff] }
 0x238   :  { %2960 = vrcp.f32 %v1503_v47  ;;  %v1531_v39 = vand.u32 2147483648, %v1503_v47  ;;  %v1529_v14 = vand.u32 2147483647, %v1503_v47  ;;  %vm1525_vm6 = vweird.f32 %v1503_v47  ;;  %5946 = vst [vmem:[#allocation21_spill] sm:$0xff] %v4696_v54 }
 0x239   :  { %v1517_v31 = vor.u32 1.1754944e-38, %v1516_v36  ;;  %vm1515_vm9 = vcmp.eq.f32.partialorder %v1514_v27, 8.507059e+37  ;;  %v4787_v36 = vld [vmem:[%s5813_s3 + $0x100] sm:$0xff] }
 0x23a   :  { %v1532_v22 = vor.u32 1.1754944e-38, %v1531_v39  ;;  %vm1530_vm10 = vcmp.eq.f32.partialorder %v1529_v14, 8.507059e+37  ;;  %v4793_v39 = vld [vmem:[%s5813_s3 + $0xe0] sm:$0xff] }
 0x23b   :  { %v2957_v44 = vpop.eup %2956  ;;  %v4805_v27 = vld [vmem:[%s5813_s3 + $0xa0] sm:$0xff] }
 0x23c   :  { %v1504_v52 = vadd.f32 1.0, %v2957_v44  ;;  %v4731_v44 = vld [vmem:[%s5813_s3 + $0x28] sm:$0xff]  ;;  %v4817_v14 = vld [vmem:[%s5813_s3 + $0x60] sm:$0xff] }
 0x23d   :  { %v2959_v16 = vpop.eup %2958  ;;  %5951 = vst [vmem:[#allocation7_spill] sm:$0xff] %v4731_v44 }
 0x23e   :  { %v2961_v12 = vpop.eup %2960  ;;  %v1506_v21 = vmul.f32 %v2959_v16, %v1502_v29  ;;  %2962 = vrcp.f32 %v1504_v52  ;;  %vm1511_vm3 = vweird.f32 %v2959_v16  ;;  %v1546_v53 = vand.u32 2147483648, %v1504_v52  ;;  %v4703_v29 = vld [vmem:[%s5813_s3 + $0xa8] sm:$0xff] }
 0x23f   :  { %v1521_v23 = vmul.f32 %v2961_v12, %v1503_v47  ;;  %2964 = vtanh.f32 %v1492_v35  ;;  %vm1526_vm4 = vweird.f32 %v2961_v12  ;;  %vm1512_vm7 = vmor %vm1510_vm5, %vm1511_vm3  ;;  %vm1540_vm12 = vweird.f32 %v1504_v52  ;;  %5947 = vst [vmem:[#allocation3_spill] sm:$0xff] %v4703_v29  ;;  %v4710_v47 = vld [vmem:[%s5813_s3 + $0x88] sm:$0xff]  ;;  %v4751_v35 = vld [vmem:[%s5813_s3 + $0x1c0] sm:$0xff] }
 0x240   :  { %v1507_v25 = vsub.f32 1.0, %v1506_v21  ;;  %vm1527_vm8 = vmor %vm1525_vm6, %vm1526_vm4  ;;  %v1544_v24 = vand.u32 2147483647, %v1504_v52  ;;  %v1547_v55 = vor.u32 1.1754944e-38, %v1546_v53  ;;  %5948 = vst [vmem:[#allocation4_spill] sm:$0xff] %v4710_v47  ;;  %v4763_v21 = vld [vmem:[%s5813_s3 + $0x180] sm:$0xff] }
 0x241   :  { %v1522_v15 = vsub.f32 1.0, %v1521_v23  ;;  %v4769_v23 = vld [vmem:[%s5813_s3 + $0x160] sm:$0xff]  ;;  %v1781_v53 = vld [vmem:[%s5814_s4 + $0x108] sm:$0xff] }
 0x242   :  { %v1508_v50 = vmul.f32 %v2959_v16, %v1507_v25  ;;  %vm1545_vm14 = vcmp.eq.f32.partialorder %v1544_v24, 8.507059e+37  ;;  %v4775_v25 = vld [vmem:[%s5813_s3 + $0x140] sm:$0xff] }
 0x243   :  { %v1523_v10 = vmul.f32 %v2961_v12, %v1522_v15  ;;  %v4781_v15 = vld [vmem:[%s5813_s3 + $0x120] sm:$0xff] }
 0x244   :  { %v2963_v1 = vpop.eup %2962  ;;  %v1509_v7 = vadd.f32 %v2959_v16, %v1508_v50  ;;  %v4799_v50 = vld [vmem:[%s5813_s3 + $0xc0] sm:$0xff] }
 0x245   :  { %v1536_v34 = vmul.f32 %v2963_v1, %v1504_v52  ;;  %v1524_v49 = vadd.f32 %v2961_v12, %v1523_v10  ;;  %v2965_v41 = vpop.eup %2964  ;;  %vm1541_vm11 = vweird.f32 %v2963_v1  ;;  %v4738_v52 = vld [vmem:[%s5813_s3 + $0x8] sm:$0xff]  ;;  %v4811_v10 = vld [vmem:[%s5813_s3 + $0x80] sm:$0xff] }
 0x246   :  { %v1513_v59 = vsel %vm1512_vm7, %v2959_v16, %v1509_v7  ;;  %vm1542_vm13 = vmor %vm1540_vm12, %vm1541_vm11  ;;  %5952 = vst [vmem:[#allocation9_spill] sm:$0xff] %v4738_v52  ;;  %v4745_v16 = vld [vmem:[%s5813_s3 + $0x1e0] sm:$0xff] }
 0x247   :  { %v1537_v28 = vsub.f32 1.0, %v1536_v34  ;;  %v1518_v3 = vsel %vm1515_vm9, %v1517_v31, %v1513_v59  ;;  %v1528_v48 = vsel %vm1527_vm8, %v2961_v12, %v1524_v49  ;;  %v4757_v12 = vld [vmem:[%s5813_s3 + $0x1a0] sm:$0xff]  ;;  %v1795_v31 = vld [vmem:[%s5814_s4 + $0x178] sm:$0xff]  ;;  %v1794_v49 = vld [vmem:[%s5814_s4 + $0x170] sm:$0xff] }
 0x248   :  { %v1533_v51 = vsel %vm1530_vm10, %v1532_v22, %v1528_v48  ;;  %v1555_v63 = vmul.f32 %v2965_v41, %v1518_v3  ;;  %v4829_v7 = vld [vmem:[%s5813_s3 + $0x20] sm:$0xff]  ;;  %1799 = vmatpush.msrb.mxu2 %v1795_v31  ;;  %v1791_v59 = vld [vmem:[%s5814_s4 + $0x158] sm:$0xff]  ;;  %v1790_v41 = vld [vmem:[%s5814_s4 + $0x150] sm:$0xff] }
 0x249   :  { %v1538_v6 = vmul.f32 %v2963_v1, %v1537_v28  ;;  %v1554_v17 = vmul.f32 %v1552_v37, %v1533_v51  ;;  %v4835_v34 = vld [vmem:[%s5813_s3] sm:$0xff]  ;;  %v1793_v37 = vld [vmem:[%s5814_s4 + $0x168] sm:$0xff]  ;;  %v1787_v48 = vld [vmem:[%s5814_s4 + $0x138] sm:$0xff] }
 0x24a   :  { %1800 = vmatpush.msrb.mxu2 %v1794_v49  ;;  %v1792_v22 = vld [vmem:[%s5814_s4 + $0x160] sm:$0xff]  ;;  %v1789_v28 = vld [vmem:[%s5814_s4 + $0x148] sm:$0xff]  ;;  %v1786_v51 = vld [vmem:[%s5814_s4 + $0x130] sm:$0xff] }
 0x24b   :  { %v4627_v62 = vadd.f32 %v1555_v63, %v1554_v17  ;;  %v1539_v45 = vadd.f32 %v2963_v1, %v1538_v6  ;;  %v1788_v3 = vld [vmem:[%s5814_s4 + $0x140] sm:$0xff]  ;;  %v1785_v63 = vld [vmem:[%s5814_s4 + $0x128] sm:$0xff]  ;;  %v1783_v17 = vld [vmem:[%s5814_s4 + $0x118] sm:$0xff] }
 0x24c   :  { %1801 = vmatpush.msrb.mxu2 %v1793_v37  ;;  %v1784_v6 = vld [vmem:[%s5814_s4 + $0x120] sm:$0xff] }
 0x24d   :  { %2966 = vtanh.f32 %v4627_v62  ;;  %v1543_v13 = vsel %vm1542_vm13, %v2963_v1, %v1539_v45  ;;  %v4823_v1 = vld [vmem:[%s5813_s3 + $0x40] sm:$0xff]  ;;  %v1782_v45 = vld [vmem:[%s5814_s4 + $0x110] sm:$0xff] }
 0x24e   :  { %v1548_v2 = vsel %vm1545_vm14, %v1547_v55, %v1543_v13  ;;  %1802 = vmatpush.msrb.mxu2 %v1792_v22  ;;  %v1780_v24 = vld [vmem:[%s5814_s4 + $0x100] sm:$0xff]  ;;  %v1615_v13 = vpop.f32.mrf.mxu1  ;;  %v4909_v22 = vld [vmem:[%s5813_s3 + $0x198] sm:$0xff] }
 0x24f   :  { %5957 = vst [vmem:[#allocation14_spill] sm:$0xff] %v4909_v22 }
 0x250   :  { %1803 = vmatpush.msrb.mxu2 %v1791_v59 }
 0x252   :  { %1804 = vmatpush.msrb.mxu2 %v1790_v41 }
 0x253   :  { %v2967_v56 = vpop.eup %2966 }
 0x254   :  { %v1558_v20 = vmul.f32 %v2967_v56, %v1548_v2  ;;  %1805 = vmatpush.msrb.mxu2 %v1789_v28  ;;  %v4891_v2 = vld [vmem:[%s5813_s3 + $0x1f8] sm:$0xff] }
 0x255   :  { %5954 = vst [vmem:[#allocation11_spill] sm:$0xff] %v4891_v2 }
 0x256   :  { %v1576_v30 = vrot.slane %v1558_v20, 2  ;;  %1806 = vmatpush.msrb.mxu2 %v1788_v3  ;;  %v4897_v20 = vld [vmem:[%s5813_s3 + $0x1d8] sm:$0xff] }
 0x257   :  { %5955 = vst [vmem:[#allocation12_spill] sm:$0xff] %v4897_v20 }
 0x258   :  { %1594 = vmatmul.f32.vlgmr.msra.gmra.mxu0 %v1576_v30  ;;  %1634 = vmatmul.f32.vlgmr.msra.gmra.mxu2 %v1576_v30 }
 0x259   :  { %1654 = vmatmul.f32.vlgmr.msra.gmra.mxu3 %v1576_v30  ;;  %1694 = vmatmul.f32.vlgmr.msrb.gmra.mxu1 %v1576_v30 }
 0x25a   :  { %1840 = vmatpush.msra.mxu0 %v4633_v11  ;;  %2042 = vmatpush.msrb.mxu1 %v4633_v11 }
 0x25b   :  { %1807 = vmatpush.msrb.mxu2 %v1787_v48  ;;  %v4916_v48 = vld [vmem:[%s5813_s3 + $0x178] sm:$0xff] }
 0x25c   :  { %1841 = vmatpush.msra.mxu0 %v4640_v4  ;;  %2043 = vmatpush.msrb.mxu1 %v4640_v4  ;;  %5958 = vst [vmem:[#allocation15_spill] sm:$0xff] %v4916_v48 }
 0x25d   :  { %1808 = vmatpush.msrb.mxu2 %v1786_v51 }
 0x25e   :  { %1842 = vmatpush.msra.mxu0 %v4647_v19  ;;  %2044 = vmatpush.msrb.mxu1 %v4647_v19 }
 0x25f   :  { %1809 = vmatpush.msrb.mxu2 %v1785_v63 }
 0x260   :  { %1674 = vmatmul.f32.vlgmr.msrb.gmra.mxu0 %v1576_v30  ;;  %2045 = vmatpush.msrb.mxu1 %v4654_v57  ;;  %v4903_v30 = vld [vmem:[%s5813_s3 + $0x1b8] sm:$0xff] }
 0x261   :  { %1843 = vmatpush.msra.mxu0 %v4654_v57  ;;  %1810 = vmatpush.msrb.mxu2 %v1784_v6  ;;  %5956 = vst [vmem:[#allocation13_spill] sm:$0xff] %v4903_v30 }
 0x262   :  { %2046 = vmatpush.msrb.mxu1 %v4661_v8 }
 0x263   :  { %1844 = vmatpush.msra.mxu0 %v4661_v8  ;;  %1811 = vmatpush.msrb.mxu2 %v1783_v17  ;;  %v4924_v17 = vld [vmem:[%s5813_s3 + $0x158] sm:$0xff] }
 0x264   :  { %2047 = vmatpush.msrb.mxu1 %v4668_v38  ;;  %5959 = vst [vmem:[#allocation16_spill] sm:$0xff] %v4924_v17 }
 0x265   :  { %1845 = vmatpush.msra.mxu0 %v4668_v38  ;;  %1812 = vmatpush.msrb.mxu2 %v1782_v45 }
 0x266   :  { %2048 = vmatpush.msrb.mxu1 %v4675_v40 }
 0x267   :  { %1846 = vmatpush.msra.mxu0 %v4675_v40  ;;  %1813 = vmatpush.msrb.mxu2 %v1781_v53 }
 0x268   :  { %2049 = vmatpush.msrb.mxu1 %v4682_v32 }
 0x269   :  { %1847 = vmatpush.msra.mxu0 %v4682_v32  ;;  %1814 = vmatpush.msrb.mxu2 %v1780_v24  ;;  %v4930_v24 = vld [vmem:[%s5813_s3 + $0x138] sm:$0xff] }
 0x26a   :  { %2050 = vmatpush.msrb.mxu1 %v4689_v58  ;;  %5960 = vst [vmem:[#allocation17_spill] sm:$0xff] %v4930_v24 }
 0x26b   :  { %1848 = vmatpush.msra.mxu0 %v4689_v58  ;;  %1880 = vmatpush.msra.mxu2 %v4891_v2 }
 0x26c   :  { %2051 = vmatpush.msrb.mxu1 %v4696_v54 }
 0x26d   :  { %1849 = vmatpush.msra.mxu0 %v4696_v54  ;;  %1881 = vmatpush.msra.mxu2 %v4897_v20 }
 0x26e   :  { %2052 = vmatpush.msrb.mxu1 %v4703_v29 }
 0x26f   :  { %1850 = vmatpush.msra.mxu0 %v4703_v29  ;;  %1882 = vmatpush.msra.mxu2 %v4903_v30 }
 0x270   :  { %2053 = vmatpush.msrb.mxu1 %v4710_v47 }
 0x271   :  { %1851 = vmatpush.msra.mxu0 %v4710_v47  ;;  %1883 = vmatpush.msra.mxu2 %v4909_v22 }
 0x272   :  { %2054 = vmatpush.msrb.mxu1 %v4717_v60 }
 0x273   :  { %1852 = vmatpush.msra.mxu0 %v4717_v60  ;;  %1884 = vmatpush.msra.mxu2 %v4916_v48 }
 0x274   :  { %2055 = vmatpush.msrb.mxu1 %v4724_v46 }
 0x275   :  { %1853 = vmatpush.msra.mxu0 %v4724_v46  ;;  %1885 = vmatpush.msra.mxu2 %v4924_v17 }
 0x276   :  { %2056 = vmatpush.msrb.mxu1 %v4731_v44 }
 0x277   :  { %1854 = vmatpush.msra.mxu0 %v4731_v44  ;;  %1886 = vmatpush.msra.mxu2 %v4930_v24 }
 0x278   :  { %2057 = vmatpush.msrb.mxu1 %v4738_v52 }
 0x279   :  { %1855 = vmatpush.msra.mxu0 %v4738_v52 }
 0x27b   :  { %2022 = vmatpush.msrb.mxu0 %v4745_v16 }
 0x27d   :  { %2023 = vmatpush.msrb.mxu0 %v4751_v35 }
 0x27f   :  { %2024 = vmatpush.msrb.mxu0 %v4757_v12 }
 0x281   :  { %2025 = vmatpush.msrb.mxu0 %v4763_v21 }
 0x283   :  { %2026 = vmatpush.msrb.mxu0 %v4769_v23 }
 0x285   :  { %2027 = vmatpush.msrb.mxu0 %v4775_v25 }
 0x287   :  { %2028 = vmatpush.msrb.mxu0 %v4781_v15 }
 0x289   :  { %2029 = vmatpush.msrb.mxu0 %v4787_v36 }
 0x28b   :  { %2030 = vmatpush.msrb.mxu0 %v4793_v39 }
 0x28d   :  { %2031 = vmatpush.msrb.mxu0 %v4799_v50 }
 0x28f   :  { %2032 = vmatpush.msrb.mxu0 %v4805_v27 }
 0x291   :  { %2033 = vmatpush.msrb.mxu0 %v4811_v10 }
 0x293   :  { %2034 = vmatpush.msrb.mxu0 %v4817_v14 }
 0x295   :  { %2035 = vmatpush.msrb.mxu0 %v4823_v1 }
 0x297   :  { %2036 = vmatpush.msrb.mxu0 %v4829_v7 }
 0x299   :  { %2037 = vmatpush.msrb.mxu0 %v4835_v34 }
 0x2d5   :  { %v1595_v55 = vpop.f32.mrf.mxu0 }
 0x2d6   :  { %v4886_v56 = vadd.f32 %v1615_v13, %v1595_v55  ;;  %v4936_v13 = vld [vmem:[%s5813_s3 + $0x118] sm:$0xff] }
 0x2d7   :  { %5961 = vst [vmem:[#allocation18_spill] sm:$0xff] %v4936_v13  ;;  %1887 = vmatpush.msra.mxu2 %v4936_v13  ;;  %v4942_v55 = vld [vmem:[%s5813_s3 + $0xf8] sm:$0xff] }
 0x2d8   :  { %5953 = vst [vmem:[#allocation10_spill] sm:$0xff] %v4886_v56 }
 0x2d9   :  { %5962 = vst [vmem:[#allocation19_spill] sm:$0xff] %v4942_v55  ;;  %1888 = vmatpush.msra.mxu2 %v4942_v55 }
 0x2db   :  { %v1635_v31 = vpop.f32.mrf.mxu2 }
 0x2dc   :  { %v1702_v49 = vrot.slane %v1635_v31, 4  ;;  %v1655_v37 = vpop.f32.mrf.mxu3 }
 0x2dd   :  { %v1703_v59 = vrot.slane %v1655_v37, 4  ;;  %v1675_v41 = vpop.f32.mrf.mxu0 }
 0x2de   :  { %v1710_v28 = vadd.f32 %v1702_v49, %v4358_v9  ;;  %v1704_v3 = vrot.slane %v1675_v41, 4  ;;  %v4948_v49 = vld [vmem:[%s5813_s3 + $0xd8] sm:$0xff] }
 0x2df   :  { %v1711_v51 = vadd.f32 %v1703_v59, %v4415_v33  ;;  %5963 = vst [vmem:[#allocation29_spill] sm:$0xff] %v4948_v49  ;;  %1889 = vmatpush.msra.mxu2 %v4948_v49 }
 0x2e0   :  { %v2910_v63 = vmul.f32 -1.442695, %v1710_v28  ;;  %v1712_v6 = vadd.f32 %v1704_v3, %v4430_v43  ;;  %v1695_v28 = vpop.f32.mrf.mxu1 }
 0x2e1   :  { %v2911_v45 = vmul.f32 -1.442695, %v1711_v51  ;;  %v4954_v51 = vld [vmem:[%s5813_s3 + $0xb8] sm:$0xff] }
 0x2e2   :  { %2968 = vpow2.f32 %v2910_v63  ;;  %v2912_v53 = vmul.f32 -1.442695, %v1712_v6  ;;  %5964 = vst [vmem:[#allocation30_spill] sm:$0xff] %v4954_v51  ;;  %1890 = vmatpush.msra.mxu2 %v4954_v51  ;;  %v4960_v63 = vld [vmem:[%s5813_s3 + $0x98] sm:$0xff]  ;;  %v1705_v6 = vrot.slane %v1695_v28, 4 }
 0x2e3   :  { %2970 = vpow2.f32 %v2911_v45  ;;  %5965 = vst [vmem:[#allocation31_spill] sm:$0xff] %v4960_v63  ;;  %v4985_v51 = vld [vmem:[%s5813_s3 + $0x18] sm:$0xff] }
 0x2e4   :  { %2972 = vpow2.f32 %v2912_v53  ;;  %1891 = vmatpush.msra.mxu2 %v4960_v63  ;;  %v4966_v53 = vld [vmem:[%s5813_s3 + $0x78] sm:$0xff]  ;;  %v1713_v0 = vadd.f32 %v1705_v6, %v4479_v5  ;;  %5969 = vst [vmem:[#allocation35_spill] sm:$0xff] %v4985_v51 }
 0x2e5   :  { %5966 = vst [vmem:[#allocation32_spill] sm:$0xff] %v4966_v53 }
 0x2e6   :  { %1892 = vmatpush.msra.mxu2 %v4966_v53 }
 0x2e8   :  { %v2969_v31 = vpop.eup %2968 }
 0x2e9   :  { %v2971_v37 = vpop.eup %2970  ;;  %v1723_v59 = vadd.f32 1.0, %v2969_v31  ;;  %v4972_v31 = vld [vmem:[%s5813_s3 + $0x58] sm:$0xff] }
 0x2ea   :  { %v2973_v41 = vpop.eup %2972  ;;  %v1724_v3 = vadd.f32 1.0, %v2971_v37  ;;  %5967 = vst [vmem:[#allocation33_spill] sm:$0xff] %v4972_v31  ;;  %1893 = vmatpush.msra.mxu2 %v4972_v31 }
 0x2eb   :  { %2974 = vrcp.f32 %v1723_v59  ;;  %v1725_v45 = vadd.f32 1.0, %v2973_v41  ;;  %v1735_v6 = vand.u32 2147483647, %v1723_v59  ;;  %v1737_v5 = vand.u32 2147483648, %v1723_v59 }
 0x2ec   :  { %2976 = vrcp.f32 %v1724_v3  ;;  %1894 = vmatpush.msra.mxu2 %v4979_v26  ;;  %v1752_v13 = vand.u32 2147483648, %v1724_v3  ;;  %v1750_v26 = vand.u32 2147483647, %v1724_v3  ;;  %vm1731_vm1 = vweird.f32 %v1723_v59 }
 0x2ed   :  { %2978 = vrcp.f32 %v1725_v45  ;;  %v1738_v9 = vor.u32 1.1754944e-38, %v1737_v5  ;;  %vm1746_vm3 = vweird.f32 %v1724_v3  ;;  %vm1736_vm4 = vcmp.eq.f32.partialorder %v1735_v6, 8.507059e+37  ;;  %v5072_v6 = vld [vmem:[%s5813_s3 + $0x50] sm:$0xff] }
 0x2ee   :  { %1895 = vmatpush.msra.mxu2 %v4985_v51  ;;  %2980 = vtanh.f32 %v1713_v0  ;;  %v1753_v0 = vor.u32 1.1754944e-38, %v1752_v13  ;;  %vm1751_vm6 = vcmp.eq.f32.partialorder %v1750_v26, 8.507059e+37  ;;  %v1767_v5 = vand.u32 2147483648, %v1725_v45 }
 0x2ef   :  { %vm1761_vm8 = vweird.f32 %v1725_v45 }
 0x2f1   :  { %v2975_v37 = vpop.eup %2974 }
 0x2f2   :  { %v2977_v28 = vpop.eup %2976  ;;  %v1727_v41 = vmul.f32 %v2975_v37, %v1723_v59  ;;  %vm1732_vm15 = vweird.f32 %v2975_v37 }
 0x2f3   :  { %v1742_v53 = vmul.f32 %v2977_v28, %v1724_v3  ;;  %v2979_v31 = vpop.eup %2978  ;;  %vm1747_vm0 = vweird.f32 %v2977_v28  ;;  %vm1733_vm2 = vmor %vm1731_vm1, %vm1732_vm15  ;;  %v1768_v3 = vor.u32 1.1754944e-38, %v1767_v5  ;;  %v1992_v5 = vld [vmem:[%s5814_s4 + $0x1d0] sm:$0xff] }
 0x2f4   :  { %v1728_v63 = vsub.f32 1.0, %v1727_v41  ;;  %v1757_v24 = vmul.f32 %v2979_v31, %v1725_v45  ;;  %vm1748_vm5 = vmor %vm1746_vm3, %vm1747_vm0  ;;  %v2981_v56 = vpop.eup %2980  ;;  %vm1762_vm7 = vweird.f32 %v2979_v31 }
 0x2f5   :  { %v1743_v49 = vsub.f32 1.0, %v1742_v53  ;;  %vm1763_vm9 = vmor %vm1761_vm8, %vm1762_vm7 }
 0x2f6   :  { %v1729_v55 = vmul.f32 %v2975_v37, %v1728_v63  ;;  %v1758_v48 = vsub.f32 1.0, %v1757_v24  ;;  %v1773_v63 = vrot.slane %v4627_v62, 6 }
 0x2f7   :  { %v1744_v17 = vmul.f32 %v2977_v28, %v1743_v49 }
 0x2f8   :  { %v1730_v41 = vadd.f32 %v2975_v37, %v1729_v55  ;;  %v1759_v33 = vmul.f32 %v2979_v31, %v1758_v48  ;;  %v5030_v48 = vld [vmem:[%s5813_s3 + $0x110] sm:$0xff] }
 0x2f9   :  { %v1745_v22 = vadd.f32 %v2977_v28, %v1744_v17  ;;  %v1765_v17 = vand.u32 2147483647, %v1725_v45  ;;  %v5044_v45 = vld [vmem:[%s5813_s3 + $0xd0] sm:$0xff] }
 0x2fa   :  { %v1734_v51 = vsel %vm1733_vm2, %v2975_v37, %v1730_v41  ;;  %v1760_v24 = vadd.f32 %v2979_v31, %v1759_v33  ;;  %v5002_v33 = vld [vmem:[%s5813_s3 + $0x190] sm:$0xff] }
 0x2fb   :  { %v1739_v53 = vsel %vm1736_vm4, %v1738_v9, %v1734_v51  ;;  %v1749_v30 = vsel %vm1748_vm5, %v2977_v28, %v1745_v22  ;;  %vm1766_vm10 = vcmp.eq.f32.partialorder %v1765_v17, 8.507059e+37  ;;  %v5023_v22 = vld [vmem:[%s5813_s3 + $0x130] sm:$0xff]  ;;  %v1991_v17 = vld [vmem:[%s5814_s4 + $0x1c8] sm:$0xff] }
 0x2fc   :  { %v1776_v49 = vmul.f32 %v2981_v56, %v1739_v53  ;;  %v1754_v43 = vsel %vm1751_vm6, %v1753_v0, %v1749_v30  ;;  %v1764_v13 = vsel %vm1763_vm9, %v2979_v31, %v1760_v24  ;;  %v5016_v30 = vld [vmem:[%s5813_s3 + $0x150] sm:$0xff]  ;;  %v1993_v24 = vld [vmem:[%s5814_s4 + $0x1d8] sm:$0xff] }
 0x2fd   :  { %v1775_v55 = vmul.f32 %v1773_v63, %v1754_v43  ;;  %v1769_v62 = vsel %vm1766_vm10, %v1768_v3, %v1764_v13  ;;  %v5009_v43 = vld [vmem:[%s5813_s3 + $0x170] sm:$0xff]  ;;  %v1997_v63 = vld [vmem:[%s5814_s4 + $0x1f8] sm:$0xff]  ;;  %v1990_v13 = vld [vmem:[%s5814_s4 + $0x1c0] sm:$0xff] }
 0x2fe   :  { %v5037_v51 = vld [vmem:[%s5813_s3 + $0xf0] sm:$0xff]  ;;  %2001 = vmatpush.msra.mxu3 %v1997_v63  ;;  %v1989_v3 = vld [vmem:[%s5814_s4 + $0x1b8] sm:$0xff] }
 0x2ff   :  { %v4989_v59 = vadd.f32 %v1776_v49, %v1775_v55  ;;  %v5051_v31 = vld [vmem:[%s5813_s3 + $0xb0] sm:$0xff]  ;;  %v1995_v49 = vld [vmem:[%s5814_s4 + $0x1e8] sm:$0xff]  ;;  %v1994_v55 = vld [vmem:[%s5814_s4 + $0x1e0] sm:$0xff] }
 0x300   :  { %v5058_v37 = vld [vmem:[%s5813_s3 + $0x90] sm:$0xff] }
 0x301   :  { %2982 = vtanh.f32 %v4989_v59  ;;  %v5065_v28 = vld [vmem:[%s5813_s3 + $0x70] sm:$0xff] }
 0x302   :  { %v5079_v41 = vld [vmem:[%s5813_s3 + $0x30] sm:$0xff] }
 0x303   :  { %v5086_v0 = vld [vmem:[%s5813_s3 + $0x10] sm:$0xff] }
 0x304   :  { %v1996_v53 = vld [vmem:[%s5814_s4 + $0x1f0] sm:$0xff] }
 0x305   :  { %2002 = vmatpush.msra.mxu3 %v1996_v53  ;;  %v1984_v63 = vld [vmem:[%s5814_s4 + $0x190] sm:$0xff]  ;;  %v1983_v53 = vld [vmem:[%s5814_s4 + $0x188] sm:$0xff] }
 0x307   :  { %v2983_v9 = vpop.eup %2982  ;;  %2003 = vmatpush.msra.mxu3 %v1995_v49  ;;  %v1982_v49 = vld [vmem:[%s5814_s4 + $0x180] sm:$0xff] }
 0x308   :  { %v1779_v26 = vmul.f32 %v2983_v9, %v1769_v62  ;;  %v1988_v9 = vld [vmem:[%s5814_s4 + $0x1b0] sm:$0xff]  ;;  %v1987_v62 = vld [vmem:[%s5814_s4 + $0x1a8] sm:$0xff] }
 0x309   :  { %2004 = vmatpush.msra.mxu3 %v1994_v55 }
 0x30a   :  { %v1797_v56 = vrot.slane %v1779_v26, 4  ;;  %v1986_v26 = vld [vmem:[%s5814_s4 + $0x1a0] sm:$0xff] }
 0x30b   :  { %2005 = vmatpush.msra.mxu3 %v1993_v24 }
 0x30c   :  { %1815 = vmatmul.f32.vlgmr.msrb.gmra.mxu2 %v1797_v56  ;;  %1836 = vmatmul.f32.vlgmr.msrb.gmra.mxu3 %v1797_v56 }
 0x30d   :  { %1856 = vmatmul.f32.vlgmr.msra.gmra.mxu0 %v1797_v56  ;;  %1876 = vmatmul.f32.vlgmr.msra.gmra.mxu1 %v1797_v56 }
 0x30e   :  { %2062 = vmatpush.msrb.mxu2 %v4594_v42  ;;  %2209 = vmatpush.msra.mxu1 %v4745_v16 }
 0x30f   :  { %2006 = vmatpush.msra.mxu3 %v1992_v5 }
 0x310   :  { %2063 = vmatpush.msrb.mxu2 %v4600_v18  ;;  %2210 = vmatpush.msra.mxu1 %v4751_v35 }
 0x311   :  { %2007 = vmatpush.msra.mxu3 %v1991_v17 }
 0x312   :  { %2064 = vmatpush.msrb.mxu2 %v4606_v61  ;;  %2211 = vmatpush.msra.mxu1 %v4757_v12 }
 0x313   :  { %2008 = vmatpush.msra.mxu3 %v1990_v13  ;;  %v5970_v13 = vld [vmem:[#allocation25_spill] sm:$0xff] }
 0x314   :  { %1896 = vmatmul.f32.vlgmr.msra.gmra.mxu2 %v1797_v56  ;;  %2212 = vmatpush.msra.mxu1 %v4763_v21  ;;  %v1985_v56 = vld [vmem:[%s5814_s4 + $0x198] sm:$0xff] }
 0x315   :  { %2065 = vmatpush.msrb.mxu2 %v5002_v33  ;;  %2009 = vmatpush.msra.mxu3 %v1989_v3 }
 0x316   :  { %2213 = vmatpush.msra.mxu1 %v4769_v23 }
 0x317   :  { %2066 = vmatpush.msrb.mxu2 %v5009_v43  ;;  %2010 = vmatpush.msra.mxu3 %v1988_v9  ;;  %v5971_v9 = vld [vmem:[#allocation26_spill] sm:$0xff] }
 0x318   :  { %2214 = vmatpush.msra.mxu1 %v4775_v25 }
 0x319   :  { %2067 = vmatpush.msrb.mxu2 %v5016_v30  ;;  %2011 = vmatpush.msra.mxu3 %v1987_v62 }
 0x31a   :  { %2215 = vmatpush.msra.mxu1 %v4781_v15 }
 0x31b   :  { %2068 = vmatpush.msrb.mxu2 %v5023_v22  ;;  %2012 = vmatpush.msra.mxu3 %v1986_v26  ;;  %v5972_v26 = vld [vmem:[#allocation13_spill] sm:$0xff] }
 0x31c   :  { %2216 = vmatpush.msra.mxu1 %v4787_v36 }
 0x31d   :  { %2069 = vmatpush.msrb.mxu2 %v5030_v48  ;;  %2013 = vmatpush.msra.mxu3 %v1985_v56 }
 0x31e   :  { %2217 = vmatpush.msra.mxu1 %v4793_v39 }
 0x31f   :  { %2070 = vmatpush.msrb.mxu2 %v5037_v51  ;;  %2014 = vmatpush.msra.mxu3 %v1984_v63 }
 0x320   :  { %2218 = vmatpush.msra.mxu1 %v4799_v50 }
 0x321   :  { %2071 = vmatpush.msrb.mxu2 %v5044_v45  ;;  %2015 = vmatpush.msra.mxu3 %v1983_v53 }
 0x322   :  { %2219 = vmatpush.msra.mxu1 %v4805_v27 }
 0x323   :  { %2072 = vmatpush.msrb.mxu2 %v5051_v31  ;;  %2016 = vmatpush.msra.mxu3 %v1982_v49 }
 0x324   :  { %2220 = vmatpush.msra.mxu1 %v4811_v10 }
 0x325   :  { %2073 = vmatpush.msrb.mxu2 %v5058_v37  ;;  %2082 = vmatpush.msrb.mxu3 %v4891_v2  ;;  %v5988_v2 = vld [vmem:[#allocation34_spill] sm:$0xff] }
 0x326   :  { %2221 = vmatpush.msra.mxu1 %v4817_v14 }
 0x327   :  { %2074 = vmatpush.msrb.mxu2 %v5065_v28  ;;  %2083 = vmatpush.msrb.mxu3 %v4897_v20  ;;  %v5977_v20 = vld [vmem:[#allocation15_spill] sm:$0xff] }
 0x328   :  { %2222 = vmatpush.msra.mxu1 %v4823_v1 }
 0x329   :  { %2075 = vmatpush.msrb.mxu2 %v5072_v6  ;;  %2084 = vmatpush.msrb.mxu3 %v5972_v26 }
 0x32a   :  { %2223 = vmatpush.msra.mxu1 %v4829_v7 }
 0x32b   :  { %2076 = vmatpush.msrb.mxu2 %v5079_v41 }
 0x32c   :  { %2224 = vmatpush.msra.mxu1 %v4835_v34 }
 0x32d   :  { %2077 = vmatpush.msrb.mxu2 %v5086_v0 }
 0x32f   :  { %2229 = vmatpush.msra.mxu2 %v4633_v11 }
 0x331   :  { %2230 = vmatpush.msra.mxu2 %v4640_v4 }
 0x333   :  { %2231 = vmatpush.msra.mxu2 %v4647_v19 }
 0x335   :  { %2232 = vmatpush.msra.mxu2 %v4654_v57 }
 0x337   :  { %2233 = vmatpush.msra.mxu2 %v4661_v8 }
 0x339   :  { %2234 = vmatpush.msra.mxu2 %v4668_v38 }
 0x33b   :  { %2235 = vmatpush.msra.mxu2 %v4675_v40 }
 0x33d   :  { %2236 = vmatpush.msra.mxu2 %v4682_v32 }
 0x33f   :  { %2237 = vmatpush.msra.mxu2 %v4689_v58 }
 0x341   :  { %2238 = vmatpush.msra.mxu2 %v4696_v54 }
 0x343   :  { %2239 = vmatpush.msra.mxu2 %v4703_v29 }
 0x345   :  { %2240 = vmatpush.msra.mxu2 %v4710_v47 }
 0x347   :  { %2241 = vmatpush.msra.mxu2 %v4717_v60  ;;  %v5975_v60 = vld [vmem:[#allocation14_spill] sm:$0xff] }
 0x348   :  { %2085 = vmatpush.msrb.mxu3 %v5975_v60 }
 0x349   :  { %2242 = vmatpush.msra.mxu2 %v4724_v46 }
 0x34a   :  { %2086 = vmatpush.msrb.mxu3 %v5977_v20 }
 0x34b   :  { %2243 = vmatpush.msra.mxu2 %v4731_v44  ;;  %v5973_v44 = vld [vmem:[#allocation10_spill] sm:$0xff] }
 0x34d   :  { %2244 = vmatpush.msra.mxu2 %v4738_v52 }
 0x38a   :  { %v1857_v55 = vpop.f32.mrf.mxu0  ;;  %v1877_v24 = vpop.f32.mrf.mxu1 }
 0x38b   :  { %v1905_v5 = vrot.slane %v1857_v55, 2  ;;  %v1906_v17 = vrot.slane %v1877_v24, 2  ;;  %v5976_v55 = vld [vmem:[#allocation22_spill] sm:$0xff] }
 0x38d   :  { %v1913_v3 = vadd.f32 %v1905_v5, %v5970_v13  ;;  %v1914_v62 = vadd.f32 %v1906_v17, %v5971_v9  ;;  %v5978_v17 = vld [vmem:[#allocation16_spill] sm:$0xff]  ;;  %v5979_v13 = vld [vmem:[#allocation17_spill] sm:$0xff] }
 0x38e   :  { %2087 = vmatpush.msrb.mxu3 %v5978_v17 }
 0x38f   :  { %v2914_v56 = vmul.f32 -1.442695, %v1913_v3  ;;  %v2915_v63 = vmul.f32 -1.442695, %v1914_v62  ;;  %v1816_v53 = vpop.f32.mrf.mxu2  ;;  %v1837_v52 = vpop.f32.mrf.mxu3 }
 0x390   :  { %v5159_v49 = vadd.f32 %v1816_v53, %v5973_v44  ;;  %v1904_v46 = vrot.slane %v1837_v52, 2  ;;  %2088 = vmatpush.msrb.mxu3 %v5979_v13  ;;  %v5980_v44 = vld [vmem:[#allocation18_spill] sm:$0xff]  ;;  %v5985_v13 = vld [vmem:[#allocation32_spill] sm:$0xff] }
 0x391   :  { %2984 = vpow2.f32 %v2914_v56  ;;  %v5981_v56 = vld [vmem:[#allocation19_spill] sm:$0xff] }
 0x392   :  { %5974 = vst [vmem:[#allocation25_spill] sm:$0xff] %v5159_v49  ;;  %2986 = vpow2.f32 %v2915_v63  ;;  %v1912_v24 = vadd.f32 %v1904_v46, %v5976_v55  ;;  %2089 = vmatpush.msrb.mxu3 %v5980_v44  ;;  %v5982_v46 = vld [vmem:[#allocation29_spill] sm:$0xff]  ;;  %v5984_v49 = vld [vmem:[#allocation31_spill] sm:$0xff] }
 0x394   :  { %v2913_v5 = vmul.f32 -1.442695, %v1912_v24  ;;  %2090 = vmatpush.msrb.mxu3 %v5981_v56  ;;  %v5983_v24 = vld [vmem:[#allocation30_spill] sm:$0xff]  ;;  %v5986_v56 = vld [vmem:[#allocation33_spill] sm:$0xff] }
 0x396   :  { %2988 = vpow2.f32 %v2913_v5  ;;  %2091 = vmatpush.msrb.mxu3 %v5982_v46 }
 0x397   :  { %v2985_v3 = vpop.eup %2984  ;;  %v1897_v55 = vpop.f32.mrf.mxu2 }
 0x398   :  { %v2987_v9 = vpop.eup %2986  ;;  %v1926_v62 = vadd.f32 1.0, %v2985_v3  ;;  %2092 = vmatpush.msrb.mxu3 %v5983_v24  ;;  %v1907_v44 = vrot.slane %v1897_v55, 2  ;;  %v2187_v55 = vld [vmem:[%s5814_s4 + $0x278] sm:$0xff] }
 0x399   :  { %v5167_v52 = vadd.f32 1.0, %v2987_v9  ;;  %2188 = vmatpush.msra.mxu0 %v2187_v55  ;;  %v2184_v55 = vld [vmem:[%s5814_s4 + $0x260] sm:$0xff] }
 0x39a   :  { %2990 = vrcp.f32 %v1926_v62  ;;  %2093 = vmatpush.msrb.mxu3 %v5984_v49  ;;  %v1954_v24 = vand.u32 2147483648, %v1926_v62  ;;  %vm1948_vm12 = vweird.f32 %v1926_v62 }
 0x39b   :  { %2992 = vrcp.f32 %v5167_v52  ;;  %vm1963_vm4 = vweird.f32 %v5167_v52 }
 0x39c   :  { %v2989_v63 = vpop.eup %2988  ;;  %2094 = vmatpush.msrb.mxu3 %v5985_v13 }
 0x39d   :  { %v1925_v53 = vadd.f32 1.0, %v2989_v63  ;;  %v5987_v63 = vld [vmem:[#allocation28_spill] sm:$0xff] }
 0x39e   :  { %2095 = vmatpush.msrb.mxu3 %v5986_v56  ;;  %v1915_v60 = vadd.f32 %v1907_v44, %v5987_v63  ;;  %v1952_v56 = vand.u32 2147483647, %v1926_v62  ;;  %v5989_v44 = vld [vmem:[#allocation35_spill] sm:$0xff] }
 0x39f   :  { %2994 = vrcp.f32 %v1925_v53  ;;  %v1937_v29 = vand.u32 2147483647, %v1925_v53  ;;  %vm1933_vm15 = vweird.f32 %v1925_v53 }
 0x3a0   :  { %v2991_v5 = vpop.eup %2990  ;;  %2096 = vmatpush.msrb.mxu3 %v5988_v2  ;;  %v1939_v2 = vand.u32 2147483648, %v1925_v53  ;;  %2996 = vtanh.f32 %v1915_v60  ;;  %vm1953_vm0 = vcmp.eq.f32.partialorder %v1952_v56, 8.507059e+37 }
 0x3a1   :  { %v1944_v3 = vmul.f32 %v2991_v5, %v1926_v62  ;;  %v2993_v17 = vpop.eup %2992  ;;  %vm1949_vm11 = vweird.f32 %v2991_v5  ;;  %v1955_v62 = vor.u32 1.1754944e-38, %v1954_v24  ;;  %vm1938_vm2 = vcmp.eq.f32.partialorder %v1937_v29, 8.507059e+37 }
 0x3a2   :  { %v1959_v47 = vmul.f32 %v2993_v17, %v5167_v52  ;;  %2097 = vmatpush.msrb.mxu3 %v5989_v44  ;;  %vm5186_vm13 = vmor %vm1948_vm12, %vm1949_vm11  ;;  %v1940_v60 = vor.u32 1.1754944e-38, %v1939_v2  ;;  %vm1964_vm3 = vweird.f32 %v2993_v17  ;;  %v1969_v2 = vand.u32 2147483648, %v5167_v52 }
 0x3a3   :  { %v1945_v9 = vsub.f32 1.0, %v1944_v3  ;;  %v2186_v3 = vld [vmem:[%s5814_s4 + $0x270] sm:$0xff]  ;;  %vm1965_vm5 = vmor %vm1963_vm4, %vm1964_vm3 }
 0x3a4   :  { %2189 = vmatpush.msra.mxu0 %v2186_v3  ;;  %v1960_v44 = vsub.f32 1.0, %v1959_v47 }
 0x3a5   :  { %v2995_v20 = vpop.eup %2994  ;;  %v1946_v46 = vmul.f32 %v2991_v5, %v1945_v9 }
 0x3a6   :  { %v1929_v26 = vmul.f32 %v2995_v20, %v1925_v53  ;;  %vm1934_vm14 = vweird.f32 %v2995_v20  ;;  %v2997_v47 = vpop.eup %2996  ;;  %v1961_v24 = vmul.f32 %v2993_v17, %v1960_v44 }
 0x3a7   :  { %v1947_v49 = vadd.f32 %v2991_v5, %v1946_v46  ;;  %v2185_v46 = vld [vmem:[%s5814_s4 + $0x268] sm:$0xff]  ;;  %vm1935_vm1 = vmor %vm1933_vm15, %vm1934_vm14 }
 0x3a8   :  { %v1930_v9 = vsub.f32 1.0, %v1929_v26  ;;  %2190 = vmatpush.msra.mxu0 %v2185_v46  ;;  %v1962_v53 = vadd.f32 %v2993_v17, %v1961_v24  ;;  %v6009_v24 = vld [vmem:[#allocation18_spill] sm:$0xff] }
 0x3a9   :  { %v1951_v26 = vsel %vm5186_vm13, %v2991_v5, %v1947_v49  ;;  %v1975_v49 = vrot.slane %v4989_v59, 6 }
 0x3aa   :  { %v1931_v13 = vmul.f32 %v2995_v20, %v1930_v9  ;;  %v1956_v58 = vsel %vm1953_vm0, %v1955_v62, %v1951_v26  ;;  %v2183_v9 = vld [vmem:[%s5814_s4 + $0x258] sm:$0xff]  ;;  %2191 = vmatpush.msra.mxu0 %v2184_v55  ;;  %v1966_v29 = vsel %vm1965_vm5, %v2993_v17, %v1962_v53  ;;  %v6005_v17 = vld [vmem:[#allocation20_spill] sm:$0xff]  ;;  %v6006_v62 = vld [vmem:[#allocation23_spill] sm:$0xff] }
 0x3ab   :  { %v1977_v3 = vmul.f32 %v1975_v49, %v1956_v58  ;;  %v6008_v49 = vld [vmem:[#allocation17_spill] sm:$0xff]  ;;  %v6011_v53 = vld [vmem:[#allocation24_spill] sm:$0xff] }
 0x3ac   :  { %v1932_v54 = vadd.f32 %v2995_v20, %v1931_v13  ;;  %2192 = vmatpush.msra.mxu0 %v2183_v9 }
 0x3ae   :  { %v1936_v63 = vsel %vm1935_vm1, %v2995_v20, %v1932_v54  ;;  %v1967_v54 = vand.u32 2147483647, %v5167_v52  ;;  %v1970_v20 = vor.u32 1.1754944e-38, %v1969_v2 }
 0x3af   :  { %v1941_v5 = vsel %vm1938_vm2, %v1940_v60, %v1936_v63  ;;  %v6007_v60 = vld [vmem:[#allocation16_spill] sm:$0xff] }
 0x3b0   :  { %v1978_v13 = vmul.f32 %v2997_v47, %v1941_v5  ;;  %vm1968_vm6 = vcmp.eq.f32.partialorder %v1967_v54, 8.507059e+37  ;;  %v6010_v5 = vld [vmem:[#allocation25_spill] sm:$0xff]  ;;  %v6012_v54 = vld [vmem:[#allocation19_spill] sm:$0xff] }
 0x3b1   :  { %v1971_v58 = vsel %vm1968_vm6, %v1970_v20, %v1966_v29  ;;  %v6013_v20 = vld [vmem:[#allocation29_spill] sm:$0xff] }
 0x3b2   :  { %v5202_v56 = vadd.f32 %v1978_v13, %v1977_v3 }
 0x3b4   :  { %2998 = vtanh.f32 %v5202_v56 }
 0x3ba   :  { %v2999_v59 = vpop.eup %2998 }
 0x3bb   :  { %v1981_v44 = vmul.f32 %v2999_v59, %v1971_v58 }
 0x3bd   :  { %v1999_v46 = vrot.slane %v1981_v44, 6 }
 0x3bf   :  { %2017 = vmatmul.f32.vlgmr.msra.gmra.mxu3 %v1999_v46  ;;  %2038 = vmatmul.f32.vlgmr.msrb.gmra.mxu0 %v1999_v46 }
 0x3c0   :  { %2058 = vmatmul.f32.vlgmr.msrb.gmra.mxu1 %v1999_v46  ;;  %2078 = vmatmul.f32.vlgmr.msrb.gmra.mxu2 %v1999_v46 }
 0x3c1   :  { %2249 = vmatpush.msra.mxu3 %v4594_v42  ;;  %2411 = vmatpush.msrb.mxu2 %v4745_v16  ;;  %v5992_v42 = vld [vmem:[#allocation8_spill] sm:$0xff] }
 0x3c3   :  { %2250 = vmatpush.msra.mxu3 %v4600_v18  ;;  %2412 = vmatpush.msrb.mxu2 %v4751_v35  ;;  %v5993_v18 = vld [vmem:[#allocation21_spill] sm:$0xff] }
 0x3c5   :  { %2251 = vmatpush.msra.mxu3 %v4606_v61  ;;  %2413 = vmatpush.msrb.mxu2 %v4757_v12  ;;  %v5994_v61 = vld [vmem:[#allocation3_spill] sm:$0xff]  ;;  %v2179_v12 = vld [vmem:[%s5814_s4 + $0x238] sm:$0xff] }
 0x3c7   :  { %2098 = vmatmul.f32.vlgmr.msrb.gmra.mxu3 %v1999_v46  ;;  %2414 = vmatpush.msrb.mxu2 %v4763_v21  ;;  %v2178_v21 = vld [vmem:[%s5814_s4 + $0x230] sm:$0xff]  ;;  %v6014_v46 = vld [vmem:[#allocation30_spill] sm:$0xff] }
 0x3c8   :  { %2252 = vmatpush.msra.mxu3 %v5002_v33 }
 0x3c9   :  { %2415 = vmatpush.msrb.mxu2 %v4769_v23  ;;  %v2177_v23 = vld [vmem:[%s5814_s4 + $0x228] sm:$0xff] }
 0x3ca   :  { %2253 = vmatpush.msra.mxu3 %v5009_v43 }
 0x3cb   :  { %2416 = vmatpush.msrb.mxu2 %v4775_v25  ;;  %v2176_v25 = vld [vmem:[%s5814_s4 + $0x220] sm:$0xff] }
 0x3cc   :  { %2254 = vmatpush.msra.mxu3 %v5016_v30 }
 0x3cd   :  { %2417 = vmatpush.msrb.mxu2 %v4781_v15  ;;  %v2175_v15 = vld [vmem:[%s5814_s4 + $0x218] sm:$0xff] }
 0x3ce   :  { %2255 = vmatpush.msra.mxu3 %v5023_v22 }
 0x3cf   :  { %2418 = vmatpush.msrb.mxu2 %v4787_v36  ;;  %v2174_v36 = vld [vmem:[%s5814_s4 + $0x210] sm:$0xff] }
 0x3d0   :  { %2256 = vmatpush.msra.mxu3 %v5030_v48 }
 0x3d1   :  { %2419 = vmatpush.msrb.mxu2 %v4793_v39  ;;  %v2173_v39 = vld [vmem:[%s5814_s4 + $0x208] sm:$0xff] }
 0x3d2   :  { %2257 = vmatpush.msra.mxu3 %v5037_v51 }
 0x3d3   :  { %2420 = vmatpush.msrb.mxu2 %v4799_v50  ;;  %v2172_v50 = vld [vmem:[%s5814_s4 + $0x200] sm:$0xff] }
 0x3d4   :  { %2258 = vmatpush.msra.mxu3 %v5044_v45 }
 0x3d5   :  { %2421 = vmatpush.msrb.mxu2 %v4805_v27  ;;  %v6000_v27 = vld [vmem:[#allocation11_spill] sm:$0xff] }
 0x3d6   :  { %2259 = vmatpush.msra.mxu3 %v5051_v31 }
 0x3d7   :  { %2422 = vmatpush.msrb.mxu2 %v4811_v10  ;;  %v6001_v10 = vld [vmem:[#allocation12_spill] sm:$0xff] }
 0x3d8   :  { %2260 = vmatpush.msra.mxu3 %v5058_v37 }
 0x3d9   :  { %2423 = vmatpush.msrb.mxu2 %v4817_v14  ;;  %v6002_v14 = vld [vmem:[#allocation13_spill] sm:$0xff] }
 0x3da   :  { %2261 = vmatpush.msra.mxu3 %v5065_v28 }
 0x3db   :  { %2424 = vmatpush.msrb.mxu2 %v4823_v1  ;;  %v6003_v1 = vld [vmem:[#allocation14_spill] sm:$0xff] }
 0x3dc   :  { %2262 = vmatpush.msra.mxu3 %v5072_v6 }
 0x3dd   :  { %2425 = vmatpush.msrb.mxu2 %v4829_v7 }
 0x3de   :  { %2263 = vmatpush.msra.mxu3 %v5079_v41 }
 0x3df   :  { %2426 = vmatpush.msrb.mxu2 %v4835_v34  ;;  %v6004_v34 = vld [vmem:[#allocation15_spill] sm:$0xff] }
 0x3e0   :  { %2264 = vmatpush.msra.mxu3 %v5086_v0 }
 0x3e2   :  { %2431 = vmatpush.msrb.mxu3 %v4633_v11  ;;  %v5995_v11 = vld [vmem:[#allocation4_spill] sm:$0xff] }
 0x3e4   :  { %2432 = vmatpush.msrb.mxu3 %v4640_v4  ;;  %v5996_v4 = vld [vmem:[#allocation5_spill] sm:$0xff] }
 0x3e6   :  { %2433 = vmatpush.msrb.mxu3 %v4647_v19  ;;  %v5997_v19 = vld [vmem:[#allocation6_spill] sm:$0xff] }
 0x3e8   :  { %2434 = vmatpush.msrb.mxu3 %v4654_v57  ;;  %v5998_v57 = vld [vmem:[#allocation7_spill] sm:$0xff] }
 0x3ea   :  { %2435 = vmatpush.msrb.mxu3 %v4661_v8  ;;  %v5999_v8 = vld [vmem:[#allocation9_spill] sm:$0xff] }
 0x3ec   :  { %2436 = vmatpush.msrb.mxu3 %v4668_v38  ;;  %v2182_v38 = vld [vmem:[%s5814_s4 + $0x250] sm:$0xff] }
 0x3ed   :  { %2193 = vmatpush.msra.mxu0 %v2182_v38  ;;  %v6018_v38 = vld [vmem:[#allocation27_spill] sm:$0xff] }
 0x3ee   :  { %2437 = vmatpush.msrb.mxu3 %v4675_v40  ;;  %v2181_v40 = vld [vmem:[%s5814_s4 + $0x248] sm:$0xff] }
 0x3ef   :  { %2194 = vmatpush.msra.mxu0 %v2181_v40 }
 0x3f0   :  { %2438 = vmatpush.msrb.mxu3 %v4682_v32  ;;  %v2180_v32 = vld [vmem:[%s5814_s4 + $0x240] sm:$0xff] }
 0x3f1   :  { %2195 = vmatpush.msra.mxu0 %v2180_v32  ;;  %v6019_v32 = vld [vmem:[#allocation34_spill] sm:$0xff] }
 0x3f2   :  { %2439 = vmatpush.msrb.mxu3 %v5992_v42 }
 0x3f3   :  { %2196 = vmatpush.msra.mxu0 %v2179_v12 }
 0x3f4   :  { %2440 = vmatpush.msrb.mxu3 %v5993_v18  ;;  %v6015_v18 = vld [vmem:[#allocation31_spill] sm:$0xff] }
 0x3f5   :  { %2197 = vmatpush.msra.mxu0 %v2178_v21 }
 0x3f6   :  { %2441 = vmatpush.msrb.mxu3 %v5994_v61  ;;  %v6016_v61 = vld [vmem:[#allocation32_spill] sm:$0xff] }
 0x3f7   :  { %2198 = vmatpush.msra.mxu0 %v2177_v23 }
 0x3f8   :  { %2442 = vmatpush.msrb.mxu3 %v5995_v11 }
 0x3f9   :  { %2199 = vmatpush.msra.mxu0 %v2176_v25  ;;  %v6020_v25 = vld [vmem:[#allocation35_spill] sm:$0xff] }
 0x3fa   :  { %2443 = vmatpush.msrb.mxu3 %v5996_v4 }
 0x3fb   :  { %2200 = vmatpush.msra.mxu0 %v2175_v15 }
 0x3fc   :  { %2444 = vmatpush.msrb.mxu3 %v5997_v19  ;;  %v6017_v19 = vld [vmem:[#allocation33_spill] sm:$0xff] }
 0x3fd   :  { %2201 = vmatpush.msra.mxu0 %v2174_v36 }
 0x3fe   :  { %2445 = vmatpush.msrb.mxu3 %v5998_v57 }
 0x3ff   :  { %2202 = vmatpush.msra.mxu0 %v2173_v39 }
 0x400   :  { %2446 = vmatpush.msrb.mxu3 %v5999_v8 }
 0x401   :  { %2203 = vmatpush.msra.mxu0 %v2172_v50 }
 0x403   :  { %2269 = vmatpush.msrb.mxu0 %v6000_v27 }
 0x405   :  { %2270 = vmatpush.msrb.mxu0 %v6001_v10 }
 0x407   :  { %2271 = vmatpush.msrb.mxu0 %v6002_v14 }
 0x409   :  { %2272 = vmatpush.msrb.mxu0 %v6003_v1 }
 0x40b   :  { %2273 = vmatpush.msrb.mxu0 %v6004_v34 }
 0x40d   :  { %2274 = vmatpush.msrb.mxu0 %v6007_v60 }
 0x40f   :  { %2275 = vmatpush.msrb.mxu0 %v6008_v49 }
 0x411   :  { %2276 = vmatpush.msrb.mxu0 %v6009_v24 }
 0x413   :  { %2277 = vmatpush.msrb.mxu0 %v6012_v54 }
 0x415   :  { %2278 = vmatpush.msrb.mxu0 %v6013_v20 }
 0x417   :  { %2279 = vmatpush.msrb.mxu0 %v6014_v46 }
 0x419   :  { %2280 = vmatpush.msrb.mxu0 %v6015_v18 }
 0x41b   :  { %2281 = vmatpush.msrb.mxu0 %v6016_v61 }
 0x41d   :  { %2282 = vmatpush.msrb.mxu0 %v6017_v19  ;;  %v5333_v19 = vld [vmem:[%s5813_s3 + $0x1b0] sm:$0xff] }
 0x41f   :  { %2283 = vmatpush.msrb.mxu0 %v6019_v32  ;;  %v3152_v32 = vld [vmem:[%s5813_s3 + $0x188] sm:$0xff] }
 0x421   :  { %2284 = vmatpush.msrb.mxu0 %v6020_v25  ;;  %v3157_v25 = vld [vmem:[%s5813_s3 + $0xe8] sm:$0xff] }
 0x43c   :  { %v2039_v7 = vpop.f32.mrf.mxu0 }
 0x43d   :  { %v2102_v52 = vadd.f32 %v2039_v7, %v6005_v17  ;;  %v2059_v26 = vpop.f32.mrf.mxu1 }
 0x43e   :  { %v2103_v55 = vadd.f32 %v2059_v26, %v6006_v62 }
 0x43f   :  { %v2916_v9 = vmul.f32 -1.442695, %v2102_v52 }
 0x440   :  { %v2917_v63 = vmul.f32 -1.442695, %v2103_v55 }
 0x441   :  { %3000 = vpow2.f32 %v2916_v9 }
 0x442   :  { %3002 = vpow2.f32 %v2917_v63  ;;  %v2018_v47 = vpop.f32.mrf.mxu3  ;;  %v2165_v63 = vrot.slane %v5202_v56, 6 }
 0x443   :  { %v5300_v3 = vadd.f32 %v2018_v47, %v6010_v5  ;;  %v2079_v13 = vpop.f32.mrf.mxu2 }
 0x444   :  { %v2104_v2 = vadd.f32 %v2079_v13, %v6011_v53 }
 0x446   :  { %v2918_v29 = vmul.f32 -1.442695, %v2104_v2 }
 0x447   :  { %v3001_v59 = vpop.eup %3000 }
 0x448   :  { %v3003_v58 = vpop.eup %3002  ;;  %v2115_v44 = vadd.f32 1.0, %v3001_v59  ;;  %3004 = vpow2.f32 %v2918_v29 }
 0x449   :  { %v2116_v42 = vadd.f32 1.0, %v3003_v58 }
 0x44a   :  { %3006 = vrcp.f32 %v2115_v44  ;;  %v2099_v11 = vpop.f32.mrf.mxu3  ;;  %v2129_v39 = vand.u32 2147483648, %v2115_v44  ;;  %v2127_v10 = vand.u32 2147483647, %v2115_v44  ;;  %vm2123_vm9 = vweird.f32 %v2115_v44 }
 0x44b   :  { %3008 = vrcp.f32 %v2116_v42  ;;  %v2105_v40 = vadd.f32 %v2099_v11, %v6018_v38  ;;  %v2144_v50 = vand.u32 2147483648, %v2116_v42  ;;  %v2142_v1 = vand.u32 2147483647, %v2116_v42  ;;  %v5319_v11 = vld [vmem:[%s5813_s3 + $0x1f0] sm:$0xff] }
 0x44c   :  { %vm2138_vm10 = vweird.f32 %v2116_v42  ;;  %v2130_v26 = vor.u32 1.1754944e-38, %v2129_v39  ;;  %vm2128_vm13 = vcmp.eq.f32.partialorder %v2127_v10, 8.507059e+37  ;;  %v3160_v39 = vld [vmem:[%s5813_s3 + $0x88] sm:$0xff] }
 0x44d   :  { %v2145_v60 = vor.u32 1.1754944e-38, %v2144_v50  ;;  %vm2143_vm14 = vcmp.eq.f32.partialorder %v2142_v1, 8.507059e+37  ;;  %v3161_v50 = vld [vmem:[%s5813_s3 + $0x68] sm:$0xff]  ;;  %v2386_v1 = vld [vmem:[%s5814_s4 + $0x2f8] sm:$0xff] }
 0x44e   :  { %v3005_v4 = vpop.eup %3004  ;;  %v3163_v10 = vld [vmem:[%s5813_s3 + $0x28] sm:$0xff]  ;;  %2390 = vmatpush.msrb.mxu1 %v2386_v1 }
 0x44f   :  { %v2117_v57 = vadd.f32 1.0, %v3005_v4  ;;  %v5326_v4 = vld [vmem:[%s5813_s3 + $0x1d0] sm:$0xff] }
 0x450   :  { %v3007_v8 = vpop.eup %3006 }
 0x451   :  { %v3009_v12 = vpop.eup %3008  ;;  %v2119_v21 = vmul.f32 %v3007_v8, %v2115_v44  ;;  %3010 = vrcp.f32 %v2117_v57  ;;  %vm2124_vm7 = vweird.f32 %v3007_v8  ;;  %v2159_v58 = vand.u32 2147483648, %v2117_v57 }
 0x452   :  { %v2134_v23 = vmul.f32 %v3009_v12, %v2116_v42  ;;  %3012 = vtanh.f32 %v2105_v40  ;;  %vm2139_vm8 = vweird.f32 %v3009_v12  ;;  %vm2125_vm11 = vmor %vm2123_vm9, %vm2124_vm7  ;;  %vm2153_vm0 = vweird.f32 %v2117_v57  ;;  %v3139_v40 = vld [vmem:[%s5813_s3 + $0x120] sm:$0xff] }
 0x453   :  { %v2120_v15 = vsub.f32 1.0, %v2119_v21  ;;  %vm2140_vm12 = vmor %vm2138_vm10, %vm2139_vm8  ;;  %v2157_v44 = vand.u32 2147483647, %v2117_v57  ;;  %v2160_v46 = vor.u32 1.1754944e-38, %v2159_v58  ;;  %v3155_v21 = vld [vmem:[%s5813_s3 + $0x128] sm:$0xff] }
 0x454   :  { %v2135_v36 = vsub.f32 1.0, %v2134_v23  ;;  %v3156_v23 = vld [vmem:[%s5813_s3 + $0x108] sm:$0xff] }
 0x455   :  { %v2121_v27 = vmul.f32 %v3007_v8, %v2120_v15  ;;  %vm2158_vm2 = vcmp.eq.f32.partialorder %v2157_v44, 8.507059e+37  ;;  %v3158_v15 = vld [vmem:[%s5813_s3 + $0xc8] sm:$0xff] }
 0x456   :  { %v2136_v14 = vmul.f32 %v3009_v12, %v2135_v36  ;;  %v3159_v36 = vld [vmem:[%s5813_s3 + $0xa8] sm:$0xff] }
 0x457   :  { %v3011_v7 = vpop.eup %3010  ;;  %v2122_v34 = vadd.f32 %v3007_v8, %v2121_v27  ;;  %v3162_v27 = vld [vmem:[%s5813_s3 + $0x48] sm:$0xff] }
 0x458   :  { %v2149_v52 = vmul.f32 %v3011_v7, %v2117_v57  ;;  %v2137_v55 = vadd.f32 %v3009_v12, %v2136_v14  ;;  %v3013_v49 = vpop.eup %3012  ;;  %vm2154_vm15 = vweird.f32 %v3011_v7  ;;  %v3136_v57 = vld [vmem:[%s5813_s3 + $0x180] sm:$0xff]  ;;  %v3164_v14 = vld [vmem:[%s5813_s3 + $0x8] sm:$0xff] }
 0x459   :  { %v2126_v9 = vsel %vm2125_vm11, %v3007_v8, %v2122_v34  ;;  %vm2155_vm1 = vmor %vm2153_vm0, %vm2154_vm15  ;;  %v3138_v8 = vld [vmem:[%s5813_s3 + $0x140] sm:$0xff]  ;;  %v2384_v34 = vld [vmem:[%s5814_s4 + $0x2e8] sm:$0xff] }
 0x45a   :  { %v2150_v47 = vsub.f32 1.0, %v2149_v52  ;;  %v2131_v24 = vsel %vm2128_vm13, %v2130_v26, %v2126_v9  ;;  %v2141_v5 = vsel %vm2140_vm12, %v3009_v12, %v2137_v55  ;;  %v3154_v12 = vld [vmem:[%s5813_s3 + $0x148] sm:$0xff]  ;;  %v2383_v52 = vld [vmem:[%s5814_s4 + $0x2e0] sm:$0xff]  ;;  %v2382_v26 = vld [vmem:[%s5814_s4 + $0x2d8] sm:$0xff] }
 0x45b   :  { %v2146_v13 = vsel %vm2143_vm14, %v2145_v60, %v2141_v5  ;;  %v2168_v2 = vmul.f32 %v3013_v49, %v2131_v24  ;;  %v2381_v55 = vld [vmem:[%s5814_s4 + $0x2d0] sm:$0xff]  ;;  %v2380_v60 = vld [vmem:[%s5814_s4 + $0x2c8] sm:$0xff]  ;;  %v2379_v9 = vld [vmem:[%s5814_s4 + $0x2c0] sm:$0xff] }
 0x45c   :  { %v2151_v54 = vmul.f32 %v3011_v7, %v2150_v47  ;;  %v2167_v29 = vmul.f32 %v2165_v63, %v2146_v13  ;;  %v2378_v63 = vld [vmem:[%s5814_s4 + $0x2b8] sm:$0xff]  ;;  %v2377_v49 = vld [vmem:[%s5814_s4 + $0x2b0] sm:$0xff]  ;;  %v2376_v47 = vld [vmem:[%s5814_s4 + $0x2a8] sm:$0xff] }
 0x45d   :  { %v2375_v24 = vld [vmem:[%s5814_s4 + $0x2a0] sm:$0xff]  ;;  %v2374_v5 = vld [vmem:[%s5814_s4 + $0x298] sm:$0xff]  ;;  %v2373_v13 = vld [vmem:[%s5814_s4 + $0x290] sm:$0xff] }
 0x45e   :  { %v5313_v20 = vadd.f32 %v2168_v2, %v2167_v29  ;;  %v2152_v59 = vadd.f32 %v3011_v7, %v2151_v54  ;;  %v2372_v2 = vld [vmem:[%s5814_s4 + $0x288] sm:$0xff] }
 0x460   :  { %3014 = vtanh.f32 %v5313_v20  ;;  %v2156_v56 = vsel %vm2155_vm1, %v3011_v7, %v2152_v59  ;;  %v2385_v7 = vld [vmem:[%s5814_s4 + $0x2f0] sm:$0xff]  ;;  %v2371_v59 = vld [vmem:[%s5814_s4 + $0x280] sm:$0xff] }
 0x461   :  { %v2161_v18 = vsel %vm2158_vm2, %v2160_v46, %v2156_v56  ;;  %2391 = vmatpush.msrb.mxu1 %v2385_v7  ;;  %v5493_v56 = vld [vmem:[%s5813_s3 + $0x1f8] sm:$0xff] }
 0x463   :  { %2392 = vmatpush.msrb.mxu1 %v2384_v34 }
 0x465   :  { %2393 = vmatpush.msrb.mxu1 %v2383_v52 }
 0x466   :  { %v3015_v42 = vpop.eup %3014 }
 0x467   :  { %v2171_v61 = vmul.f32 %v3015_v42, %v2161_v18  ;;  %2394 = vmatpush.msrb.mxu1 %v2382_v26  ;;  %v5500_v42 = vld [vmem:[%s5813_s3 + $0x1d8] sm:$0xff] }
 0x468   :  { %v5506_v18 = vld [vmem:[%s5813_s3 + $0x1b8] sm:$0xff] }
 0x469   :  { %2204 = vmatmul.f32.vlgmr.msra.gmra.mxu0 %v2171_v61  ;;  %2225 = vmatmul.f32.vlgmr.msra.gmra.mxu1 %v2171_v61 }
 0x46a   :  { %2245 = vmatmul.f32.vlgmr.msra.gmra.mxu2 %v2171_v61  ;;  %2265 = vmatmul.f32.vlgmr.msra.gmra.mxu3 %v2171_v61 }
 0x46b   :  { %2451 = vmatpush.msra.mxu0 %v5319_v11  ;;  %2613 = vmatpush.msra.mxu3 %v4745_v16  ;;  %v3135_v16 = vld [vmem:[%s5813_s3 + $0x1a0] sm:$0xff] }
 0x46c   :  { %2395 = vmatpush.msrb.mxu1 %v2381_v55  ;;  %v5584_v55 = vld [vmem:[%s5813_s3 + $0x38] sm:$0xff] }
 0x46d   :  { %2452 = vmatpush.msra.mxu0 %v5326_v4  ;;  %2614 = vmatpush.msra.mxu3 %v4751_v35  ;;  %v3137_v35 = vld [vmem:[%s5813_s3 + $0x160] sm:$0xff] }
 0x46e   :  { %2396 = vmatpush.msrb.mxu1 %v2380_v60 }
 0x46f   :  { %2453 = vmatpush.msra.mxu0 %v5333_v19  ;;  %2615 = vmatpush.msra.mxu3 %v3135_v16 }
 0x470   :  { %2397 = vmatpush.msrb.mxu1 %v2379_v9 }
 0x471   :  { %2285 = vmatmul.f32.vlgmr.msrb.gmra.mxu0 %v2171_v61  ;;  %2616 = vmatpush.msra.mxu3 %v3136_v57 }
 0x472   :  { %2454 = vmatpush.msra.mxu0 %v5002_v33  ;;  %v3140_v33 = vld [vmem:[%s5813_s3 + $0x100] sm:$0xff]  ;;  %2398 = vmatpush.msrb.mxu1 %v2378_v63 }
 0x473   :  { %2617 = vmatpush.msra.mxu3 %v3137_v35 }
 0x474   :  { %2455 = vmatpush.msra.mxu0 %v5009_v43  ;;  %v3141_v43 = vld [vmem:[%s5813_s3 + $0xe0] sm:$0xff]  ;;  %2399 = vmatpush.msrb.mxu1 %v2377_v49 }
 0x475   :  { %2618 = vmatpush.msra.mxu3 %v3138_v8  ;;  %v5512_v8 = vld [vmem:[%s5813_s3 + $0x198] sm:$0xff] }
 0x476   :  { %2456 = vmatpush.msra.mxu0 %v5016_v30  ;;  %v3142_v30 = vld [vmem:[%s5813_s3 + $0xc0] sm:$0xff]  ;;  %2400 = vmatpush.msrb.mxu1 %v2376_v47  ;;  %v5591_v47 = vld [vmem:[%s5813_s3 + $0x18] sm:$0xff] }
 0x477   :  { %2619 = vmatpush.msra.mxu3 %v3139_v40 }
 0x478   :  { %2457 = vmatpush.msra.mxu0 %v5023_v22  ;;  %v3143_v22 = vld [vmem:[%s5813_s3 + $0xa0] sm:$0xff]  ;;  %2401 = vmatpush.msrb.mxu1 %v2375_v24 }
 0x479   :  { %2620 = vmatpush.msra.mxu3 %v3140_v33 }
 0x47a   :  { %2458 = vmatpush.msra.mxu0 %v5030_v48  ;;  %v3144_v48 = vld [vmem:[%s5813_s3 + $0x80] sm:$0xff]  ;;  %2402 = vmatpush.msrb.mxu1 %v2374_v5 }
 0x47b   :  { %2621 = vmatpush.msra.mxu3 %v3141_v43  ;;  %v5520_v43 = vld [vmem:[%s5813_s3 + $0x178] sm:$0xff] }
 0x47c   :  { %2459 = vmatpush.msra.mxu0 %v5037_v51  ;;  %v3145_v51 = vld [vmem:[%s5813_s3 + $0x60] sm:$0xff]  ;;  %2403 = vmatpush.msrb.mxu1 %v2373_v13 }
 0x47d   :  { %2622 = vmatpush.msra.mxu3 %v3142_v30 }
 0x47e   :  { %2460 = vmatpush.msra.mxu0 %v5044_v45  ;;  %v3146_v45 = vld [vmem:[%s5813_s3 + $0x40] sm:$0xff]  ;;  %2404 = vmatpush.msrb.mxu1 %v2372_v2 }
 0x47f   :  { %2623 = vmatpush.msra.mxu3 %v3143_v22 }
 0x480   :  { %2461 = vmatpush.msra.mxu0 %v5051_v31  ;;  %v3147_v31 = vld [vmem:[%s5813_s3 + $0x20] sm:$0xff]  ;;  %2405 = vmatpush.msrb.mxu1 %v2371_v59 }
 0x481   :  { %2624 = vmatpush.msra.mxu3 %v3144_v48  ;;  %v5526_v48 = vld [vmem:[%s5813_s3 + $0x158] sm:$0xff] }
 0x482   :  { %2462 = vmatpush.msra.mxu0 %v5058_v37  ;;  %v3148_v37 = vld [vmem:[%s5813_s3] sm:$0xff]  ;;  %2471 = vmatpush.msra.mxu1 %v5493_v56 }
 0x483   :  { %2625 = vmatpush.msra.mxu3 %v3145_v51 }
 0x484   :  { %2463 = vmatpush.msra.mxu0 %v5065_v28  ;;  %v3149_v28 = vld [vmem:[%s5813_s3 + $0x1e8] sm:$0xff]  ;;  %2472 = vmatpush.msra.mxu1 %v5500_v42 }
 0x485   :  { %2626 = vmatpush.msra.mxu3 %v3146_v45 }
 0x486   :  { %2464 = vmatpush.msra.mxu0 %v5072_v6  ;;  %v3150_v6 = vld [vmem:[%s5813_s3 + $0x1c8] sm:$0xff]  ;;  %2473 = vmatpush.msra.mxu1 %v5506_v18 }
 0x487   :  { %2627 = vmatpush.msra.mxu3 %v3147_v31  ;;  %v5532_v31 = vld [vmem:[%s5813_s3 + $0x138] sm:$0xff] }
 0x488   :  { %2465 = vmatpush.msra.mxu0 %v5079_v41  ;;  %v3151_v41 = vld [vmem:[%s5813_s3 + $0x1a8] sm:$0xff]  ;;  %2474 = vmatpush.msra.mxu1 %v5512_v8 }
 0x489   :  { %2628 = vmatpush.msra.mxu3 %v3148_v37  ;;  %v5538_v37 = vld [vmem:[%s5813_s3 + $0x118] sm:$0xff] }
 0x48a   :  { %2466 = vmatpush.msra.mxu0 %v5086_v0  ;;  %v3153_v0 = vld [vmem:[%s5813_s3 + $0x168] sm:$0xff]  ;;  %2475 = vmatpush.msra.mxu1 %v5520_v43 }
 0x48c   :  { %2633 = vmatpush.msrb.mxu0 %v3149_v28  ;;  %2476 = vmatpush.msra.mxu1 %v5526_v48  ;;  %v5544_v28 = vld [vmem:[%s5813_s3 + $0xf8] sm:$0xff] }
 0x48e   :  { %2634 = vmatpush.msrb.mxu0 %v3150_v6  ;;  %2477 = vmatpush.msra.mxu1 %v5532_v31 }
 0x490   :  { %2635 = vmatpush.msrb.mxu0 %v3151_v41  ;;  %2478 = vmatpush.msra.mxu1 %v5538_v37  ;;  %v5550_v41 = vld [vmem:[%s5813_s3 + $0xd8] sm:$0xff] }
 0x492   :  { %2636 = vmatpush.msrb.mxu0 %v3152_v32  ;;  %2479 = vmatpush.msra.mxu1 %v5544_v28 }
 0x494   :  { %2637 = vmatpush.msrb.mxu0 %v3153_v0  ;;  %2480 = vmatpush.msra.mxu1 %v5550_v41 }
 0x496   :  { %2638 = vmatpush.msrb.mxu0 %v3154_v12 }
 0x498   :  { %2639 = vmatpush.msrb.mxu0 %v3155_v21 }
 0x49a   :  { %2640 = vmatpush.msrb.mxu0 %v3156_v23 }
 0x49c   :  { %2641 = vmatpush.msrb.mxu0 %v3157_v25  ;;  %v5558_v25 = vld [vmem:[%s5813_s3 + $0xb8] sm:$0xff] }
 0x49d   :  { %2481 = vmatpush.msra.mxu1 %v5558_v25 }
 0x49e   :  { %2642 = vmatpush.msrb.mxu0 %v3158_v15 }
 0x4a0   :  { %2643 = vmatpush.msrb.mxu0 %v3159_v36  ;;  %v5565_v36 = vld [vmem:[%s5813_s3 + $0x98] sm:$0xff] }
 0x4a1   :  { %2482 = vmatpush.msra.mxu1 %v5565_v36 }
 0x4a2   :  { %2644 = vmatpush.msrb.mxu0 %v3160_v39 }
 0x4a4   :  { %2645 = vmatpush.msrb.mxu0 %v3161_v50 }
 0x4a6   :  { %2646 = vmatpush.msrb.mxu0 %v3162_v27  ;;  %v5571_v27 = vld [vmem:[%s5813_s3 + $0x78] sm:$0xff] }
 0x4a7   :  { %2483 = vmatpush.msra.mxu1 %v5571_v27 }
 0x4a8   :  { %2647 = vmatpush.msrb.mxu0 %v3163_v10 }
 0x4aa   :  { %2648 = vmatpush.msrb.mxu0 %v3164_v14  ;;  %v5577_v14 = vld [vmem:[%s5813_s3 + $0x58] sm:$0xff] }
 0x4ab   :  { %2484 = vmatpush.msra.mxu1 %v5577_v14 }
 0x4ad   :  { %2485 = vmatpush.msra.mxu1 %v5584_v55 }
 0x4af   :  { %2486 = vmatpush.msra.mxu1 %v5591_v47 }
 0x4e6   :  { %v2205_v54 = vpop.f32.mrf.mxu0  ;;  %v2226_v29 = vpop.f32.mrf.mxu1 }
 0x4e7   :  { %v5488_v58 = vadd.f32 %v2205_v54, %v5300_v3  ;;  %v2293_v44 = vrot.slane %v2226_v29, 6 }
 0x4e9   :  { %v2301_v46 = vadd.f32 %v2293_v44, %v6005_v17 }
 0x4eb   :  { %v2919_v3 = vmul.f32 -1.442695, %v2301_v46 }
 0x4ed   :  { %3016 = vpow2.f32 %v2919_v3  ;;  %v2246_v61 = vpop.f32.mrf.mxu2  ;;  %v2266_v16 = vpop.f32.mrf.mxu3  ;;  %v2364_v3 = vrot.slane %v5313_v20, 6 }
 0x4ee   :  { %v2294_v57 = vrot.slane %v2246_v61, 6  ;;  %v2295_v35 = vrot.slane %v2266_v16, 6  ;;  %v2286_v23 = vpop.f32.mrf.mxu0 }
 0x4ef   :  { %v2296_v50 = vrot.slane %v2286_v23, 6 }
 0x4f0   :  { %v2302_v40 = vadd.f32 %v2294_v57, %v6006_v62  ;;  %v2303_v33 = vadd.f32 %v2295_v35, %v6011_v53 }
 0x4f1   :  { %v2304_v7 = vadd.f32 %v2296_v50, %v6018_v38  ;;  %v3187_v50 = vld [vmem:[%s5813_s3 + $0xd0] sm:$0xff] }
 0x4f2   :  { %v2920_v30 = vmul.f32 -1.442695, %v2302_v40  ;;  %v2921_v22 = vmul.f32 -1.442695, %v2303_v33 }
 0x4f3   :  { %v3017_v51 = vpop.eup %3016 }
 0x4f4   :  { %v2314_v45 = vadd.f32 1.0, %v3017_v51  ;;  %3018 = vpow2.f32 %v2920_v30 }
 0x4f5   :  { %3020 = vpow2.f32 %v2921_v22 }
 0x4f6   :  { %3022 = vrcp.f32 %v2314_v45  ;;  %v2328_v9 = vand.u32 2147483648, %v2314_v45  ;;  %vm2322_vm4 = vweird.f32 %v2314_v45  ;;  %v2326_v49 = vand.u32 2147483647, %v2314_v45 }
 0x4f8   :  { %v2329_v29 = vor.u32 1.1754944e-38, %v2328_v9  ;;  %vm2327_vm8 = vcmp.eq.f32.partialorder %v2326_v49, 8.507059e+37  ;;  %v2587_v9 = vld [vmem:[%s5814_s4 + $0x370] sm:$0xff]  ;;  %v2585_v49 = vld [vmem:[%s5814_s4 + $0x360] sm:$0xff] }
 0x4fa   :  { %v3019_v6 = vpop.eup %3018 }
 0x4fb   :  { %v3021_v32 = vpop.eup %3020  ;;  %v2315_v0 = vadd.f32 1.0, %v3019_v6 }
 0x4fc   :  { %v3023_v12 = vpop.eup %3022  ;;  %v5553_v21 = vadd.f32 1.0, %v3021_v32 }
 0x4fd   :  { %v2318_v15 = vmul.f32 %v3023_v12, %v2314_v45  ;;  %3024 = vrcp.f32 %v2315_v0  ;;  %vm2323_vm3 = vweird.f32 %v3023_v12  ;;  %v2343_v24 = vand.u32 2147483648, %v2315_v0 }
 0x4fe   :  { %3026 = vrcp.f32 %v5553_v21  ;;  %vm2324_vm5 = vmor %vm2322_vm4, %vm2323_vm3  ;;  %v2341_v2 = vand.u32 2147483647, %v2315_v0  ;;  %vm2337_vm7 = vweird.f32 %v2315_v0  ;;  %v2358_v51 = vand.u32 2147483648, %v5553_v21 }
 0x4ff   :  { %v2319_v39 = vsub.f32 1.0, %v2318_v15  ;;  %3028 = vtanh.f32 %v2304_v7  ;;  %v2344_v44 = vor.u32 1.1754944e-38, %v2343_v24  ;;  %vm2352_vm12 = vweird.f32 %v5553_v21  ;;  %v3182_v15 = vld [vmem:[%s5813_s3 + $0x170] sm:$0xff]  ;;  %v2584_v24 = vld [vmem:[%s5814_s4 + $0x358] sm:$0xff] }
 0x500   :  { %vm2342_vm10 = vcmp.eq.f32.partialorder %v2341_v2, 8.507059e+37  ;;  %v2356_v45 = vand.u32 2147483647, %v5553_v21  ;;  %v2359_v6 = vor.u32 1.1754944e-38, %v2358_v51  ;;  %v3190_v7 = vld [vmem:[%s5813_s3 + $0x70] sm:$0xff]  ;;  %v2581_v2 = vld [vmem:[%s5814_s4 + $0x340] sm:$0xff] }
 0x501   :  { %v2320_v10 = vmul.f32 %v3023_v12, %v2319_v39  ;;  %v3183_v39 = vld [vmem:[%s5813_s3 + $0x150] sm:$0xff] }
 0x502   :  { %vm2357_vm14 = vcmp.eq.f32.partialorder %v2356_v45, 8.507059e+37 }
 0x503   :  { %v3025_v1 = vpop.eup %3024  ;;  %v2321_v26 = vadd.f32 %v3023_v12, %v2320_v10  ;;  %v3188_v10 = vld [vmem:[%s5813_s3 + $0xb0] sm:$0xff] }
 0x504   :  { %v3027_v34 = vpop.eup %3026  ;;  %v2333_v52 = vmul.f32 %v3025_v1, %v2315_v0  ;;  %vm2338_vm6 = vweird.f32 %v3025_v1 }
 0x505   :  { %v2348_v60 = vmul.f32 %v3027_v34, %v5553_v21  ;;  %v2325_v13 = vsel %vm2324_vm5, %v3023_v12, %v2321_v26  ;;  %vm2339_vm9 = vmor %vm2337_vm7, %vm2338_vm6  ;;  %v3029_v16 = vpop.eup %3028  ;;  %vm2353_vm11 = vweird.f32 %v3027_v34  ;;  %v3181_v21 = vld [vmem:[%s5813_s3 + $0x190] sm:$0xff] }
 0x506   :  { %v2334_v63 = vsub.f32 1.0, %v2333_v52  ;;  %v2330_v46 = vsel %vm2327_vm8, %v2329_v29, %v2325_v13  ;;  %vm2354_vm13 = vmor %vm2352_vm12, %vm2353_vm11  ;;  %v3192_v52 = vld [vmem:[%s5813_s3 + $0x30] sm:$0xff]  ;;  %v2582_v13 = vld [vmem:[%s5814_s4 + $0x348] sm:$0xff] }
 0x507   :  { %v2349_v54 = vsub.f32 1.0, %v2348_v60  ;;  %v2367_v33 = vmul.f32 %v3029_v16, %v2330_v46  ;;  %v3193_v26 = vld [vmem:[%s5813_s3 + $0x10] sm:$0xff]  ;;  %v2588_v60 = vld [vmem:[%s5814_s4 + $0x378] sm:$0xff]  ;;  %v2573_v16 = vld [vmem:[%s5814_s4 + $0x300] sm:$0xff] }
 0x508   :  { %v2335_v5 = vmul.f32 %v3025_v1, %v2334_v63  ;;  %2592 = vmatpush.msra.mxu2 %v2588_v60  ;;  %v2586_v63 = vld [vmem:[%s5814_s4 + $0x368] sm:$0xff]  ;;  %v2579_v29 = vld [vmem:[%s5814_s4 + $0x330] sm:$0xff]  ;;  %v2576_v46 = vld [vmem:[%s5814_s4 + $0x318] sm:$0xff] }
 0x509   :  { %v2350_v57 = vmul.f32 %v3027_v34, %v2349_v54  ;;  %v2580_v54 = vld [vmem:[%s5814_s4 + $0x338] sm:$0xff] }
 0x50a   :  { %v2336_v59 = vadd.f32 %v3025_v1, %v2335_v5  ;;  %2593 = vmatpush.msra.mxu2 %v2587_v9  ;;  %v2583_v5 = vld [vmem:[%s5814_s4 + $0x350] sm:$0xff] }
 0x50b   :  { %v2351_v22 = vadd.f32 %v3027_v34, %v2350_v57 }
 0x50c   :  { %v2340_v61 = vsel %vm2339_vm9, %v3025_v1, %v2336_v59  ;;  %v3189_v1 = vld [vmem:[%s5813_s3 + $0x90] sm:$0xff]  ;;  %2594 = vmatpush.msra.mxu2 %v2586_v63  ;;  %v2578_v59 = vld [vmem:[%s5814_s4 + $0x328] sm:$0xff] }
 0x50d   :  { %v2345_v35 = vsel %vm2342_vm10, %v2344_v44, %v2340_v61  ;;  %v2355_v20 = vsel %vm2354_vm13, %v3027_v34, %v2351_v22  ;;  %v3191_v34 = vld [vmem:[%s5813_s3 + $0x50] sm:$0xff]  ;;  %v2577_v44 = vld [vmem:[%s5814_s4 + $0x320] sm:$0xff]  ;;  %v2574_v61 = vld [vmem:[%s5814_s4 + $0x308] sm:$0xff] }
 0x50e   :  { %v2366_v40 = vmul.f32 %v2364_v3, %v2345_v35  ;;  %v2360_v0 = vsel %vm2357_vm14, %v2359_v6, %v2355_v20  ;;  %2595 = vmatpush.msra.mxu2 %v2585_v49  ;;  %v2575_v3 = vld [vmem:[%s5814_s4 + $0x310] sm:$0xff] }
 0x510   :  { %v5595_v30 = vadd.f32 %v2367_v33, %v2366_v40  ;;  %2596 = vmatpush.msra.mxu2 %v2584_v24 }
 0x512   :  { %3030 = vtanh.f32 %v5595_v30  ;;  %2597 = vmatpush.msra.mxu2 %v2583_v5  ;;  %v2566_v9 = vrot.slane %v5595_v30, 6 }
 0x514   :  { %2598 = vmatpush.msra.mxu2 %v2582_v13 }
 0x516   :  { %2599 = vmatpush.msra.mxu2 %v2581_v2 }
 0x518   :  { %v3031_v32 = vpop.eup %3030  ;;  %2600 = vmatpush.msra.mxu2 %v2580_v54 }
 0x519   :  { %v2370_v12 = vmul.f32 %v3031_v32, %v2360_v0 }
 0x51a   :  { %2601 = vmatpush.msra.mxu2 %v2579_v29 }
 0x51b   :  { %v2388_v23 = vrot.slane %v2370_v12, 2 }
 0x51c   :  { %2602 = vmatpush.msra.mxu2 %v2578_v59 }
 0x51d   :  { %2406 = vmatmul.f32.vlgmr.msrb.gmra.mxu1 %v2388_v23  ;;  %2427 = vmatmul.f32.vlgmr.msrb.gmra.mxu2 %v2388_v23 }
 0x51e   :  { %2447 = vmatmul.f32.vlgmr.msrb.gmra.mxu3 %v2388_v23  ;;  %2467 = vmatmul.f32.vlgmr.msra.gmra.mxu0 %v2388_v23 }
 0x51f   :  { %2653 = vmatpush.msrb.mxu1 %v5319_v11  ;;  %v3184_v11 = vld [vmem:[%s5813_s3 + $0x130] sm:$0xff]  ;;  %2603 = vmatpush.msra.mxu2 %v2577_v44 }
 0x521   :  { %2654 = vmatpush.msrb.mxu1 %v5326_v4  ;;  %v3185_v4 = vld [vmem:[%s5813_s3 + $0x110] sm:$0xff]  ;;  %2604 = vmatpush.msra.mxu2 %v2576_v46 }
 0x523   :  { %2655 = vmatpush.msrb.mxu1 %v5333_v19  ;;  %v3186_v19 = vld [vmem:[%s5813_s3 + $0xf0] sm:$0xff]  ;;  %2605 = vmatpush.msra.mxu2 %v2575_v3 }
 0x525   :  { %2487 = vmatmul.f32.vlgmr.msra.gmra.mxu1 %v2388_v23  ;;  %2606 = vmatpush.msra.mxu2 %v2574_v61 }
 0x526   :  { %2656 = vmatpush.msrb.mxu1 %v3181_v21 }
 0x527   :  { %2607 = vmatpush.msra.mxu2 %v2573_v16 }
 0x528   :  { %2657 = vmatpush.msrb.mxu1 %v3182_v15 }
 0x529   :  { %2673 = vmatpush.msrb.mxu2 %v5493_v56 }
 0x52a   :  { %2658 = vmatpush.msrb.mxu1 %v3183_v39 }
 0x52b   :  { %2674 = vmatpush.msrb.mxu2 %v5500_v42 }
 0x52c   :  { %2659 = vmatpush.msrb.mxu1 %v3184_v11 }
 0x52d   :  { %2675 = vmatpush.msrb.mxu2 %v5506_v18 }
 0x52e   :  { %2660 = vmatpush.msrb.mxu1 %v3185_v4 }
 0x52f   :  { %2676 = vmatpush.msrb.mxu2 %v5512_v8 }
 0x530   :  { %2661 = vmatpush.msrb.mxu1 %v3186_v19 }
 0x531   :  { %2677 = vmatpush.msrb.mxu2 %v5520_v43 }
 0x532   :  { %2662 = vmatpush.msrb.mxu1 %v3187_v50 }
 0x533   :  { %2678 = vmatpush.msrb.mxu2 %v5526_v48 }
 0x534   :  { %2663 = vmatpush.msrb.mxu1 %v3188_v10 }
 0x535   :  { %2679 = vmatpush.msrb.mxu2 %v5532_v31 }
 0x536   :  { %2664 = vmatpush.msrb.mxu1 %v3189_v1 }
 0x537   :  { %2680 = vmatpush.msrb.mxu2 %v5538_v37 }
 0x538   :  { %2665 = vmatpush.msrb.mxu1 %v3190_v7 }
 0x539   :  { %2681 = vmatpush.msrb.mxu2 %v5544_v28 }
 0x53a   :  { %2666 = vmatpush.msrb.mxu1 %v3191_v34 }
 0x53b   :  { %2682 = vmatpush.msrb.mxu2 %v5550_v41 }
 0x53c   :  { %2667 = vmatpush.msrb.mxu1 %v3192_v52 }
 0x53d   :  { %2683 = vmatpush.msrb.mxu2 %v5558_v25 }
 0x53e   :  { %2668 = vmatpush.msrb.mxu1 %v3193_v26 }
 0x53f   :  { %2684 = vmatpush.msrb.mxu2 %v5565_v36 }
 0x541   :  { %2685 = vmatpush.msrb.mxu2 %v5571_v27 }
 0x543   :  { %2686 = vmatpush.msrb.mxu2 %v5577_v14 }
 0x545   :  { %2687 = vmatpush.msrb.mxu2 %v5584_v55 }
 0x547   :  { %2688 = vmatpush.msrb.mxu2 %v5591_v47 }
 0x59a   :  { %v2407_v57 = vpop.f32.mrf.mxu1 }
 0x59b   :  { %v5692_v35 = vadd.f32 %v2407_v57, %v5488_v58  ;;  %v2468_v40 = vpop.f32.mrf.mxu0 }
 0x59c   :  { %v2497_v33 = vrot.slane %v2468_v40, 4  ;;  %v2790_v40 = vld [vmem:[%s5814_s4 + $0x3f8] sm:$0xff] }
 0x59d   :  { %2794 = vmatpush.msrb.mxu3 %v2790_v40 }
 0x59e   :  { %v2505_v22 = vadd.f32 %v2497_v33, %v6011_v53  ;;  %v2789_v33 = vld [vmem:[%s5814_s4 + $0x3f0] sm:$0xff] }
 0x59f   :  { %2795 = vmatpush.msrb.mxu3 %v2789_v33 }
 0x5a0   :  { %v2924_v51 = vmul.f32 -1.442695, %v2505_v22  ;;  %v2428_v45 = vpop.f32.mrf.mxu2  ;;  %v2788_v22 = vld [vmem:[%s5814_s4 + $0x3e8] sm:$0xff] }
 0x5a1   :  { %v2495_v20 = vrot.slane %v2428_v45, 4  ;;  %v2448_v6 = vpop.f32.mrf.mxu3  ;;  %2796 = vmatpush.msrb.mxu3 %v2788_v22  ;;  %v2786_v45 = vld [vmem:[%s5814_s4 + $0x3d8] sm:$0xff] }
 0x5a2   :  { %3032 = vpow2.f32 %v2924_v51  ;;  %v2496_v32 = vrot.slane %v2448_v6, 4  ;;  %v2488_v21 = vpop.f32.mrf.mxu1  ;;  %v2787_v51 = vld [vmem:[%s5814_s4 + $0x3e0] sm:$0xff] }
 0x5a3   :  { %v2503_v58 = vadd.f32 %v2495_v20, %v6005_v17  ;;  %v2498_v31 = vrot.slane %v2488_v21, 4  ;;  %2797 = vmatpush.msrb.mxu3 %v2787_v51 }
 0x5a4   :  { %v2504_v56 = vadd.f32 %v2496_v32, %v6006_v62 }
 0x5a5   :  { %v2922_v0 = vmul.f32 -1.442695, %v2503_v58  ;;  %v2506_v41 = vadd.f32 %v2498_v31, %v6018_v38  ;;  %2798 = vmatpush.msrb.mxu3 %v2786_v45 }
 0x5a6   :  { %v2923_v42 = vmul.f32 -1.442695, %v2504_v56  ;;  %v2785_v56 = vld [vmem:[%s5814_s4 + $0x3d0] sm:$0xff] }
 0x5a7   :  { %3034 = vpow2.f32 %v2922_v0  ;;  %2799 = vmatpush.msrb.mxu3 %v2785_v56 }
 0x5a8   :  { %v3033_v18 = vpop.eup %3032  ;;  %3036 = vpow2.f32 %v2923_v42 }
 0x5a9   :  { %v5705_v8 = vadd.f32 1.0, %v3033_v18  ;;  %v2784_v18 = vld [vmem:[%s5814_s4 + $0x3c8] sm:$0xff] }
 0x5aa   :  { %2800 = vmatpush.msrb.mxu3 %v2784_v18 }
 0x5ab   :  { %3038 = vrcp.f32 %v5705_v8  ;;  %v2560_v59 = vand.u32 2147483648, %v5705_v8  ;;  %vm2554_vm8 = vweird.f32 %v5705_v8  ;;  %v2558_v44 = vand.u32 2147483647, %v5705_v8 }
 0x5ad   :  { %v3035_v12 = vpop.eup %3034  ;;  %v2561_v46 = vor.u32 1.1754944e-38, %v2560_v59  ;;  %vm2559_vm10 = vcmp.eq.f32.partialorder %v2558_v44, 8.507059e+37 }
 0x5ae   :  { %v3037_v43 = vpop.eup %3036  ;;  %v2516_v23 = vadd.f32 1.0, %v3035_v12 }
 0x5af   :  { %v2517_v48 = vadd.f32 1.0, %v3037_v43 }
 0x5b0   :  { %3040 = vrcp.f32 %v2516_v23  ;;  %v2530_v19 = vand.u32 2147483648, %v2516_v23  ;;  %v2528_v14 = vand.u32 2147483647, %v2516_v23  ;;  %vm2524_vm1 = vweird.f32 %v2516_v23 }
 0x5b1   :  { %3042 = vrcp.f32 %v2517_v48  ;;  %v3039_v37 = vpop.eup %3038  ;;  %v2545_v27 = vand.u32 2147483648, %v2517_v48  ;;  %v2543_v1 = vand.u32 2147483647, %v2517_v48  ;;  %vm2539_vm2 = vweird.f32 %v2517_v48 }
 0x5b2   :  { %v2550_v25 = vmul.f32 %v3039_v37, %v5705_v8  ;;  %3044 = vtanh.f32 %v2506_v41  ;;  %v2531_v55 = vor.u32 1.1754944e-38, %v2530_v19  ;;  %vm2529_vm5 = vcmp.eq.f32.partialorder %v2528_v14, 8.507059e+37  ;;  %v2779_v41 = vld [vmem:[%s5814_s4 + $0x3a0] sm:$0xff] }
 0x5b3   :  { %v2546_v26 = vor.u32 1.1754944e-38, %v2545_v27  ;;  %vm2544_vm6 = vcmp.eq.f32.partialorder %v2543_v1, 8.507059e+37  ;;  %vm2555_vm7 = vweird.f32 %v3039_v37 }
 0x5b4   :  { %v2551_v7 = vsub.f32 1.0, %v2550_v25  ;;  %vm2556_vm9 = vmor %vm2554_vm8, %vm2555_vm7  ;;  %v2777_v25 = vld [vmem:[%s5814_s4 + $0x390] sm:$0xff]  ;;  %vm2829_vm7 = vcmask 261120  }
 0x5b6   :  { %v3041_v28 = vpop.eup %3040  ;;  %v2552_v24 = vmul.f32 %v3039_v37, %v2551_v7 }
 0x5b7   :  { %v3043_v15 = vpop.eup %3042  ;;  %v2520_v39 = vmul.f32 %v3041_v28, %v2516_v23  ;;  %vm2525_vm15 = vweird.f32 %v3041_v28 }
 0x5b8   :  { %v2535_v11 = vmul.f32 %v3043_v15, %v2517_v48  ;;  %vm2540_vm0 = vweird.f32 %v3043_v15  ;;  %vm2526_vm3 = vmor %vm2524_vm1, %vm2525_vm15  ;;  %v3045_v60 = vpop.eup %3044  ;;  %v2553_v29 = vadd.f32 %v3039_v37, %v2552_v24  ;;  %v2783_v48 = vld [vmem:[%s5814_s4 + $0x3c0] sm:$0xff] }
 0x5b9   :  { %v2521_v4 = vsub.f32 1.0, %v2520_v39  ;;  %vm2541_vm4 = vmor %vm2539_vm2, %vm2540_vm0  ;;  %2801 = vmatpush.msrb.mxu3 %v2783_v48  ;;  %v13_v48 = vstv %s5817_s7 }
 0x5ba   :  { %v2536_v36 = vsub.f32 1.0, %v2535_v11  ;;  %v2557_v30 = vsel %vm2556_vm9, %v3039_v37, %v2553_v29  ;;  %v2781_v37 = vld [vmem:[%s5814_s4 + $0x3b0] sm:$0xff]  ;;  %14 = vst [vmem:[#allocation2] sm:$0x1] %v13_v48 }
 0x5bb   :  { %v2522_v50 = vmul.f32 %v3041_v28, %v2521_v4  ;;  %v2562_v61 = vsel %vm2559_vm10, %v2561_v46, %v2557_v30 }
 0x5bc   :  { %v2537_v10 = vmul.f32 %v3043_v15, %v2536_v36  ;;  %v2776_v36 = vld [vmem:[%s5814_s4 + $0x388] sm:$0xff] }
 0x5bd   :  { %v2523_v34 = vadd.f32 %v3041_v28, %v2522_v50  ;;  %v2775_v50 = vld [vmem:[%s5814_s4 + $0x380] sm:$0xff] }
 0x5be   :  { %v2538_v52 = vadd.f32 %v3043_v15, %v2537_v10  ;;  %v2824_v10 = vld [vmem:[%s5816_s6 + $0x18] sm:$0xff] }
 0x5bf   :  { %v2527_v47 = vsel %vm2526_vm3, %v3041_v28, %v2523_v34  ;;  %2845 = vmatpush.msra.mxu0 %v2824_v10 }
 0x5c0   :  { %v2532_v63 = vsel %vm2529_vm5, %v2531_v55, %v2527_v47  ;;  %v2542_v49 = vsel %vm2541_vm4, %v3043_v15, %v2538_v52 }
 0x5c1   :  { %v2547_v5 = vsel %vm2544_vm6, %v2546_v26, %v2542_v49  ;;  %v2569_v13 = vmul.f32 %v3045_v60, %v2532_v63 }
 0x5c2   :  { %v2568_v2 = vmul.f32 %v2566_v9, %v2547_v5 }
 0x5c4   :  { %v5719_v54 = vadd.f32 %v2569_v13, %v2568_v2 }
 0x5c6   :  { %3046 = vtanh.f32 %v5719_v54 }
 0x5cc   :  { %v3047_v3 = vpop.eup %3046 }
 0x5cd   :  { %v2572_v16 = vmul.f32 %v3047_v3, %v2562_v61 }
 0x5cf   :  { %v2590_v57 = vrot.slane %v2572_v16, 4  ;;  %v2768_v16 = vrot.slane %v5719_v54, 6 }
 0x5d1   :  { %2608 = vmatmul.f32.vlgmr.msra.gmra.mxu2 %v2590_v57  ;;  %2629 = vmatmul.f32.vlgmr.msra.gmra.mxu3 %v2590_v57 }
 0x5d2   :  { %2649 = vmatmul.f32.vlgmr.msrb.gmra.mxu0 %v2590_v57  ;;  %2669 = vmatmul.f32.vlgmr.msrb.gmra.mxu1 %v2590_v57 }
 0x5d9   :  { %2689 = vmatmul.f32.vlgmr.msrb.gmra.mxu2 %v2590_v57 }
 0x64f   :  { %v2650_v20 = vpop.f32.mrf.mxu0  ;;  %v2670_v6 = vpop.f32.mrf.mxu1 }
 0x650   :  { %v2698_v32 = vrot.slane %v2650_v20, 2  ;;  %v2699_v58 = vrot.slane %v2670_v6, 2 }
 0x652   :  { %v2706_v0 = vadd.f32 %v2698_v32, %v6006_v62  ;;  %v2707_v42 = vadd.f32 %v2699_v58, %v6011_v53  ;;  %v2782_v62 = vld [vmem:[%s5814_s4 + $0x3b8] sm:$0xff] }
 0x653   :  { %2802 = vmatpush.msrb.mxu3 %v2782_v62 }
 0x654   :  { %v2926_v8 = vmul.f32 -1.442695, %v2706_v0  ;;  %v2927_v12 = vmul.f32 -1.442695, %v2707_v42  ;;  %v2609_v43 = vpop.f32.mrf.mxu2  ;;  %v2630_v23 = vpop.f32.mrf.mxu3 }
 0x655   :  { %v5752_v21 = vadd.f32 %v2609_v43, %v5692_v35  ;;  %v2697_v31 = vrot.slane %v2630_v23, 2  ;;  %2803 = vmatpush.msrb.mxu3 %v2781_v37  ;;  %v2780_v35 = vld [vmem:[%s5814_s4 + $0x3a8] sm:$0xff]  ;;  %v2821_v23 = vld [vmem:[%s5816_s6] sm:$0xff] }
 0x656   :  { %3048 = vpow2.f32 %v2926_v8  ;;  %v2822_v43 = vld [vmem:[%s5816_s6 + $0x8] sm:$0xff] }
 0x657   :  { %3050 = vpow2.f32 %v2927_v12  ;;  %v2705_v53 = vadd.f32 %v2697_v31, %v6005_v17  ;;  %2804 = vmatpush.msrb.mxu3 %v2780_v35  ;;  %v2778_v17 = vld [vmem:[%s5814_s4 + $0x398] sm:$0xff]  ;;  %v2823_v12 = vld [vmem:[%s5816_s6 + $0x10] sm:$0xff]  ;;  %v2934_v31 = vld [vmem:[%s5815_s5] ss:$0 sm:$0xff] }
 0x658   :  { %2846 = vmatpush.msra.mxu0 %v2823_v12  ;;  %v2935_v35 = vld [vmem:[#allocation2] ss:$0 sm:$0xff] }
 0x659   :  { %v2925_v28 = vmul.f32 -1.442695, %v2705_v53  ;;  %2805 = vmatpush.msrb.mxu3 %v2779_v41 }
 0x65a   :  { %2847 = vmatpush.msra.mxu0 %v2822_v43 }
 0x65b   :  { %3052 = vpow2.f32 %v2925_v28  ;;  %2806 = vmatpush.msrb.mxu3 %v2778_v17 }
 0x65c   :  { %v3049_v15 = vpop.eup %3048  ;;  %v2690_v14 = vpop.f32.mrf.mxu2  ;;  %2848 = vmatpush.msra.mxu0 %v2821_v23 }
 0x65d   :  { %v3051_v39 = vpop.eup %3050  ;;  %v2719_v11 = vadd.f32 1.0, %v3049_v15  ;;  %2807 = vmatpush.msrb.mxu3 %v2777_v25  ;;  %v2700_v34 = vrot.slane %v2690_v14, 2 }
 0x65e   :  { %v5773_v4 = vadd.f32 1.0, %v3051_v39 }
 0x65f   :  { %3054 = vrcp.f32 %v2719_v11  ;;  %2808 = vmatpush.msrb.mxu3 %v2776_v36  ;;  %v2708_v60 = vadd.f32 %v2700_v34, %v6018_v38  ;;  %v2747_v63 = vand.u32 2147483648, %v2719_v11  ;;  %vm2741_vm12 = vweird.f32 %v2719_v11 }
 0x660   :  { %3056 = vrcp.f32 %v5773_v4  ;;  %v2745_v13 = vand.u32 2147483647, %v2719_v11  ;;  %v2762_v32 = vand.u32 2147483648, %v5773_v4  ;;  %vm2756_vm4 = vweird.f32 %v5773_v4 }
 0x661   :  { %v3053_v19 = vpop.eup %3052  ;;  %2809 = vmatpush.msrb.mxu3 %v2775_v50  ;;  %v2748_v30 = vor.u32 1.1754944e-38, %v2747_v63  ;;  %v2760_v58 = vand.u32 2147483647, %v5773_v4 }
 0x662   :  { %v2718_v27 = vadd.f32 1.0, %v3053_v19  ;;  %vm2746_vm0 = vcmp.eq.f32.partialorder %v2745_v13, 8.507059e+37  ;;  %v2763_v54 = vor.u32 1.1754944e-38, %v2762_v32 }
 0x663   :  { %vm2761_vm6 = vcmp.eq.f32.partialorder %v2760_v58, 8.507059e+37 }
 0x664   :  { %3058 = vrcp.f32 %v2718_v27  ;;  %v2732_v2 = vand.u32 2147483648, %v2718_v27  ;;  %v2730_v59 = vand.u32 2147483647, %v2718_v27  ;;  %vm2726_vm15 = vweird.f32 %v2718_v27 }
 0x665   :  { %v3055_v1 = vpop.eup %3054  ;;  %3060 = vtanh.f32 %v2708_v60 }
 0x666   :  { %v2737_v7 = vmul.f32 %v3055_v1, %v2719_v11  ;;  %v3057_v52 = vpop.eup %3056  ;;  %vm2742_vm11 = vweird.f32 %v3055_v1  ;;  %v2733_v38 = vor.u32 1.1754944e-38, %v2732_v2  ;;  %vm2731_vm2 = vcmp.eq.f32.partialorder %v2730_v59, 8.507059e+37 }
 0x667   :  { %v2752_v49 = vmul.f32 %v3057_v52, %v5773_v4  ;;  %vm2743_vm13 = vmor %vm2741_vm12, %vm2742_vm11  ;;  %vm2757_vm3 = vweird.f32 %v3057_v52  ;;  %vm2872_vm11 = vcmask 1024  }
 0x668   :  { %v2738_v55 = vsub.f32 1.0, %v2737_v7  ;;  %vm2758_vm5 = vmor %vm2756_vm4, %vm2757_vm3 }
 0x669   :  { %v2753_v46 = vsub.f32 1.0, %v2752_v49 }
 0x66a   :  { %v3059_v26 = vpop.eup %3058  ;;  %v2739_v47 = vmul.f32 %v3055_v1, %v2738_v55 }
 0x66b   :  { %v2722_v9 = vmul.f32 %v3059_v26, %v2718_v27  ;;  %vm2727_vm14 = vweird.f32 %v3059_v26  ;;  %v3061_v40 = vpop.eup %3060  ;;  %v2754_v22 = vmul.f32 %v3057_v52, %v2753_v46 }
 0x66c   :  { %v2740_v24 = vadd.f32 %v3055_v1, %v2739_v47  ;;  %vm2728_vm1 = vmor %vm2726_vm15, %vm2727_vm14 }
 0x66d   :  { %v2723_v5 = vsub.f32 1.0, %v2722_v9  ;;  %v2755_v6 = vadd.f32 %v3057_v52, %v2754_v22 }
 0x66e   :  { %v2744_v44 = vsel %vm2743_vm13, %v3055_v1, %v2740_v24 }
 0x66f   :  { %v2724_v29 = vmul.f32 %v3059_v26, %v2723_v5  ;;  %v2749_v61 = vsel %vm2746_vm0, %v2748_v30, %v2744_v44  ;;  %v2759_v56 = vsel %vm2758_vm5, %v3057_v52, %v2755_v6 }
 0x670   :  { %v2770_v51 = vmul.f32 %v2768_v16, %v2749_v61  ;;  %v2764_v42 = vsel %vm2761_vm6, %v2763_v54, %v2759_v56 }
 0x671   :  { %v2725_v3 = vadd.f32 %v3059_v26, %v2724_v29 }
 0x673   :  { %v2729_v57 = vsel %vm2728_vm1, %v3059_v26, %v2725_v3 }
 0x674   :  { %v2734_v33 = vsel %vm2731_vm2, %v2733_v38, %v2729_v57 }
 0x675   :  { %v2771_v45 = vmul.f32 %v3061_v40, %v2734_v33 }
 0x677   :  { %v2772_v20 = vadd.f32 %v2771_v45, %v2770_v51 }
 0x679   :  { %3062 = vtanh.f32 %v2772_v20 }
 0x67f   :  { %v3063_v0 = vpop.eup %3062 }
 0x680   :  { %v2774_v18 = vmul.f32 %v3063_v0, %v2764_v42 }
 0x682   :  { %v2792_v8 = vrot.slane %v2774_v18, 6 }
 0x684   :  { %2810 = vmatmul.f32.vlgmr.msrb.gmra.mxu3 %v2792_v8 }
 0x707   :  { %v2811_v62 = vpop.f32.mrf.mxu3 }
 0x708   :  { %v2814_v53 = vadd.f32 %v2811_v62, %v5752_v21 }
 0x70a   :  { %v2819_v37 = vadd.f32 %v2934_v31, %v2814_v53 }
 0x70c   :  { %v2820_v28 = vmax.f32 %v2819_v37, 0.0 }
 0x70e   :  { %2928 = vmatmul.msk.f32.vlgmr.msra.gmra.mxu0 %vm2829_vm7, %v2820_v28 }
 0x78b   :  { %v2850_v41 = vpop.f32.mrf.mxu0 }
 0x78c   :  { %v2851_v15 = vadd.f32 %v2935_v35, %v2850_v41 }
 0x78e   :  { %v2929_v17 = vmul.f32 -1.442695, %v2851_v15 }
 0x790   :  { %3064 = vpow2.f32 %v2929_v17 }
 0x796   :  { %v3065_v39 = vpop.eup %3064 }
 0x797   :  { %v2856_v11 = vadd.f32 1.0, %v3065_v39 }
 0x799   :  { %3066 = vrcp.f32 %v2856_v11  ;;  %v2868_v19 = vand.u32 2147483648, %v2856_v11  ;;  %v2866_v50 = vand.u32 2147483647, %v2856_v11  ;;  %vm2862_vm9 = vweird.f32 %v2856_v11 }
 0x79b   :  { %v2869_v14 = vor.u32 1.1754944e-38, %v2868_v19  ;;  %vm2867_vm12 = vcmp.eq.f32.partialorder %v2866_v50, 8.507059e+37 }
 0x79f   :  { %v3067_v25 = vpop.eup %3066 }
 0x7a0   :  { %v2858_v4 = vmul.f32 %v3067_v25, %v2856_v11  ;;  %vm2863_vm8 = vweird.f32 %v3067_v25 }
 0x7a1   :  { %vm2864_vm10 = vmor %vm2862_vm9, %vm2863_vm8 }
 0x7a2   :  { %v2859_v36 = vsub.f32 1.0, %v2858_v4 }
 0x7a4   :  { %v2860_v27 = vmul.f32 %v3067_v25, %v2859_v36 }
 0x7a6   :  { %v2861_v21 = vadd.f32 %v3067_v25, %v2860_v27 }
 0x7a8   :  { %v2865_v10 = vsel %vm2864_vm10, %v3067_v25, %v2861_v21 }
 0x7a9   :  { %v2870_v1 = vsel %vm2867_vm12, %v2869_v14, %v2865_v10 }
 0x7aa   :  { %2873 = vst.msk [vmem:[%s5818_s8] sm:$0x3] %vm2872_vm11, %v2870_v1 }

</bundles_post_ra>
